<compile_context>
chip_gen: v6e
topology: v6e:2x2x1
jax: 0.10.0
libtpu: 0.0.40
codegen_flags: <defaults>
</compile_context>

<pallas_src>
import numpy as np
import jax
import jax.numpy as jnp
from jax.experimental import pallas as pl
from jax.experimental.pallas import tpu as pltpu

# Use full-f32 matmuls everywhere (kernel and reference) for a like-for-like check.
jax.config.update("jax_default_matmul_precision", "float32")


# --------------------------------------------------------------------------------------
# Kernel
# --------------------------------------------------------------------------------------
def _eprop_l0rd_rollout_kernel(
    # inputs
    x_ref, h0_ref,
    wx_all_ref, wh_gr_ref, wh_po_ref, b_gr_ref, b_po_ref,
    ewgx_in, ewgh_in, ebg_in, ewrx_in, ewrh_in, ebr_in,
    # outputs
    out_ref, hfin_ref, hg_ref,
    ewgx_o, ewgh_o, ebg_o, ewrx_o, ewrh_o, ebr_o,
):
    t = pl.program_id(1)
    nh = hfin_ref.shape[1]
    no = out_ref.shape[1]

    # Time-resident state: hidden state + the six eligibility traces live in the
    # revisited output VMEM blocks across all T steps of this batch tile; they are
    # read from HBM once (here) and written back once when the batch tile changes.
    @pl.when(t == 0)
    def _init():
        hfin_ref[...] = h0_ref[...]
        ewgx_o[...] = ewgx_in[...]
        ewgh_o[...] = ewgh_in[...]
        ebg_o[...] = ebg_in[...]
        ewrx_o[...] = ewrx_in[...]
        ewrh_o[...] = ewrh_in[...]
        ebr_o[...] = ebr_in[...]

    x = x_ref[...]
    h_last = hfin_ref[...]

    # All four x-projections fused into one wide MXU dot: columns are [g | r | p | o].
    # TODO(synk): gate_noise_level > 0 would add pltpu.prng_seed + pltpu.stateful_normal
    #             noise on the g columns; the module default noise std is 0.
    xw = jnp.dot(x, wx_all_ref[...], preferred_element_type=jnp.float32)

    gr = jnp.tanh(xw[:, :2 * nh]
                  + jnp.dot(h_last, wh_gr_ref[...], preferred_element_type=jnp.float32)
                  + b_gr_ref[...])
    g = jnp.maximum(gr[:, :nh], 0.0)          # relu(tanh(.))
    r = gr[:, nh:]

    one_minus_g = 1.0 - g
    h_g = (g > 0.0).astype(jnp.float32)       # == clip(ceil(g), 0, 1), since g in [0, 1)
    dg = (1.0 - g * g) * h_g
    dr = 1.0 - r * r
    delta_h = r - h_last
    a_g = dg * delta_h                        # shared 2-D factor for e_w_g*, e_b_g
    a_r = dr * g                              # shared 2-D factor for e_w_r*, e_b_r
    h = g * r + one_minus_g * h_last

    omg_j = one_minus_g[:, :, None]
    ag_j = a_g[:, :, None]
    ar_j = a_r[:, :, None]
    x_i = x[:, None, :]
    h_i = h_last[:, None, :]

    # In-place rank-1 updates on the resident trace blocks.
    ewgh_o[...] = ewgh_o[...] * omg_j + ag_j * h_i
    ewgx_o[...] = ewgx_o[...] * omg_j + ag_j * x_i
    ebg_o[...] = ebg_o[...] * one_minus_g + a_g
    ewrh_o[...] = ewrh_o[...] * omg_j + ar_j * h_i
    ewrx_o[...] = ewrx_o[...] * omg_j + ar_j * x_i
    ebr_o[...] = ebr_o[...] * one_minus_g + a_r

    # [p | o] projection on the NEW hidden state; x part reused from the fused dot.
    po = (xw[:, 2 * nh:]
          + jnp.dot(h, wh_po_ref[...], preferred_element_type=jnp.float32)
          + b_po_ref[...])
    p = jnp.tanh(po[:, :no])
    o = jax.nn.sigmoid(po[:, no:])

    out_ref[...] = o * p
    hg_ref[...] = h_g
    hfin_ref[...] = h


# --------------------------------------------------------------------------------------
# Parameter prep + tile sizing
# --------------------------------------------------------------------------------------
def prepare_params(params):
    """Transpose weights to (in, out) layout and fuse along the output axis.

    Call ONCE outside the time loop; the fused weights are reused every step.
    """
    f32 = jnp.float32
    return dict(
        # x-side: one wide matrix, columns = [g | r | p | o]
        w_x_all=jnp.concatenate([params["w_gx"].T, params["w_rx"].T,
                                 params["w_px"].T, params["w_ox"].T], axis=1).astype(f32),
        w_h_gr=jnp.concatenate([params["w_gh"].T, params["w_rh"].T], axis=1).astype(f32),
        w_h_po=jnp.concatenate([params["w_ph"].T, params["w_oh"].T], axis=1).astype(f32),
        b_gr=jnp.concatenate([params["b_g"], params["b_r"]]).reshape(1, -1).astype(f32),
        b_po=jnp.concatenate([params["b_p"], params["b_o"]]).reshape(1, -1).astype(f32),
    )


def _default_vmem_budget_bytes():
    """~75% of physical VMEM: ~96 MiB on v5e/v6e (128 MiB), ~48 MiB on a v7x core (64 MiB)."""
    cap = None
    try:
        info = pltpu.get_tpu_info()
        cap = getattr(info, "vmem_capacity_bytes", None) or getattr(info, "vmem_size_bytes", None)
    except Exception:
        cap = None
    if not cap:
        cap = 64 * 1024 * 1024
    return int(cap * 0.75)


def _pick_batch_tile(batch, ni, nh, no, vmem_budget_bytes, prefer_multicore=True):
    """Largest batch tile whose padding-aware, double-buffered working set fits the budget."""
    ceil_to = lambda n, m: -(-n // m) * m
    ni_l, nh_l, no_l = ceil_to(ni, 128), ceil_to(nh, 128), ceil_to(no, 128)
    nh_s = ceil_to(nh, 8)
    usable = int(vmem_budget_bytes * 0.85)          # Mosaic internal-scratch headroom

    # Constant-index weight/bias blocks (conservatively counted double-buffered).
    weight_bytes = 4 * 2 * (
        ceil_to(ni, 8) * ceil_to(2 * nh + 2 * no, 128)          # w_x_all
        + nh_s * ceil_to(2 * nh, 128)                           # w_h_gr
        + nh_s * ceil_to(2 * no, 128)                           # w_h_po
        + 8 * ceil_to(2 * nh, 128) + 8 * ceil_to(2 * no, 128))  # biases

    def tile_bytes(tb):
        tb_s = ceil_to(tb, 8)
        two_d = tb_s * (ni_l + no_l + 7 * nh_l)         # x, h0, hfin, hg, out, e_b_* (in+out)
        three_d = 4 * tb * nh_s * (ni_l + nh_l)         # e_w_{g,r}{x,h} (in + out)
        temps = 2 * tb * nh_s * max(ni_l, nh_l)         # in-kernel trace-update temporaries
        return weight_bytes + 4 * (2 * (two_d + three_d) + temps)

    candidates = [t for t in range(1, batch + 1)
                  if batch % t == 0 and (t % 8 == 0 or t == batch)]
    fitting = [t for t in candidates if tile_bytes(t) <= usable]
    if fitting:
        if prefer_multicore:
            multi = [t for t in fitting if batch // t >= 2]   # keep both v7x cores busy
            if multi:
                return max(multi)
        return max(fitting)
    # TODO(synk): if even the smallest tile exceeds the budget (very large NH/NI),
    # the kernel needs an additional hidden-dim grid axis.
    return min(candidates)


# --------------------------------------------------------------------------------------
# Wrapper
# --------------------------------------------------------------------------------------
def eprop_gate_l0rd_forward(x, h_last, prepared, traces, *,
                            batch_tile=None, vmem_budget_bytes=None,
                            prefer_multicore=True):
    """Run EpropGateL0rd eprop forward for one step (x: [B,NI]) or a T-step rollout
    (x: [T,B,NI]).  Returns (out, h_final, H_g, e_w_gx, e_w_gh, e_b_g, e_w_rx,
    e_w_rh, e_b_r); per-step outputs (out, H_g) carry the time axis iff x did.
    The six trace outputs alias the trace inputs (PyTorch mutates them in place),
    so callers must not reuse the passed-in trace arrays afterwards.
    """
    single_step = (x.ndim == 2)
    x_seq = x[None] if single_step else x
    T, B, NI = x_seq.shape
    NH = h_last.shape[1]
    NO = prepared["w_h_po"].shape[1] // 2

    if vmem_budget_bytes is None:
        vmem_budget_bytes = _default_vmem_budget_bytes()
    if batch_tile is None:
        batch_tile = _pick_batch_tile(B, NI, NH, NO, vmem_budget_bytes, prefer_multicore)
    assert B % batch_tile == 0, "batch tile must divide the batch"
    tb = batch_tile
    nbt = B // tb

    row2 = lambda i, t: (i, 0)          # batch-resident 2-D (constant over time)
    row3 = lambda i, t: (i, 0, 0)       # batch-resident 3-D (constant over time)
    time2 = lambda i, t: (t, i, 0)      # per-step slabs
    const2 = lambda i, t: (0, 0)        # weights/biases: fetched once, resident

    in_specs = [
        pl.BlockSpec((None, tb, NI), time2),                 # x_seq (per-step slab)
        pl.BlockSpec((tb, NH), row2),                        # h0 (read at t == 0)
        pl.BlockSpec(prepared["w_x_all"].shape, const2),     # fused [g|r|p|o] x-weights
        pl.BlockSpec(prepared["w_h_gr"].shape, const2),
        pl.BlockSpec(prepared["w_h_po"].shape, const2),
        pl.BlockSpec(prepared["b_gr"].shape, const2),
        pl.BlockSpec(prepared["b_po"].shape, const2),
        pl.BlockSpec((tb, NH, NI), row3),                    # e_w_gx
        pl.BlockSpec((tb, NH, NH), row3),                    # e_w_gh
        pl.BlockSpec((tb, NH), row2),                        # e_b_g
        pl.BlockSpec((tb, NH, NI), row3),                    # e_w_rx
        pl.BlockSpec((tb, NH, NH), row3),                    # e_w_rh
        pl.BlockSpec((tb, NH), row2),                        # e_b_r
    ]

    f32 = jnp.float32
    out_shapes = (
        jax.ShapeDtypeStruct((T, B, NO), f32),               # o * p, per step
        jax.ShapeDtypeStruct((B, NH), f32),                  # final h_last
        jax.ShapeDtypeStruct((T, B, NH), f32),               # H_g (openings), per step
        jax.ShapeDtypeStruct((B, NH, NI), f32),              # e_w_gx (final)
        jax.ShapeDtypeStruct((B, NH, NH), f32),              # e_w_gh
        jax.ShapeDtypeStruct((B, NH), f32),                  # e_b_g
        jax.ShapeDtypeStruct((B, NH, NI), f32),              # e_w_rx
        jax.ShapeDtypeStruct((B, NH, NH), f32),              # e_w_rh
        jax.ShapeDtypeStruct((B, NH), f32),                  # e_b_r
    )
    out_specs = (
        pl.BlockSpec((None, tb, NO), time2),
        pl.BlockSpec((tb, NH), row2),                        # resident accumulator
        pl.BlockSpec((None, tb, NH), time2),
        pl.BlockSpec((tb, NH, NI), row3),                    # resident accumulators
        pl.BlockSpec((tb, NH, NH), row3),
        pl.BlockSpec((tb, NH), row2),
        pl.BlockSpec((tb, NH, NI), row3),
        pl.BlockSpec((tb, NH, NH), row3),
        pl.BlockSpec((tb, NH), row2),
    )

    fn = pl.pallas_call(
        _eprop_l0rd_rollout_kernel,
        out_shape=out_shapes,
        grid=(nbt, T),
        in_specs=in_specs,
        out_specs=out_specs,
        # PyTorch semantics are in-place on the 6 trace buffers.
        input_output_aliases={7: 3, 8: 4, 9: 5, 10: 6, 11: 7, 12: 8},
        compiler_params=pltpu.CompilerParams(
            dimension_semantics=("parallel", "arbitrary"),   # batch tiles independent, time sequential
            vmem_limit_bytes=vmem_budget_bytes,
        ),
    )
    outs = fn(x_seq, h_last,
              prepared["w_x_all"], prepared["w_h_gr"], prepared["w_h_po"],
              prepared["b_gr"], prepared["b_po"],
              traces["e_w_gx"], traces["e_w_gh"], traces["e_b_g"],
              traces["e_w_rx"], traces["e_w_rh"], traces["e_b_r"])
    out_seq, h_fin, hg_seq, ewgx, ewgh, ebg, ewrx, ewrh, ebr = outs
    if single_step:
        out_seq, hg_seq = out_seq[0], hg_seq[0]
    return out_seq, h_fin, hg_seq, ewgx, ewgh, ebg, ewrx, ewrh, ebr


# --------------------------------------------------------------------------------------
# Pure-JAX reference (mirrors the PyTorch EpropGateL0rdFunction.forward + projections)
# --------------------------------------------------------------------------------------
def _reference_step(x, h_last, p, t):
    g = jnp.maximum(jnp.tanh(x @ p["w_gx"].T + h_last @ p["w_gh"].T + p["b_g"]), 0.0)
    r = jnp.tanh(x @ p["w_rx"].T + h_last @ p["w_rh"].T + p["b_r"])
    h = g * r + (1 - g) * h_last
    H_g = jnp.clip(jnp.ceil(g), 0.0, 1.0)
    dg = (1 - g ** 2) * H_g
    dr = 1 - r ** 2
    delta_h = r - h_last
    g_j, dg_j, dr_j, dh_j = g[:, :, None], dg[:, :, None], dr[:, :, None], delta_h[:, :, None]
    x_i, h_i = x[:, None, :], h_last[:, None, :]
    nt = dict(
        e_w_gh=t["e_w_gh"] * (1 - g_j) + dg_j * h_i * dh_j,
        e_w_gx=t["e_w_gx"] * (1 - g_j) + dg_j * x_i * dh_j,
        e_b_g=t["e_b_g"] * (1 - g) + dg * delta_h,
        e_w_rh=t["e_w_rh"] * (1 - g_j) + dr_j * h_i * g_j,
        e_w_rx=t["e_w_rx"] * (1 - g_j) + dr_j * x_i * g_j,
        e_b_r=t["e_b_r"] * (1 - g) + dr * g,
    )
    pp = jnp.tanh(x @ p["w_px"].T + h @ p["w_ph"].T + p["b_p"])
    oo = jax.nn.sigmoid(x @ p["w_ox"].T + h @ p["w_oh"].T + p["b_o"])
    return oo * pp, h, H_g, nt


# --------------------------------------------------------------------------------------
# Test
# --------------------------------------------------------------------------------------
if __name__ == "__main__":
    B, NI, NH, NO, T = 16, 32, 32, 32, 4

    stdv_ih = float(np.sqrt(6.0 / (NI + NH)))
    stdv_hh = float(np.sqrt(3.0 / NH))
    stdv_io = float(np.sqrt(6.0 / (NI + NO)))
    stdv_ho = float(np.sqrt(6.0 / (NH + NO)))

    key = jax.random.PRNGKey(0)
    ks = jax.random.split(key, 16)

    def u(k, shape, s):
        return jax.random.uniform(k, shape, jnp.float32, -s, s)

    params = {
        "w_gx": u(ks[0], (NH, NI), stdv_ih),
        "w_gh": u(ks[1], (NH, NH), stdv_hh),
        "b_g": jnp.zeros((NH,), jnp.float32),
        "w_rx": u(ks[2], (NH, NI), stdv_ih),
        "w_rh": u(ks[3], (NH, NH), stdv_hh),
        "b_r": jnp.zeros((NH,), jnp.float32),
        "w_px": u(ks[4], (NO, NI), stdv_io),
        "w_ph": u(ks[5], (NO, NH), stdv_ho),
        "b_p": jnp.zeros((NO,), jnp.float32),
        "w_ox": u(ks[6], (NO, NI), stdv_io),
        "w_oh": u(ks[7], (NO, NH), stdv_ho),
        "b_o": jnp.zeros((NO,), jnp.float32),
    }
    # Non-zero traces / hidden state so every term of the update is exercised
    # (the module initializes these buffers to zero; values here are arbitrary).
    traces_host = {
        "e_w_gx": np.asarray(0.01 * jax.random.normal(ks[8], (B, NH, NI), jnp.float32)),
        "e_w_gh": np.asarray(0.01 * jax.random.normal(ks[9], (B, NH, NH), jnp.float32)),
        "e_b_g": np.asarray(0.01 * jax.random.normal(ks[10], (B, NH), jnp.float32)),
        "e_w_rx": np.asarray(0.01 * jax.random.normal(ks[11], (B, NH, NI), jnp.float32)),
        "e_w_rh": np.asarray(0.01 * jax.random.normal(ks[12], (B, NH, NH), jnp.float32)),
        "e_b_r": np.asarray(0.01 * jax.random.normal(ks[13], (B, NH), jnp.float32)),
    }

    def device_traces():
        # fresh device buffers each call (the kernel aliases/mutates them in place)
        return {k: jnp.asarray(v) for k, v in traces_host.items()}

    x_seq = jax.random.normal(ks[14], (T, B, NI), jnp.float32)
    h0 = 0.1 * jax.random.normal(ks[15], (B, NH), jnp.float32)

    # ---- pure-JAX reference rollout (functional, no mutation) ----
    ref_outs, ref_hgs = [], []
    h_ref = h0
    t_ref = {k: jnp.asarray(v) for k, v in traces_host.items()}
    for s in range(T):
        o_s, h_ref, hg_s, t_ref = _reference_step(x_seq[s], h_ref, params, t_ref)
        ref_outs.append(o_s)
        ref_hgs.append(hg_s)
    refs = (jnp.stack(ref_outs), h_ref, jnp.stack(ref_hgs),
            t_ref["e_w_gx"], t_ref["e_w_gh"], t_ref["e_b_g"],
            t_ref["e_w_rx"], t_ref["e_w_rh"], t_ref["e_b_r"])
    refs = jax.block_until_ready(refs)

    # ---- Pallas kernel: T-step rollout with VMEM-resident traces / hidden state ----
    prepared = prepare_params(params)   # once, outside the time loop
    outs = eprop_gate_l0rd_forward(x_seq, h0, prepared, device_traces())
    outs = jax.block_until_ready(outs)

    for got, want in zip(outs, refs):
        np.testing.assert_allclose(np.asarray(got), np.asarray(want),
                                   rtol=2e-4, atol=2e-5)

    # ---- single module-`forward` step (2-D x) through the same kernel ----
    o1, h1, hg1, gx1, gh1, bg1, rx1, rh1, br1 = eprop_gate_l0rd_forward(
        x_seq[0], h0, prepared, device_traces())
    ro, rh, rhg, rt = _reference_step(x_seq[0], h0, params,
                                      {k: jnp.asarray(v) for k, v in traces_host.items()})
    step_pairs = [(o1, ro), (h1, rh), (hg1, rhg),
                  (gx1, rt["e_w_gx"]), (gh1, rt["e_w_gh"]), (bg1, rt["e_b_g"]),
                  (rx1, rt["e_w_rx"]), (rh1, rt["e_w_rh"]), (br1, rt["e_b_r"])]
    jax.block_until_ready([g for g, _ in step_pairs])
    for got, want in step_pairs:
        np.testing.assert_allclose(np.asarray(got), np.asarray(want),
                                   rtol=2e-4, atol=2e-5)

    print("KERNEL_OK")
</pallas_src>

<mosaic_0001>
module attributes {stable_mosaic.version = 11 : i64} {
  func.func @_eprop_l0rd_rollout_kernel(%arg0: i32, %arg1: i32, %arg2: memref<1x8x32xf32, #tpu.memory_space<vmem>>, %arg3: memref<8x32xf32, #tpu.memory_space<vmem>>, %arg4: memref<32x128xf32, #tpu.memory_space<vmem>>, %arg5: memref<32x64xf32, #tpu.memory_space<vmem>>, %arg6: memref<32x64xf32, #tpu.memory_space<vmem>>, %arg7: memref<1x64xf32, #tpu.memory_space<vmem>>, %arg8: memref<1x64xf32, #tpu.memory_space<vmem>>, %arg9: memref<8x32x32xf32, #tpu.memory_space<vmem>>, %arg10: memref<8x32x32xf32, #tpu.memory_space<vmem>>, %arg11: memref<8x32xf32, #tpu.memory_space<vmem>>, %arg12: memref<8x32x32xf32, #tpu.memory_space<vmem>>, %arg13: memref<8x32x32xf32, #tpu.memory_space<vmem>>, %arg14: memref<8x32xf32, #tpu.memory_space<vmem>>, %arg15: memref<1x8x32xf32, #tpu.memory_space<vmem>>, %arg16: memref<8x32xf32, #tpu.memory_space<vmem>>, %arg17: memref<1x8x32xf32, #tpu.memory_space<vmem>>, %arg18: memref<8x32x32xf32, #tpu.memory_space<vmem>>, %arg19: memref<8x32x32xf32, #tpu.memory_space<vmem>>, %arg20: memref<8x32xf32, #tpu.memory_space<vmem>>, %arg21: memref<8x32x32xf32, #tpu.memory_space<vmem>>, %arg22: memref<8x32x32xf32, #tpu.memory_space<vmem>>, %arg23: memref<8x32xf32, #tpu.memory_space<vmem>>) attributes {dimension_semantics = [#tpu.dimension_semantics<parallel>, #tpu.dimension_semantics<arbitrary>], iteration_bounds = array<i64: 2, 4>, scalar_prefetch = 0 : i64, scratch_operands = 0 : i64, tpu.core_type = #tpu.core_type<tc>, window_params = [{transform_indices = @transform_0, window_bounds = array<i64: 1, 8, 32>}, {transform_indices = @transform_1, window_bounds = array<i64: 8, 32>}, {pipeline_mode = #tpu.pipeline_mode<synchronous>, transform_indices = @transform_2, window_bounds = array<i64: 32, 128>}, {pipeline_mode = #tpu.pipeline_mode<synchronous>, transform_indices = @transform_3, window_bounds = array<i64: 32, 64>}, {pipeline_mode = #tpu.pipeline_mode<synchronous>, transform_indices = @transform_4, window_bounds = array<i64: 32, 64>}, {pipeline_mode = #tpu.pipeline_mode<synchronous>, transform_indices = @transform_5, window_bounds = array<i64: 1, 64>}, {pipeline_mode = #tpu.pipeline_mode<synchronous>, transform_indices = @transform_6, window_bounds = array<i64: 1, 64>}, {transform_indices = @transform_7, window_bounds = array<i64: 8, 32, 32>}, {transform_indices = @transform_8, window_bounds = array<i64: 8, 32, 32>}, {transform_indices = @transform_9, window_bounds = array<i64: 8, 32>}, {transform_indices = @transform_10, window_bounds = array<i64: 8, 32, 32>}, {transform_indices = @transform_11, window_bounds = array<i64: 8, 32, 32>}, {transform_indices = @transform_12, window_bounds = array<i64: 8, 32>}, {transform_indices = @transform_13, window_bounds = array<i64: 1, 8, 32>}, {transform_indices = @transform_14, window_bounds = array<i64: 8, 32>}, {transform_indices = @transform_15, window_bounds = array<i64: 1, 8, 32>}, {transform_indices = @transform_16, window_bounds = array<i64: 8, 32, 32>}, {transform_indices = @transform_17, window_bounds = array<i64: 8, 32, 32>}, {transform_indices = @transform_18, window_bounds = array<i64: 8, 32>}, {transform_indices = @transform_19, window_bounds = array<i64: 8, 32, 32>}, {transform_indices = @transform_20, window_bounds = array<i64: 8, 32, 32>}, {transform_indices = @transform_21, window_bounds = array<i64: 8, 32>}]} {
    %c0_i32 = arith.constant 0 : i32
    %0 = arith.cmpi eq, %arg1, %c0_i32 : i32
    %1 = arith.extui %0 : i1 to i32
    %c0_i32_0 = arith.constant 0 : i32
    %2 = arith.cmpi ne, %1, %c0_i32_0 : i32
    scf.if %2 {
      %c0_63 = arith.constant 0 : index
      %c0_64 = arith.constant 0 : index
      %107 = vector.load %arg3[%c0_63, %c0_64] : memref<8x32xf32, #tpu.memory_space<vmem>>, vector<8x32xf32>
      %c0_65 = arith.constant 0 : index
      %c0_66 = arith.constant 0 : index
      %108 = vector.load %arg16[%c0_65, %c0_66] : memref<8x32xf32, #tpu.memory_space<vmem>>, vector<8x32xf32>
      tpu.vector_store %arg16[%c0_65, %c0_66], %107 {strides = array<i32>} : memref<8x32xf32, #tpu.memory_space<vmem>>, vector<8x32xf32>,
      %c0_67 = arith.constant 0 : index
      %c0_68 = arith.constant 0 : index
      %c0_69 = arith.constant 0 : index
      %109 = vector.load %arg9[%c0_67, %c0_68, %c0_69] : memref<8x32x32xf32, #tpu.memory_space<vmem>>, vector<8x32x32xf32>
      %c0_70 = arith.constant 0 : index
      %c0_71 = arith.constant 0 : index
      %c0_72 = arith.constant 0 : index
      %110 = vector.load %arg18[%c0_70, %c0_71, %c0_72] : memref<8x32x32xf32, #tpu.memory_space<vmem>>, vector<8x32x32xf32>
      tpu.vector_store %arg18[%c0_70, %c0_71, %c0_72], %109 {strides = array<i32>} : memref<8x32x32xf32, #tpu.memory_space<vmem>>, vector<8x32x32xf32>,
      %c0_73 = arith.constant 0 : index
      %c0_74 = arith.constant 0 : index
      %c0_75 = arith.constant 0 : index
      %111 = vector.load %arg10[%c0_73, %c0_74, %c0_75] : memref<8x32x32xf32, #tpu.memory_space<vmem>>, vector<8x32x32xf32>
      %c0_76 = arith.constant 0 : index
      %c0_77 = arith.constant 0 : index
      %c0_78 = arith.constant 0 : index
      %112 = vector.load %arg19[%c0_76, %c0_77, %c0_78] : memref<8x32x32xf32, #tpu.memory_space<vmem>>, vector<8x32x32xf32>
      tpu.vector_store %arg19[%c0_76, %c0_77, %c0_78], %111 {strides = array<i32>} : memref<8x32x32xf32, #tpu.memory_space<vmem>>, vector<8x32x32xf32>,
      %c0_79 = arith.constant 0 : index
      %c0_80 = arith.constant 0 : index
      %113 = vector.load %arg11[%c0_79, %c0_80] : memref<8x32xf32, #tpu.memory_space<vmem>>, vector<8x32xf32>
      %c0_81 = arith.constant 0 : index
      %c0_82 = arith.constant 0 : index
      %114 = vector.load %arg20[%c0_81, %c0_82] : memref<8x32xf32, #tpu.memory_space<vmem>>, vector<8x32xf32>
      tpu.vector_store %arg20[%c0_81, %c0_82], %113 {strides = array<i32>} : memref<8x32xf32, #tpu.memory_space<vmem>>, vector<8x32xf32>,
      %c0_83 = arith.constant 0 : index
      %c0_84 = arith.constant 0 : index
      %c0_85 = arith.constant 0 : index
      %115 = vector.load %arg12[%c0_83, %c0_84, %c0_85] : memref<8x32x32xf32, #tpu.memory_space<vmem>>, vector<8x32x32xf32>
      %c0_86 = arith.constant 0 : index
      %c0_87 = arith.constant 0 : index
      %c0_88 = arith.constant 0 : index
      %116 = vector.load %arg21[%c0_86, %c0_87, %c0_88] : memref<8x32x32xf32, #tpu.memory_space<vmem>>, vector<8x32x32xf32>
      tpu.vector_store %arg21[%c0_86, %c0_87, %c0_88], %115 {strides = array<i32>} : memref<8x32x32xf32, #tpu.memory_space<vmem>>, vector<8x32x32xf32>,
      %c0_89 = arith.constant 0 : index
      %c0_90 = arith.constant 0 : index
      %c0_91 = arith.constant 0 : index
      %117 = vector.load %arg13[%c0_89, %c0_90, %c0_91] : memref<8x32x32xf32, #tpu.memory_space<vmem>>, vector<8x32x32xf32>
      %c0_92 = arith.constant 0 : index
      %c0_93 = arith.constant 0 : index
      %c0_94 = arith.constant 0 : index
      %118 = vector.load %arg22[%c0_92, %c0_93, %c0_94] : memref<8x32x32xf32, #tpu.memory_space<vmem>>, vector<8x32x32xf32>
      tpu.vector_store %arg22[%c0_92, %c0_93, %c0_94], %117 {strides = array<i32>} : memref<8x32x32xf32, #tpu.memory_space<vmem>>, vector<8x32x32xf32>,
      %c0_95 = arith.constant 0 : index
      %c0_96 = arith.constant 0 : index
      %119 = vector.load %arg14[%c0_95, %c0_96] : memref<8x32xf32, #tpu.memory_space<vmem>>, vector<8x32xf32>
      %c0_97 = arith.constant 0 : index
      %c0_98 = arith.constant 0 : index
      %120 = vector.load %arg23[%c0_97, %c0_98] : memref<8x32xf32, #tpu.memory_space<vmem>>, vector<8x32xf32>
      tpu.vector_store %arg23[%c0_97, %c0_98], %119 {strides = array<i32>} : memref<8x32xf32, #tpu.memory_space<vmem>>, vector<8x32xf32>,
    } else {
    }
    %c0 = arith.constant 0 : index
    %c0_1 = arith.constant 0 : index
    %c0_2 = arith.constant 0 : index
    %3 = vector.load %arg2[%c0, %c0_1, %c0_2] : memref<1x8x32xf32, #tpu.memory_space<vmem>>, vector<1x8x32xf32>
    %4 = vector.shape_cast %3 : vector<1x8x32xf32> to vector<8x32xf32>
    %c0_3 = arith.constant 0 : index
    %c0_4 = arith.constant 0 : index
    %5 = vector.load %arg16[%c0_3, %c0_4] : memref<8x32xf32, #tpu.memory_space<vmem>>, vector<8x32xf32>
    %c0_5 = arith.constant 0 : index
    %c0_6 = arith.constant 0 : index
    %6 = vector.load %arg4[%c0_5, %c0_6] : memref<32x128xf32, #tpu.memory_space<vmem>>, vector<32x128xf32>
    %cst = arith.constant dense<0.000000e+00> : vector<8x128xf32>
    %7 = tpu.matmul %4, %6, %cst {dimension_numbers = #tpu.dot_dimension_numbers<[1], [0], [0], [1], [0, 0, 1, 1], [], []>, precision = #tpu.contract_precision<fp32>} : vector<8x32xf32>, vector<32x128xf32>, vector<8x128xf32> -> vector<8x128xf32>
    %8 = vector.extract_strided_slice %7 {offsets = [0, 0], sizes = [8, 64], strides = [1, 1]} : vector<8x128xf32> to vector<8x64xf32>
    %c0_7 = arith.constant 0 : index
    %c0_8 = arith.constant 0 : index
    %9 = vector.load %arg5[%c0_7, %c0_8] : memref<32x64xf32, #tpu.memory_space<vmem>>, vector<32x64xf32>
    %cst_9 = arith.constant dense<0.000000e+00> : vector<8x64xf32>
    %10 = tpu.matmul %5, %9, %cst_9 {dimension_numbers = #tpu.dot_dimension_numbers<[1], [0], [0], [1], [0, 0, 1, 1], [], []>, precision = #tpu.contract_precision<fp32>} : vector<8x32xf32>, vector<32x64xf32>, vector<8x64xf32> -> vector<8x64xf32>
    %11 = arith.addf %8, %10 : vector<8x64xf32>
    %c0_10 = arith.constant 0 : index
    %c0_11 = arith.constant 0 : index
    %12 = vector.load %arg7[%c0_10, %c0_11] : memref<1x64xf32, #tpu.memory_space<vmem>>, vector<1x64xf32>
    %13 = vector.broadcast %12 : vector<1x64xf32> to vector<8x64xf32>
    %14 = arith.addf %11, %13 : vector<8x64xf32>
    %15 = math.tanh %14 : vector<8x64xf32>
    %16 = vector.extract_strided_slice %15 {offsets = [0, 0], sizes = [8, 32], strides = [1, 1]} : vector<8x64xf32> to vector<8x32xf32>
    %cst_12 = arith.constant 0.000000e+00 : f32
    %17 = vector.broadcast %cst_12 : f32 to vector<8x32xf32>
    %18 = arith.maximumf %16, %17 : vector<8x32xf32>
    %19 = vector.extract_strided_slice %15 {offsets = [0, 32], sizes = [8, 32], strides = [1, 1]} : vector<8x64xf32> to vector<8x32xf32>
    %cst_13 = arith.constant 1.000000e+00 : f32
    %20 = vector.broadcast %cst_13 : f32 to vector<8x32xf32>
    %21 = arith.subf %20, %18 : vector<8x32xf32>
    %cst_14 = arith.constant 0.000000e+00 : f32
    %22 = vector.broadcast %cst_14 : f32 to vector<8x32xf32>
    %23 = arith.cmpf ogt, %18, %22 : vector<8x32xf32>
    %24 = arith.extui %23 : vector<8x32xi1> to vector<8x32xi32>
    %25 = arith.sitofp %24 : vector<8x32xi32> to vector<8x32xf32>
    %26 = arith.mulf %18, %18 : vector<8x32xf32>
    %cst_15 = arith.constant 1.000000e+00 : f32
    %27 = vector.broadcast %cst_15 : f32 to vector<8x32xf32>
    %28 = arith.subf %27, %26 : vector<8x32xf32>
    %29 = arith.mulf %28, %25 : vector<8x32xf32>
    %30 = arith.mulf %19, %19 : vector<8x32xf32>
    %cst_16 = arith.constant 1.000000e+00 : f32
    %31 = vector.broadcast %cst_16 : f32 to vector<8x32xf32>
    %32 = arith.subf %31, %30 : vector<8x32xf32>
    %33 = arith.subf %19, %5 : vector<8x32xf32>
    %34 = arith.mulf %29, %33 : vector<8x32xf32>
    %35 = arith.mulf %32, %18 : vector<8x32xf32>
    %36 = arith.mulf %18, %19 : vector<8x32xf32>
    %37 = arith.mulf %21, %5 : vector<8x32xf32>
    %38 = arith.addf %36, %37 : vector<8x32xf32>
    %39 = vector.shape_cast %21 : vector<8x32xf32> to vector<8x32x1xf32>
    %40 = vector.shape_cast %34 : vector<8x32xf32> to vector<8x32x1xf32>
    %41 = vector.shape_cast %35 : vector<8x32xf32> to vector<8x32x1xf32>
    %42 = vector.shape_cast %4 : vector<8x32xf32> to vector<8x1x32xf32>
    %43 = vector.shape_cast %5 : vector<8x32xf32> to vector<8x1x32xf32>
    %c0_17 = arith.constant 0 : index
    %c0_18 = arith.constant 0 : index
    %c0_19 = arith.constant 0 : index
    %44 = vector.load %arg19[%c0_17, %c0_18, %c0_19] : memref<8x32x32xf32, #tpu.memory_space<vmem>>, vector<8x32x32xf32>
    %45 = vector.broadcast %39 : vector<8x32x1xf32> to vector<8x32x32xf32>
    %46 = arith.mulf %44, %45 : vector<8x32x32xf32>
    %47 = vector.broadcast %40 : vector<8x32x1xf32> to vector<8x32x32xf32>
    %48 = vector.broadcast %43 : vector<8x1x32xf32> to vector<8x32x32xf32>
    %49 = arith.mulf %47, %48 : vector<8x32x32xf32>
    %50 = arith.addf %46, %49 : vector<8x32x32xf32>
    %c0_20 = arith.constant 0 : index
    %c0_21 = arith.constant 0 : index
    %c0_22 = arith.constant 0 : index
    %51 = vector.load %arg19[%c0_20, %c0_21, %c0_22] : memref<8x32x32xf32, #tpu.memory_space<vmem>>, vector<8x32x32xf32>
    tpu.vector_store %arg19[%c0_20, %c0_21, %c0_22], %50 {strides = array<i32>} : memref<8x32x32xf32, #tpu.memory_space<vmem>>, vector<8x32x32xf32>,
    %c0_23 = arith.constant 0 : index
    %c0_24 = arith.constant 0 : index
    %c0_25 = arith.constant 0 : index
    %52 = vector.load %arg18[%c0_23, %c0_24, %c0_25] : memref<8x32x32xf32, #tpu.memory_space<vmem>>, vector<8x32x32xf32>
    %53 = vector.broadcast %39 : vector<8x32x1xf32> to vector<8x32x32xf32>
    %54 = arith.mulf %52, %53 : vector<8x32x32xf32>
    %55 = vector.broadcast %40 : vector<8x32x1xf32> to vector<8x32x32xf32>
    %56 = vector.broadcast %42 : vector<8x1x32xf32> to vector<8x32x32xf32>
    %57 = arith.mulf %55, %56 : vector<8x32x32xf32>
    %58 = arith.addf %54, %57 : vector<8x32x32xf32>
    %c0_26 = arith.constant 0 : index
    %c0_27 = arith.constant 0 : index
    %c0_28 = arith.constant 0 : index
    %59 = vector.load %arg18[%c0_26, %c0_27, %c0_28] : memref<8x32x32xf32, #tpu.memory_space<vmem>>, vector<8x32x32xf32>
    tpu.vector_store %arg18[%c0_26, %c0_27, %c0_28], %58 {strides = array<i32>} : memref<8x32x32xf32, #tpu.memory_space<vmem>>, vector<8x32x32xf32>,
    %c0_29 = arith.constant 0 : index
    %c0_30 = arith.constant 0 : index
    %60 = vector.load %arg20[%c0_29, %c0_30] : memref<8x32xf32, #tpu.memory_space<vmem>>, vector<8x32xf32>
    %61 = arith.mulf %60, %21 : vector<8x32xf32>
    %62 = arith.addf %61, %34 : vector<8x32xf32>
    %c0_31 = arith.constant 0 : index
    %c0_32 = arith.constant 0 : index
    %63 = vector.load %arg20[%c0_31, %c0_32] : memref<8x32xf32, #tpu.memory_space<vmem>>, vector<8x32xf32>
    tpu.vector_store %arg20[%c0_31, %c0_32], %62 {strides = array<i32>} : memref<8x32xf32, #tpu.memory_space<vmem>>, vector<8x32xf32>,
    %c0_33 = arith.constant 0 : index
    %c0_34 = arith.constant 0 : index
    %c0_35 = arith.constant 0 : index
    %64 = vector.load %arg22[%c0_33, %c0_34, %c0_35] : memref<8x32x32xf32, #tpu.memory_space<vmem>>, vector<8x32x32xf32>
    %65 = vector.broadcast %39 : vector<8x32x1xf32> to vector<8x32x32xf32>
    %66 = arith.mulf %64, %65 : vector<8x32x32xf32>
    %67 = vector.broadcast %41 : vector<8x32x1xf32> to vector<8x32x32xf32>
    %68 = vector.broadcast %43 : vector<8x1x32xf32> to vector<8x32x32xf32>
    %69 = arith.mulf %67, %68 : vector<8x32x32xf32>
    %70 = arith.addf %66, %69 : vector<8x32x32xf32>
    %c0_36 = arith.constant 0 : index
    %c0_37 = arith.constant 0 : index
    %c0_38 = arith.constant 0 : index
    %71 = vector.load %arg22[%c0_36, %c0_37, %c0_38] : memref<8x32x32xf32, #tpu.memory_space<vmem>>, vector<8x32x32xf32>
    tpu.vector_store %arg22[%c0_36, %c0_37, %c0_38], %70 {strides = array<i32>} : memref<8x32x32xf32, #tpu.memory_space<vmem>>, vector<8x32x32xf32>,
    %c0_39 = arith.constant 0 : index
    %c0_40 = arith.constant 0 : index
    %c0_41 = arith.constant 0 : index
    %72 = vector.load %arg21[%c0_39, %c0_40, %c0_41] : memref<8x32x32xf32, #tpu.memory_space<vmem>>, vector<8x32x32xf32>
    %73 = vector.broadcast %39 : vector<8x32x1xf32> to vector<8x32x32xf32>
    %74 = arith.mulf %72, %73 : vector<8x32x32xf32>
    %75 = vector.broadcast %41 : vector<8x32x1xf32> to vector<8x32x32xf32>
    %76 = vector.broadcast %42 : vector<8x1x32xf32> to vector<8x32x32xf32>
    %77 = arith.mulf %75, %76 : vector<8x32x32xf32>
    %78 = arith.addf %74, %77 : vector<8x32x32xf32>
    %c0_42 = arith.constant 0 : index
    %c0_43 = arith.constant 0 : index
    %c0_44 = arith.constant 0 : index
    %79 = vector.load %arg21[%c0_42, %c0_43, %c0_44] : memref<8x32x32xf32, #tpu.memory_space<vmem>>, vector<8x32x32xf32>
    tpu.vector_store %arg21[%c0_42, %c0_43, %c0_44], %78 {strides = array<i32>} : memref<8x32x32xf32, #tpu.memory_space<vmem>>, vector<8x32x32xf32>,
    %c0_45 = arith.constant 0 : index
    %c0_46 = arith.constant 0 : index
    %80 = vector.load %arg23[%c0_45, %c0_46] : memref<8x32xf32, #tpu.memory_space<vmem>>, vector<8x32xf32>
    %81 = arith.mulf %80, %21 : vector<8x32xf32>
    %82 = arith.addf %81, %35 : vector<8x32xf32>
    %c0_47 = arith.constant 0 : index
    %c0_48 = arith.constant 0 : index
    %83 = vector.load %arg23[%c0_47, %c0_48] : memref<8x32xf32, #tpu.memory_space<vmem>>, vector<8x32xf32>
    tpu.vector_store %arg23[%c0_47, %c0_48], %82 {strides = array<i32>} : memref<8x32xf32, #tpu.memory_space<vmem>>, vector<8x32xf32>,
    %84 = vector.extract_strided_slice %7 {offsets = [0, 64], sizes = [8, 64], strides = [1, 1]} : vector<8x128xf32> to vector<8x64xf32>
    %c0_49 = arith.constant 0 : index
    %c0_50 = arith.constant 0 : index
    %85 = vector.load %arg6[%c0_49, %c0_50] : memref<32x64xf32, #tpu.memory_space<vmem>>, vector<32x64xf32>
    %cst_51 = arith.constant dense<0.000000e+00> : vector<8x64xf32>
    %86 = tpu.matmul %38, %85, %cst_51 {dimension_numbers = #tpu.dot_dimension_numbers<[1], [0], [0], [1], [0, 0, 1, 1], [], []>, precision = #tpu.contract_precision<fp32>} : vector<8x32xf32>, vector<32x64xf32>, vector<8x64xf32> -> vector<8x64xf32>
    %87 = arith.addf %84, %86 : vector<8x64xf32>
    %c0_52 = arith.constant 0 : index
    %c0_53 = arith.constant 0 : index
    %88 = vector.load %arg8[%c0_52, %c0_53] : memref<1x64xf32, #tpu.memory_space<vmem>>, vector<1x64xf32>
    %89 = vector.broadcast %88 : vector<1x64xf32> to vector<8x64xf32>
    %90 = arith.addf %87, %89 : vector<8x64xf32>
    %91 = vector.extract_strided_slice %90 {offsets = [0, 0], sizes = [8, 32], strides = [1, 1]} : vector<8x64xf32> to vector<8x32xf32>
    %92 = math.tanh %91 : vector<8x32xf32>
    %93 = vector.extract_strided_slice %90 {offsets = [0, 32], sizes = [8, 32], strides = [1, 1]} : vector<8x64xf32> to vector<8x32xf32>
    %94 = arith.negf %93 : vector<8x32xf32>
    %95 = math.exp %94 : vector<8x32xf32>
    %cst_54 = arith.constant 1.000000e+00 : f32
    %96 = vector.broadcast %cst_54 : f32 to vector<8x32xf32>
    %97 = arith.addf %96, %95 : vector<8x32xf32>
    %98 = arith.divf %96, %97 : vector<8x32xf32>
    %99 = arith.mulf %98, %92 : vector<8x32xf32>
    %c0_55 = arith.constant 0 : index
    %c0_56 = arith.constant 0 : index
    %c0_57 = arith.constant 0 : index
    %100 = vector.load %arg15[%c0_55, %c0_56, %c0_57] : memref<1x8x32xf32, #tpu.memory_space<vmem>>, vector<1x8x32xf32>
    %101 = vector.shape_cast %100 : vector<1x8x32xf32> to vector<8x32xf32>
    %102 = vector.shape_cast %99 : vector<8x32xf32> to vector<1x8x32xf32>
    tpu.vector_store %arg15[%c0_55, %c0_56, %c0_57], %102 {strides = array<i32>} : memref<1x8x32xf32, #tpu.memory_space<vmem>>, vector<1x8x32xf32>,
    %c0_58 = arith.constant 0 : index
    %c0_59 = arith.constant 0 : index
    %c0_60 = arith.constant 0 : index
    %103 = vector.load %arg17[%c0_58, %c0_59, %c0_60] : memref<1x8x32xf32, #tpu.memory_space<vmem>>, vector<1x8x32xf32>
    %104 = vector.shape_cast %103 : vector<1x8x32xf32> to vector<8x32xf32>
    %105 = vector.shape_cast %25 : vector<8x32xf32> to vector<1x8x32xf32>
    tpu.vector_store %arg17[%c0_58, %c0_59, %c0_60], %105 {strides = array<i32>} : memref<1x8x32xf32, #tpu.memory_space<vmem>>, vector<1x8x32xf32>,
    %c0_61 = arith.constant 0 : index
    %c0_62 = arith.constant 0 : index
    %106 = vector.load %arg16[%c0_61, %c0_62] : memref<8x32xf32, #tpu.memory_space<vmem>>, vector<8x32xf32>
    tpu.vector_store %arg16[%c0_61, %c0_62], %38 {strides = array<i32>} : memref<8x32xf32, #tpu.memory_space<vmem>>, vector<8x32xf32>,
    return
  }
  func.func @transform_0(%arg0: i32, %arg1: i32) -> (i32, i32, i32) {
    %c0_i32 = arith.constant 0 : i32
    %c0_i32_0 = arith.constant 0 : i32
    return %arg1, %arg0, %c0_i32 : i32, i32, i32
  }
  func.func @transform_1(%arg0: i32, %arg1: i32) -> (i32, i32) {
    %c0_i32 = arith.constant 0 : i32
    %c0_i32_0 = arith.constant 0 : i32
    return %arg0, %c0_i32 : i32, i32
  }
  func.func @transform_2(%arg0: i32, %arg1: i32) -> (i32, i32) {
    %c0_i32 = arith.constant 0 : i32
    %c0_i32_0 = arith.constant 0 : i32
    %c0_i32_1 = arith.constant 0 : i32
    return %c0_i32, %c0_i32_0 : i32, i32
  }
  func.func @transform_3(%arg0: i32, %arg1: i32) -> (i32, i32) {
    %c0_i32 = arith.constant 0 : i32
    %c0_i32_0 = arith.constant 0 : i32
    %c0_i32_1 = arith.constant 0 : i32
    return %c0_i32, %c0_i32_0 : i32, i32
  }
  func.func @transform_4(%arg0: i32, %arg1: i32) -> (i32, i32) {
    %c0_i32 = arith.constant 0 : i32
    %c0_i32_0 = arith.constant 0 : i32
    %c0_i32_1 = arith.constant 0 : i32
    return %c0_i32, %c0_i32_0 : i32, i32
  }
  func.func @transform_5(%arg0: i32, %arg1: i32) -> (i32, i32) {
    %c0_i32 = arith.constant 0 : i32
    %c0_i32_0 = arith.constant 0 : i32
    %c0_i32_1 = arith.constant 0 : i32
    return %c0_i32, %c0_i32_0 : i32, i32
  }
  func.func @transform_6(%arg0: i32, %arg1: i32) -> (i32, i32) {
    %c0_i32 = arith.constant 0 : i32
    %c0_i32_0 = arith.constant 0 : i32
    %c0_i32_1 = arith.constant 0 : i32
    return %c0_i32, %c0_i32_0 : i32, i32
  }
  func.func @transform_7(%arg0: i32, %arg1: i32) -> (i32, i32, i32) {
    %c0_i32 = arith.constant 0 : i32
    %c0_i32_0 = arith.constant 0 : i32
    %c0_i32_1 = arith.constant 0 : i32
    return %arg0, %c0_i32, %c0_i32_0 : i32, i32, i32
  }
  func.func @transform_8(%arg0: i32, %arg1: i32) -> (i32, i32, i32) {
    %c0_i32 = arith.constant 0 : i32
    %c0_i32_0 = arith.constant 0 : i32
    %c0_i32_1 = arith.constant 0 : i32
    return %arg0, %c0_i32, %c0_i32_0 : i32, i32, i32
  }
  func.func @transform_9(%arg0: i32, %arg1: i32) -> (i32, i32) {
    %c0_i32 = arith.constant 0 : i32
    %c0_i32_0 = arith.constant 0 : i32
    return %arg0, %c0_i32 : i32, i32
  }
  func.func @transform_10(%arg0: i32, %arg1: i32) -> (i32, i32, i32) {
    %c0_i32 = arith.constant 0 : i32
    %c0_i32_0 = arith.constant 0 : i32
    %c0_i32_1 = arith.constant 0 : i32
    return %arg0, %c0_i32, %c0_i32_0 : i32, i32, i32
  }
  func.func @transform_11(%arg0: i32, %arg1: i32) -> (i32, i32, i32) {
    %c0_i32 = arith.constant 0 : i32
    %c0_i32_0 = arith.constant 0 : i32
    %c0_i32_1 = arith.constant 0 : i32
    return %arg0, %c0_i32, %c0_i32_0 : i32, i32, i32
  }
  func.func @transform_12(%arg0: i32, %arg1: i32) -> (i32, i32) {
    %c0_i32 = arith.constant 0 : i32
    %c0_i32_0 = arith.constant 0 : i32
    return %arg0, %c0_i32 : i32, i32
  }
  func.func @transform_13(%arg0: i32, %arg1: i32) -> (i32, i32, i32) {
    %c0_i32 = arith.constant 0 : i32
    %c0_i32_0 = arith.constant 0 : i32
    return %arg1, %arg0, %c0_i32 : i32, i32, i32
  }
  func.func @transform_14(%arg0: i32, %arg1: i32) -> (i32, i32) {
    %c0_i32 = arith.constant 0 : i32
    %c0_i32_0 = arith.constant 0 : i32
    return %arg0, %c0_i32 : i32, i32
  }
  func.func @transform_15(%arg0: i32, %arg1: i32) -> (i32, i32, i32) {
    %c0_i32 = arith.constant 0 : i32
    %c0_i32_0 = arith.constant 0 : i32
    return %arg1, %arg0, %c0_i32 : i32, i32, i32
  }
  func.func @transform_16(%arg0: i32, %arg1: i32) -> (i32, i32, i32) {
    %c0_i32 = arith.constant 0 : i32
    %c0_i32_0 = arith.constant 0 : i32
    %c0_i32_1 = arith.constant 0 : i32
    return %arg0, %c0_i32, %c0_i32_0 : i32, i32, i32
  }
  func.func @transform_17(%arg0: i32, %arg1: i32) -> (i32, i32, i32) {
    %c0_i32 = arith.constant 0 : i32
    %c0_i32_0 = arith.constant 0 : i32
    %c0_i32_1 = arith.constant 0 : i32
    return %arg0, %c0_i32, %c0_i32_0 : i32, i32, i32
  }
  func.func @transform_18(%arg0: i32, %arg1: i32) -> (i32, i32) {
    %c0_i32 = arith.constant 0 : i32
    %c0_i32_0 = arith.constant 0 : i32
    return %arg0, %c0_i32 : i32, i32
  }
  func.func @transform_19(%arg0: i32, %arg1: i32) -> (i32, i32, i32) {
    %c0_i32 = arith.constant 0 : i32
    %c0_i32_0 = arith.constant 0 : i32
    %c0_i32_1 = arith.constant 0 : i32
    return %arg0, %c0_i32, %c0_i32_0 : i32, i32, i32
  }
  func.func @transform_20(%arg0: i32, %arg1: i32) -> (i32, i32, i32) {
    %c0_i32 = arith.constant 0 : i32
    %c0_i32_0 = arith.constant 0 : i32
    %c0_i32_1 = arith.constant 0 : i32
    return %arg0, %c0_i32, %c0_i32_0 : i32, i32, i32
  }
  func.func @transform_21(%arg0: i32, %arg1: i32) -> (i32, i32) {
    %c0_i32 = arith.constant 0 : i32
    %c0_i32_0 = arith.constant 0 : i32
    return %arg0, %c0_i32 : i32, i32
  }
}

</mosaic_0001>

<bundles_post_ra>
// kernel: tpu_custom_call.1
= control target key start
LH: loop header
LB: loop body
LE: loop exit
PB: predicated region body
PF: predicated region fallthrough
CT: control target
= control target key end

     0   :  { %s8497_s0 = inlined_call_operand.vmem [shape: f32[4,16,32], index: 0, kind: input, shape index: {}]   ;;  %s8498_s1 = inlined_call_operand.vmem [shape: f32[16,32], index: 1, kind: input, shape index: {}]   ;;  %s8499_s2 = inlined_call_operand.vmem [shape: f32[32,128], index: 2, kind: input, shape index: {}]   ;;  %s8500_s3 = inlined_call_operand.vmem [shape: f32[32,64], index: 3, kind: input, shape index: {}]   ;;  %s8501_s4 = inlined_call_operand.vmem [shape: f32[32,64], index: 4, kind: input, shape index: {}]   ;;  %s8502_s5 = inlined_call_operand.vmem [shape: f32[1,64], index: 5, kind: input, shape index: {}]   ;;  %s8503_s6 = inlined_call_operand.vmem [shape: f32[1,64], index: 6, kind: input, shape index: {}]   ;;  %s8504_s7 = inlined_call_operand.hbm [shape: f32[16,32,32], index: 7, kind: input, shape index: {}, may-alias: {7,16}]   ;;  %s8505_s8 = inlined_call_operand.hbm [shape: f32[16,32,32], index: 8, kind: input, shape index: {}, may-alias: {8,17}]   ;;  %s8506_s9 = inlined_call_operand.hbm [shape: f32[16,32], index: 9, kind: input, shape index: {}, may-alias: {9,18}]   ;;  %s8507_s10 = inlined_call_operand.hbm [shape: f32[16,32,32], index: 10, kind: input, shape index: {}, may-alias: {10,19}]   ;;  %s8508_s11 = inlined_call_operand.hbm [shape: f32[16,32,32], index: 11, kind: input, shape index: {}, may-alias: {11,20}]   ;;  %s8509_s12 = inlined_call_operand.hbm [shape: f32[16,32], index: 12, kind: input, shape index: {}, may-alias: {12,21}]   ;;  %s8510_s13 = inlined_call_operand.hbm [shape: f32[4,16,32], index: 13, kind: output, shape index: {0}]   ;;  %s8511_s14 = inlined_call_operand.hbm [shape: f32[16,32], index: 14, kind: output, shape index: {1}]   ;;  %s8512_s15 = inlined_call_operand.hbm [shape: f32[4,16,32], index: 15, kind: output, shape index: {2}]   ;;  %s8513_s16 = inlined_call_operand.hbm [shape: f32[16,32,32], index: 16, kind: output, shape index: {3}, may-alias: {7,16}]   ;;  %s8514_s17 = inlined_call_operand.hbm [shape: f32[16,32,32], index: 17, kind: output, shape index: {4}, may-alias: {8,17}]   ;;  %s8515_s18 = inlined_call_operand.hbm [shape: f32[16,32], index: 18, kind: output, shape index: {5}, may-alias: {9,18}]   ;;  %s8516_s19 = inlined_call_operand.hbm [shape: f32[16,32,32], index: 19, kind: output, shape index: {6}, may-alias: {10,19}]   ;;  %s8517_s20 = inlined_call_operand.hbm [shape: f32[16,32,32], index: 20, kind: output, shape index: {7}, may-alias: {11,20}]   ;;  %s8518_s21 = inlined_call_operand.hbm [shape: f32[16,32], index: 21, kind: output, shape index: {8}, may-alias: {12,21}]  }
   0x1   :  { %8587 = sst [smem:[#allocation62_spill]] %s8497_s0 }
   0x2   :  { %8588 = sst [smem:[#allocation63_spill]] %s8498_s1 }
   0x3   :  { %8589 = sst [smem:[#allocation64_spill]] %s8499_s2 }
   0x4   :  { %8590 = sst [smem:[#allocation65_spill]] %s8500_s3 }
   0x5   :  { %8591 = sst [smem:[#allocation66_spill]] %s8501_s4 }
   0x6   :  { %8592 = sst [smem:[#allocation67_spill]] %s8502_s5 }
   0x7   :  { %8593 = sst [smem:[#allocation68_spill]] %s8503_s6 }
   0x8   :  { %8594 = sst [smem:[#allocation69_spill]] %s8504_s7 }
   0x9   :  { %8595 = sst [smem:[#allocation70_spill]] %s8505_s8 }
   0xa   :  { %8596 = sst [smem:[#allocation71_spill]] %s8506_s9 }
   0xb   :  { %8597 = sst [smem:[#allocation72_spill]] %s8507_s10 }
   0xc   :  { %8598 = sst [smem:[#allocation73_spill]] %s8508_s11 }
   0xd   :  { %8599 = sst [smem:[#allocation74_spill]] %s8509_s12 }
   0xe   :  { %8600 = sst [smem:[#allocation75_spill]] %s8510_s13 }
   0xf   :  { %8601 = sst [smem:[#allocation76_spill]] %s8511_s14 }
  0x10   :  { %8602 = sst [smem:[#allocation77_spill]] %s8512_s15 }
  0x11   :  { %8603 = sst [smem:[#allocation78_spill]] %s8513_s16 }
  0x12   :  { %8604 = sst [smem:[#allocation79_spill]] %s8514_s17 }
  0x13   :  { %8605 = sst [smem:[#allocation80_spill]] %s8515_s18 }
  0x14   :  { %8606 = sst [smem:[#allocation81_spill]] %s8516_s19 }
  0x15   :  { %8607 = sst [smem:[#allocation82_spill]] %s8517_s20 }
  0x16   :  { %8608 = sst [smem:[#allocation83_spill]] %s8518_s21 }
  0x17   :  { %27 = vsyncpa [#allocation3], 0 }
  0x18   :  { %29 = vsyncpa [#allocation3 + $0x1], 0 }
  0x19   :  { %30 = vsyncpa [#allocation6], 0 }
  0x1a   :  { %32 = vsyncpa [#allocation6 + $0x1], 0 }
  0x1b   :  { %33 = vsyncpa [#allocation9], 0 }
  0x1c   :  { %35 = vsyncpa [#allocation9 + $0x1], 0 }
  0x1d   :  { %36 = vsyncpa [#allocation12], 0 }
  0x1e   :  { %38 = vsyncpa [#allocation12 + $0x1], 0 }
  0x1f   :  { %39 = vsyncpa [#allocation4], 0 }
  0x20   :  { %41 = vsyncpa [#allocation4 + $0x1], 0 }
  0x21   :  { %42 = vsyncpa [#allocation15], 0 }
  0x22   :  { %44 = vsyncpa [#allocation15 + $0x1], 0 }
  0x23   :  { %45 = vsyncpa [#allocation18], 0 }
  0x24   :  { %47 = vsyncpa [#allocation18 + $0x1], 0 }
  0x25   :  { %48 = vsyncpa [#allocation21], 0 }
  0x26   :  { %50 = vsyncpa [#allocation21 + $0x1], 0 }
  0x27   :  { %51 = vsyncpa [#allocation24], 0 }
  0x28   :  { %53 = vsyncpa [#allocation24 + $0x1], 0  ;;  %s6002_s2 = smov 0   ;;  %s6004_s25 = smov 0  }
  0x29   :  { %s6006_s26 = smov 0   ;;  %s6008_s27 = smov 0  }
  0x2a   :  { %s6010_s3 = smov 0   ;;  %s6012_s28 = smov 0  }
  0x2b   :  { %s6014_s29 = smov 0   ;;  %s6016_s0 = smov 0  }
  0x2c   :  { %s6018_s4 = smov 0   ;;  %s6020_s30 = smov 0  }
  0x2d   :  { %s6022_s5 = smov 0  }
  0x2e LB: > { %8609 = sst [smem:[#allocation36_spill]] %s5825_s2  ;;  %s6058_s22 = sadd.s32 4294967295, %s5865_s5   ;;  %s5865_s5 = sphi %s6022_s5, %s59_s5   ;;  %s5861_s30 = sphi %s6020_s30, %s8726_s30   ;;  %s5857_s4 = sphi %s6018_s4, %s8721_s4   ;;  %s5853_s0 = sphi %s6016_s0, %s8725_s0   ;;  %s5849_s29 = sphi %s6014_s29, %s8720_s29   ;;  %s5845_s28 = sphi %s6012_s28, %s8719_s28   ;;  %s5841_s3 = sphi %s6010_s3, %s8724_s3   ;;  %s5837_s27 = sphi %s6008_s27, %s8723_s27   ;;  %s5833_s26 = sphi %s6006_s26, %s8717_s26   ;;  %s5829_s25 = sphi %s6004_s25, %s8716_s25   ;;  %s5825_s2 = sphi %s6002_s2, %s8715_s2  }
  0x2f   : > { %8610 = sst [smem:[#allocation37_spill]] %s5829_s25  ;;  %s68_s1 = sadd.s32 1, %s5857_s4 }
  0x30   : > { %8611 = sst [smem:[#allocation38_spill]] %s5833_s26  ;;  %s71_s24 = sadd.s32 1, %s5861_s30 }
  0x31   : > { %8612 = sst [smem:[#allocation39_spill]] %s5845_s28  ;;  %p69_p0 = scmp.ge.s32.totalorder %s68_s1, 4 }
  0x32   : > { %8613 = sst [smem:[#allocation40_spill]] %s5849_s29  ;;  %s237_s13 = sadd.s32 1, %s5845_s28 }
  0x33   : > { %8614 = sst [smem:[#allocation41_spill]] %s5853_s0  ;;  %p244_p1 = scmp.ne.s32.totalorder %s5845_s28, %s5841_s3 }
  0x34   : > { %8615 = sst [smem:[#allocation42_spill]] %s5857_s4  ;;  %p245_p2 = scmp.eq.s32.totalorder %s5865_s5, 0 }
  0x35   : > { %8616 = sst [smem:[#allocation43_spill]] %s5865_s5  ;;  %s8728_s1 = smov (%p69_p0, %s68_s1), 0 }
  0x36   : > { %8617 = sst [smem:[#allocation44_spill]] %s8728_s1  ;;  %s8730_s24 = smov (!%p69_p0, %s71_s24), %s5861_s30 }
  0x37   : > { %p6073_p3 = por %p245_p2, %p244_p1  ;;  %p250_p4 = scmp.ne.s32.totalorder %s5841_s3, %s5837_s27 }
  0x38   : > { %p73_p5 = scmp.ge.s32.totalorder %s8730_s24, 2  ;;  %p251_p6 = scmp.eq.s32.totalorder %s6058_s22, 0 }
  0x39   : > { %s390_s21 = ssub.s32 %s5857_s4, %s8728_s1  ;;  %s395_s19 = sadd.s32 1, %s5833_s26 }
  0x3a   : > { %s8732_s24 = smov (%p73_p5, %s8730_s24), 0  ;;  %p6088_p7 = por %p251_p6, %p250_p4 }
  0x3b   : > { %8619 = sst [smem:[#allocation45_spill]] %s8732_s24  ;;  %p405_p8 = scmp.ne.s32.totalorder %s5833_s26, %s5829_s25 }
  0x3c   : > { %s234_s15 = ssub.s32 %s5861_s30, %s8732_s24  ;;  %p406_p9 = scmp.eq.s32.totalorder %s6058_s22, 7 }
  0x3d   : > { %p235_p10 = scmp.eq.s32.totalorder %s234_s15, 0  ;;  %s392_s1 = sor.u32 %s390_s21, %s234_s15 }
  0x3e   : > { %p393_p11 = scmp.eq.s32.totalorder %s392_s1, 0  ;;  %p6097_p12 = por %p406_p9, %p405_p8 }
  0x3f   : > { %s6102_s17 = scalar_select %p235_p10, %s5845_s28, %s237_s13  }
  0x40   : > { %s8621_s4 = scalar_select %p6097_p12, 1, 0 }
  0x41   : > { %8623 = sst [smem:[#allocation47_spill]] %s6102_s17  ;;  %p411_p13 = scmp.ne.s32.totalorder %s5829_s25, %s5825_s2 }
  0x42   : > { %8622 = sst [smem:[#allocation46_spill]] %s8621_s4  ;;  %s8625_s16 = sadd.s32 4294967294, %s5865_s5  }
  0x43   : > { %s6105_s18 = scalar_select %p393_p11, %s5833_s26, %s395_s19  }
  0x44   : > { %p412_p0 = scmp.eq.s32.totalorder %s8625_s16, 7  ;;  %p6114_p2 = por %p406_p9, %p244_p1 }
  0x45   : > { %8624 = sst [smem:[#allocation48_spill]] %s6105_s18  ;;  %p5228_p8 = scmp.lt.s32.totalorder %s5865_s5, 8 }
  0x46   : > { %s8626_s24 = scalar_select %p6114_p2, 1, 0 }
  0x47   : > { %p6118_p5 = por %p412_p0, %p411_p13  ;;  %p6125_p6 = por %p412_p0, %p250_p4 }
  0x48   : > { %8627 = sst [smem:[#allocation49_spill]] %s8626_s24  ;;  %s6131_s19 = sand.u32 1, %s5845_s28  }
  0x49   : > { %s8628_s15 = scalar_select %p6118_p5, 1, 0 }
  0x4a   : > { %s8630_s13 = scalar_select %p6125_p6, 1, 0 }
  0x4b   : > { %8629 = sst [smem:[#allocation50_spill]] %s8628_s15  ;;  %s6134_s16 = sshll.u32 %s6131_s19, 8 }
  0x4c   : > { %8631 = sst [smem:[#allocation51_spill]] %s8630_s13  ;;  %s6137_s21 = sshll.u32 %s5861_s30, 12 }
  0x4d   : > { %p6141_p1 = pnand %p5228_p8, %p6073_p3  ;;  %s8538_s27 = sand.u32 1, %s5865_s5  }
  0x4e   : > { %s8633_s8 = sld [smem:[#allocation70_spill]]  ;;  %s701_s28 = scalar_lea.vmem [#allocation5], %s6134_s16 }
  0x4f   : > { %s709_s13 = sshll.u32 %s701_s28, 4  ;;  %s6155_s15 = scalar_lea.sflag [#allocation6], %s8538_s27  ;;  %s710_s13 = int_to_ptr.vmem [resolvable:$true] %s709_s13 }
  0x50   : > { %p6159_p10 = pneg %p6141_p1  ;;  %s5350_s2 = scalar_lea.vmem %s710_s13, 4096 }
  0x51   : > { %p5351_p3 = scmp.ne.s32.totalorder %s710_s13, %s5350_s2  ;;  %s5867_s17 = smov [#allocation5]  }
  0x52   : > { %s5355_s18 = sshll.u32 %s5867_s17, 4  ;;  %s5356_s18 = int_to_ptr.vmem [resolvable:$false] %s5355_s18 }
  0x53   : > { %p5353_p11 = pnand %p5351_p3, %p6159_p10  ;;  %s5357_s28 = scalar_lea.vmem %s5356_s18, 8192 }
  0x54   : > { %s708_s26 = scalar_lea.hbm %s8633_s8, %s6137_s21  ;;  %p5358_p0 = scmp.lt.s32.totalorder %s710_s13, %s5356_s18 }
  0x55   : > { %p5354_p13 = pneg %p5353_p11  ;;  %p5359_p8 = scmp.lt.s32.totalorder %s5357_s28, %s5350_s2 }
  0x57   : > { %p5360_p4 = por %p5359_p8, %p5358_p0 }
  0x59   : > { %p5361_p9 = pnand %p5360_p4, %p5354_p13 }
  0x5b   : > { %5364 = shalt.err (!%p5361_p9)
}
  0x5c   : > { %s8546_s27 = smov 128   ;;  %s5869_s8 = smov 8  }
  0x5d   : > { %5187 = dma.hbm_to_vmem [thread:$0]  (!%p6141_p1), %s708_s26, 4096, %s710_s13, %s6155_s15, %s8546_s27, %s8546_s27, %s5869_s8  }
  0x5e   : > { %p8635_p3 = scmp.lt.s32.totalorder %s5865_s5, 9  ;;  %p8636_p11 = scmp.ge.s32.totalorder %s5865_s5, 1 }
  0x5f   : > { %s8638_s10 = sld [smem:[#allocation72_spill]]  ;;  %s741_s4 = scalar_lea.vmem [#allocation8], %s6134_s16 }
  0x60   : > { %p6175_p0 = pnand %p8636_p11, %p8635_p3  ;;  %s749_s14 = sshll.u32 %s741_s4, 4  ;;  %s750_s14 = int_to_ptr.vmem [resolvable:$true] %s749_s14 }
  0x61   : > { %s8639_s24 = sand.u32 1, %s5865_s5   ;;  %s5378_s0 = scalar_lea.vmem %s750_s14, 4096 }
  0x62   : > { %s6186_s6 = scalar_lea.sflag [#allocation9], %s8639_s24  ;;  %p5379_p4 = scmp.ne.s32.totalorder %s750_s14, %s5378_s0 }
  0x63   : > { %s5870_s26 = smov [#allocation8]  }
  0x64   : > { %p5381_p9 = pnand %p5379_p4, %p6159_p10  ;;  %s5383_s13 = sshll.u32 %s5870_s26, 4  ;;  %s5384_s13 = int_to_ptr.vmem [resolvable:$false] %s5383_s13 }
  0x65   : > { %s748_s28 = scalar_lea.hbm %s8638_s10, %s6137_s21  ;;  %s5385_s27 = scalar_lea.vmem %s5384_s13, 8192 }
  0x66   : > { %p5382_p13 = pneg %p5381_p9  ;;  %p5386_p8 = scmp.lt.s32.totalorder %s750_s14, %s5384_s13 }
  0x67   : > { %p5387_p3 = scmp.lt.s32.totalorder %s5385_s27, %s5378_s0 }
  0x69   : > { %p5388_p11 = por %p5387_p3, %p5386_p8 }
  0x6b   : > { %p5389_p6 = pnand %p5388_p11, %p5382_p13 }
  0x6d   : > { %5392 = shalt.err (!%p5389_p6)
}
  0x6e   : > { %s8640_s4 = smov 128   ;;  %s8641_s7 = sld [smem:[#allocation69_spill]] }
  0x6f   : > { %5193 = dma.hbm_to_vmem [thread:$0]  (!%p6141_p1), %s748_s28, 4096, %s750_s14, %s6186_s6, %s8640_s4, %s8640_s4, %s5869_s8  }
  0x70   : > { %s679_s0 = scalar_lea.vmem [#allocation2], %s6134_s16  ;;  %s4781_s26 = sshll.u32 %s6131_s19, 3 }
  0x71   : > { %s687_s27 = sshll.u32 %s679_s0, 4  ;;  %s676_s13 = scalar_lea.sflag [#allocation3], %s6131_s19  ;;  %s688_s27 = int_to_ptr.vmem [resolvable:$true] %s687_s27 }
  0x72   : > { %s5406_s10 = scalar_lea.vmem %s688_s27, 4096  ;;  %s5871_s5 = smov [#allocation2]  }
  0x73   : > { %p5407_p6 = scmp.ne.s32.totalorder %s688_s27, %s5406_s10  ;;  %s5411_s29 = sshll.u32 %s5871_s5, 4  ;;  %s5412_s29 = int_to_ptr.vmem [resolvable:$false] %s5411_s29 }
  0x74   : > { %s686_s18 = scalar_lea.hbm %s8641_s7, %s6137_s21  ;;  %s5413_s25 = scalar_lea.vmem %s5412_s29, 8192 }
  0x75   : > { %p5409_p4 = pnand %p5407_p6, %p6159_p10  ;;  %p5414_p13 = scmp.lt.s32.totalorder %s688_s27, %s5412_s29 }
  0x76   : > { %p5415_p8 = scmp.lt.s32.totalorder %s5413_s25, %s5406_s10 }
  0x77   : > { %p5410_p9 = pneg %p5409_p4 }
  0x78   : > { %p5416_p3 = por %p5415_p8, %p5414_p13 }
  0x7a   : > { %p5417_p11 = pnand %p5416_p3, %p5410_p9 }
  0x7c   : > { %5420 = shalt.err (!%p5417_p11)
}
  0x7d   : > { %5184 = dma.hbm_to_vmem [thread:$0]  (!%p6141_p1), %s686_s18, 4096, %s688_s27, %s676_s13, %s8640_s4, %s8640_s4, %s5869_s8  }
  0x7e   : > { %s4782_s14 = sshll.u32 %s5861_s30, 7  ;;  %s8642_s9 = sld [smem:[#allocation71_spill]] }
  0x7f   : > { %s723_s10 = scalar_lea.vmem [#allocation7], %s4781_s26  ;;  %s5872_s17 = smov [#allocation7]  }
  0x80   : > { %s730_s25 = sshll.u32 %s723_s10, 4  ;;  %s5439_s0 = sshll.u32 %s5872_s17, 4  ;;  %s731_s25 = int_to_ptr.vmem [resolvable:$true] %s730_s25  ;;  %s5440_s0 = int_to_ptr.vmem [resolvable:$false] %s5439_s0 }
  0x81   : > { %s5434_s24 = scalar_lea.vmem %s731_s25, 128  ;;  %s5441_s7 = scalar_lea.vmem %s5440_s0, 256 }
  0x82   : > { %p5435_p6 = scmp.ne.s32.totalorder %s731_s25, %s5434_s24  ;;  %p5442_p13 = scmp.lt.s32.totalorder %s731_s25, %s5440_s0 }
  0x83   : > { %p5443_p8 = scmp.lt.s32.totalorder %s5441_s7, %s5434_s24 }
  0x84   : > { %s728_s29 = scalar_lea.hbm %s8642_s9, %s4782_s14  ;;  %p5437_p4 = pnand %p5435_p6, %p6159_p10 }
  0x85   : > { %p5444_p3 = por %p5443_p8, %p5442_p13 }
  0x86   : > { %p5438_p9 = pneg %p5437_p4 }
  0x88   : > { %p5445_p11 = pnand %p5444_p3, %p5438_p9 }
  0x8a   : > { %5448 = shalt.err (!%p5445_p11)
}
  0x8b   : > { %5190 = dma.hbm_to_vmem [thread:$0]  (!%p6141_p1), %s728_s29, 128, %s731_s25, %s6155_s15  }
  0x8c   : > { %s8643_s11 = sld [smem:[#allocation73_spill]]  ;;  %s763_s5 = scalar_lea.vmem [#allocation10], %s6134_s16 }
  0x8d   : > { %s771_s28 = sshll.u32 %s763_s5, 4  ;;  %s5873_s7 = smov [#allocation10]   ;;  %s772_s28 = int_to_ptr.vmem [resolvable:$true] %s771_s28 }
  0x8e   : > { %s5462_s10 = scalar_lea.vmem %s772_s28, 4096  ;;  %s5467_s24 = sshll.u32 %s5873_s7, 4  ;;  %s5468_s24 = int_to_ptr.vmem [resolvable:$false] %s5467_s24 }
  0x8f   : > { %p5463_p6 = scmp.ne.s32.totalorder %s772_s28, %s5462_s10  ;;  %s5469_s17 = scalar_lea.vmem %s5468_s24, 8192 }
  0x90   : > { %p5470_p13 = scmp.lt.s32.totalorder %s772_s28, %s5468_s24  ;;  %p5471_p8 = scmp.lt.s32.totalorder %s5469_s17, %s5462_s10 }
  0x91   : > { %p5465_p4 = pnand %p5463_p6, %p6159_p10 }
  0x92   : > { %s770_s13 = scalar_lea.hbm %s8643_s11, %s6137_s21  ;;  %p5472_p3 = por %p5471_p8, %p5470_p13 }
  0x93   : > { %p5466_p9 = pneg %p5465_p4 }
  0x95   : > { %p5473_p11 = pnand %p5472_p3, %p5466_p9 }
  0x97   : > { %5476 = shalt.err (!%p5473_p11)
}
  0x98   : > { %5196 = dma.hbm_to_vmem [thread:$0]  (!%p6141_p1), %s770_s13, 4096, %s772_s28, %s6186_s6, %s8640_s4, %s8640_s4, %s5869_s8  }
  0x99   : > { %s8644_s12 = sld [smem:[#allocation74_spill]]  ;;  %s785_s29 = scalar_lea.vmem [#allocation11], %s4781_s26 }
  0x9a   : > { %s792_s25 = sshll.u32 %s785_s29, 4  ;;  %s782_s0 = scalar_lea.sflag [#allocation12], %s6131_s19  ;;  %s793_s25 = int_to_ptr.vmem [resolvable:$true] %s792_s25 }
  0x9b   : > { %s5490_s18 = scalar_lea.vmem %s793_s25, 128  ;;  %s5874_s27 = smov [#allocation11]  }
  0x9c   : > { %p5491_p6 = scmp.ne.s32.totalorder %s793_s25, %s5490_s18  ;;  %s5495_s5 = sshll.u32 %s5874_s27, 4  ;;  %s5496_s5 = int_to_ptr.vmem [resolvable:$false] %s5495_s5 }
  0x9d   : > { %s5497_s10 = scalar_lea.vmem %s5496_s5, 256  ;;  %p5498_p13 = scmp.lt.s32.totalorder %s793_s25, %s5496_s5 }
  0x9e   : > { %p5493_p4 = pnand %p5491_p6, %p6159_p10  ;;  %p5499_p8 = scmp.lt.s32.totalorder %s5497_s10, %s5490_s18 }
  0x9f   : > { %s790_s21 = scalar_lea.hbm %s8644_s12, %s4782_s14 }
  0xa0   : > { %p5494_p9 = pneg %p5493_p4  ;;  %p5500_p3 = por %p5499_p8, %p5498_p13 }
  0xa2   : > { %p5501_p11 = pnand %p5500_p3, %p5494_p9 }
  0xa4   : > { %5504 = shalt.err (!%p5501_p11)
}
  0xa5   : > { %5199 = dma.hbm_to_vmem [thread:$0]  (!%p6141_p1), %s790_s21, 128, %s793_s25, %s782_s0  }
  0xa6   : > { %801 = sbr.rel (%p6175_p0) target bundleno = 1343 (0x53f), region = 72 }
  0xab   : > { %s803_s6 = sand.u32 1, %s5841_s3  }
  0xac   : > { %s6251_s8 = sshll.u32 %s803_s6, 8  ;;  %s804_s19 = scalar_lea.sflag [#allocation3], %s803_s6 }
  0xad   : > { %s6254_s23 = scalar_lea.vmem [#allocation2], %s6251_s8 }
  0xae   : > { %5784 = dma.done.wait (%p6088_p7), %s804_s19, 4096  }
  0xaf   : > { %5786 = vsyncadd (%p6088_p7), %s804_s19, 4294963200  ;;  %s6261_s1 = sand.u32 1, %s6058_s22   ;;  %s6265_s4 = scalar_lea.vmem [#allocation5], %s6251_s8 }
  0xb0   : > { %s813_s2 = scalar_lea.sflag [#allocation6], %s6261_s1 }
  0xb1   : > { %5788 = dma.done.wait (%p6088_p7), %s813_s2, 4224  }
  0xb2   : > { %5790 = vsyncadd (%p6088_p7), %s813_s2, 4294963072  ;;  %s6271_s26 = sshll.u32 %s803_s6, 3  ;;  %s831_s13 = scalar_lea.sflag [#allocation9], %s6261_s1 }
  0xb3   : > { %s6276_s28 = scalar_lea.vmem [#allocation8], %s6251_s8 }
  0xb4   : > { %5792 = dma.done.wait (%p6088_p7), %s831_s13, 8192  }
  0xb5   : > { %5794 = vsyncadd (%p6088_p7), %s831_s13, 4294959104  ;;  %s6283_s22 = scalar_lea.vmem [#allocation10], %s6251_s8  ;;  %s849_s7 = scalar_lea.sflag [#allocation12], %s803_s6 }
  0xb6   : > { %5796 = dma.done.wait (%p6088_p7), %s849_s7, 128  }
  0xb7   : > { %5798 = vsyncadd (%p6088_p7), %s849_s7, 4294967168  ;;  %s8645_s17 = sld [smem:[#allocation37_spill]]  ;;  %s6309_s24 = scalar_lea.vmem [#allocation14], %s6271_s26 }
  0xb8   : > { %s8646_s15 = sld [smem:[#allocation40_spill]]  ;;  %s6313_s9 = scalar_lea.vmem [#allocation17], %s6251_s8 }
  0xb9   : > { %s8647_s16 = sld [smem:[#allocation41_spill]]  ;;  %s6316_s11 = scalar_lea.vmem [#allocation19], %s6251_s8 }
  0xba   : > { %s8648_s6 = sld [smem:[#allocation63_spill]] }
  0xbb   : > { %s8649_s7 = sld [smem:[#allocation62_spill]] }
  0xbd   : > { %s8554_s21 = sand.u32 1, %s8645_s17  }
  0xbe   : > { %s6293_s29 = sshll.u32 %s8554_s21, 3  ;;  %p988_p1 = scmp.lt.s32.totalorder %s8646_s15, 3 }
  0xbf   : > { %p990_p10 = scmp.lt.s32.totalorder %s8647_s16, 1  ;;  %s8572_s14 = scalar_lea.vmem [#allocation16], %s6293_s29 }
  0xc0   : > { %s989_s20 = scalar_select %p988_p1, %s8646_s15, 3 }
  0xc1   : > { %s8734_s16 = smov (!%p990_p10, %s8647_s16), 1  ;;  %p4812_p7 = scmp.ne.s32.totalorder %s8646_s15, 0 }
  0xc2   : > { %s4809_s25 = sshll.u32 %s989_s20, 1  ;;  %s4811_s18 = sshll.u32 %s8734_s16, 3 }
  0xc3   : > { %s993_s0 = sadd.s32 %s4809_s25, %s8734_s16  ;;  %s999_s19 = scalar_lea.vmem %s8648_s6, %s4811_s18 }
  0xc4   : > { %s4810_s27 = sshll.u32 %s993_s0, 3  ;;  %s6319_s20 = scalar_lea.vmem [#allocation20], %s6271_s26 }
  0xc5   : > { %s6305_s17 = scalar_lea.vmem %s8649_s7, %s4810_s27  ;;  %s6322_s16 = scalar_lea.vmem [#allocation22], %s6251_s8 }
  0xc6   : > { %s6325_s25 = scalar_lea.vmem [#allocation23], %s6251_s8  ;;  %s6328_s0 = scalar_lea.vmem [#allocation25], %s6271_s26 }
  0xc7   : > { %1011 = sbr.rel (%p4812_p7) target bundleno = 271 (0x10f), region = 100  ;;  %s8650_s8 = scalar_lea.vmem (!%p4812_p7), [#allocation7], %s6271_s26 }
  0xcc   : > { %v1012_v0 = vld [vmem:[%s999_s19] sm:$0xff]  ;;  %vm1013_vm0 = vcmask 261120   ;;  %v1016_v2 = vld [vmem:[%s6254_s23 + $0x8] sm:$0xff]  ;;  %v1017_v3 = vld [vmem:[%s6254_s23 + $0x10] sm:$0xff] }
  0xcd   : > { %v1015_v1 = vld [vmem:[%s6254_s23] sm:$0xff]  ;;  %1014 = vst.msk [vmem:[%s6309_s24] sm:$0xff] %vm1013_vm0, %v1012_v0  ;;  %1048 = vst.msk [vmem:[%s6313_s9 + $0x8] sm:$0xff] %vm1013_vm0, %v1016_v2  ;;  %v1018_v4 = vld [vmem:[%s6254_s23 + $0x18] sm:$0xff] }
  0xce   : > { %1047 = vst.msk [vmem:[%s6313_s9] sm:$0xff] %vm1013_vm0, %v1015_v1  ;;  %v1019_v5 = vld [vmem:[%s6254_s23 + $0x20] sm:$0xff]  ;;  %1049 = vst.msk [vmem:[%s6313_s9 + $0x10] sm:$0xff] %vm1013_vm0, %v1017_v3  ;;  %v1020_v6 = vld [vmem:[%s6254_s23 + $0x28] sm:$0xff] }
  0xcf   : > { %1050 = vst.msk [vmem:[%s6313_s9 + $0x18] sm:$0xff] %vm1013_vm0, %v1018_v4  ;;  %1051 = vst.msk [vmem:[%s6313_s9 + $0x20] sm:$0xff] %vm1013_vm0, %v1019_v5  ;;  %v1021_v7 = vld [vmem:[%s6254_s23 + $0x30] sm:$0xff]  ;;  %v1022_v8 = vld [vmem:[%s6254_s23 + $0x38] sm:$0xff] }
  0xd0   : > { %1052 = vst.msk [vmem:[%s6313_s9 + $0x28] sm:$0xff] %vm1013_vm0, %v1020_v6  ;;  %1053 = vst.msk [vmem:[%s6313_s9 + $0x30] sm:$0xff] %vm1013_vm0, %v1021_v7  ;;  %v1023_v9 = vld [vmem:[%s6254_s23 + $0x40] sm:$0xff]  ;;  %v1024_v10 = vld [vmem:[%s6254_s23 + $0x48] sm:$0xff] }
  0xd1   : > { %1054 = vst.msk [vmem:[%s6313_s9 + $0x38] sm:$0xff] %vm1013_vm0, %v1022_v8  ;;  %v1025_v11 = vld [vmem:[%s6254_s23 + $0x50] sm:$0xff]  ;;  %1055 = vst.msk [vmem:[%s6313_s9 + $0x40] sm:$0xff] %vm1013_vm0, %v1023_v9  ;;  %v1026_v12 = vld [vmem:[%s6254_s23 + $0x58] sm:$0xff] }
  0xd2   : > { %1056 = vst.msk [vmem:[%s6313_s9 + $0x48] sm:$0xff] %vm1013_vm0, %v1024_v10  ;;  %1057 = vst.msk [vmem:[%s6313_s9 + $0x50] sm:$0xff] %vm1013_vm0, %v1025_v11  ;;  %v1027_v13 = vld [vmem:[%s6254_s23 + $0x60] sm:$0xff]  ;;  %v1028_v14 = vld [vmem:[%s6254_s23 + $0x68] sm:$0xff] }
  0xd3   : > { %1058 = vst.msk [vmem:[%s6313_s9 + $0x58] sm:$0xff] %vm1013_vm0, %v1026_v12  ;;  %1059 = vst.msk [vmem:[%s6313_s9 + $0x60] sm:$0xff] %vm1013_vm0, %v1027_v13  ;;  %v1029_v15 = vld [vmem:[%s6254_s23 + $0x70] sm:$0xff]  ;;  %v1030_v16 = vld [vmem:[%s6254_s23 + $0x78] sm:$0xff] }
  0xd4   : > { %1060 = vst.msk [vmem:[%s6313_s9 + $0x68] sm:$0xff] %vm1013_vm0, %v1028_v14  ;;  %v1031_v17 = vld [vmem:[%s6254_s23 + $0x80] sm:$0xff]  ;;  %1061 = vst.msk [vmem:[%s6313_s9 + $0x70] sm:$0xff] %vm1013_vm0, %v1029_v15  ;;  %v1032_v18 = vld [vmem:[%s6254_s23 + $0x88] sm:$0xff] }
  0xd5   : > { %1062 = vst.msk [vmem:[%s6313_s9 + $0x78] sm:$0xff] %vm1013_vm0, %v1030_v16  ;;  %1063 = vst.msk [vmem:[%s6313_s9 + $0x80] sm:$0xff] %vm1013_vm0, %v1031_v17  ;;  %v1033_v19 = vld [vmem:[%s6254_s23 + $0x90] sm:$0xff]  ;;  %v1034_v20 = vld [vmem:[%s6254_s23 + $0x98] sm:$0xff] }
  0xd6   : > { %1064 = vst.msk [vmem:[%s6313_s9 + $0x88] sm:$0xff] %vm1013_vm0, %v1032_v18  ;;  %1065 = vst.msk [vmem:[%s6313_s9 + $0x90] sm:$0xff] %vm1013_vm0, %v1033_v19  ;;  %v1035_v21 = vld [vmem:[%s6254_s23 + $0xa0] sm:$0xff]  ;;  %v1036_v22 = vld [vmem:[%s6254_s23 + $0xa8] sm:$0xff] }
  0xd7   : > { %1066 = vst.msk [vmem:[%s6313_s9 + $0x98] sm:$0xff] %vm1013_vm0, %v1034_v20  ;;  %v1037_v23 = vld [vmem:[%s6254_s23 + $0xb0] sm:$0xff]  ;;  %1067 = vst.msk [vmem:[%s6313_s9 + $0xa0] sm:$0xff] %vm1013_vm0, %v1035_v21  ;;  %v1038_v24 = vld [vmem:[%s6254_s23 + $0xb8] sm:$0xff] }
  0xd8   : > { %1068 = vst.msk [vmem:[%s6313_s9 + $0xa8] sm:$0xff] %vm1013_vm0, %v1036_v22  ;;  %1069 = vst.msk [vmem:[%s6313_s9 + $0xb0] sm:$0xff] %vm1013_vm0, %v1037_v23  ;;  %v1039_v25 = vld [vmem:[%s6254_s23 + $0xc0] sm:$0xff]  ;;  %v1040_v26 = vld [vmem:[%s6254_s23 + $0xc8] sm:$0xff] }
  0xd9   : > { %1070 = vst.msk [vmem:[%s6313_s9 + $0xb8] sm:$0xff] %vm1013_vm0, %v1038_v24  ;;  %1071 = vst.msk [vmem:[%s6313_s9 + $0xc0] sm:$0xff] %vm1013_vm0, %v1039_v25  ;;  %v1041_v27 = vld [vmem:[%s6254_s23 + $0xd0] sm:$0xff]  ;;  %v1042_v28 = vld [vmem:[%s6254_s23 + $0xd8] sm:$0xff] }
  0xda   : > { %1072 = vst.msk [vmem:[%s6313_s9 + $0xc8] sm:$0xff] %vm1013_vm0, %v1040_v26  ;;  %v1043_v29 = vld [vmem:[%s6254_s23 + $0xe0] sm:$0xff]  ;;  %1073 = vst.msk [vmem:[%s6313_s9 + $0xd0] sm:$0xff] %vm1013_vm0, %v1041_v27  ;;  %v1044_v30 = vld [vmem:[%s6254_s23 + $0xe8] sm:$0xff] }
  0xdb   : > { %1074 = vst.msk [vmem:[%s6313_s9 + $0xd8] sm:$0xff] %vm1013_vm0, %v1042_v28  ;;  %1075 = vst.msk [vmem:[%s6313_s9 + $0xe0] sm:$0xff] %vm1013_vm0, %v1043_v29  ;;  %v1045_v31 = vld [vmem:[%s6254_s23 + $0xf0] sm:$0xff]  ;;  %v1046_v32 = vld [vmem:[%s6254_s23 + $0xf8] sm:$0xff]  ;;  %s8651_s23 = scalar_lea.vmem [#allocation11], %s6271_s26 }
  0xdc   : > { %1076 = vst.msk [vmem:[%s6313_s9 + $0xe8] sm:$0xff] %vm1013_vm0, %v1044_v30  ;;  %1077 = vst.msk [vmem:[%s6313_s9 + $0xf0] sm:$0xff] %vm1013_vm0, %v1045_v31  ;;  %v1079_v33 = vld [vmem:[%s6265_s4] sm:$0xff]  ;;  %v1080_v34 = vld [vmem:[%s6265_s4 + $0x8] sm:$0xff] }
  0xdd   : > { %1078 = vst.msk [vmem:[%s6313_s9 + $0xf8] sm:$0xff] %vm1013_vm0, %v1046_v32  ;;  %v1081_v35 = vld [vmem:[%s6265_s4 + $0x10] sm:$0xff]  ;;  %1111 = vst.msk [vmem:[%s6316_s11] sm:$0xff] %vm1013_vm0, %v1079_v33  ;;  %v1082_v36 = vld [vmem:[%s6265_s4 + $0x18] sm:$0xff] }
  0xde   : > { %1112 = vst.msk [vmem:[%s6316_s11 + $0x8] sm:$0xff] %vm1013_vm0, %v1080_v34  ;;  %1113 = vst.msk [vmem:[%s6316_s11 + $0x10] sm:$0xff] %vm1013_vm0, %v1081_v35  ;;  %v1083_v37 = vld [vmem:[%s6265_s4 + $0x20] sm:$0xff]  ;;  %v1084_v38 = vld [vmem:[%s6265_s4 + $0x28] sm:$0xff] }
  0xdf   : > { %1114 = vst.msk [vmem:[%s6316_s11 + $0x18] sm:$0xff] %vm1013_vm0, %v1082_v36  ;;  %1115 = vst.msk [vmem:[%s6316_s11 + $0x20] sm:$0xff] %vm1013_vm0, %v1083_v37  ;;  %v1085_v39 = vld [vmem:[%s6265_s4 + $0x30] sm:$0xff]  ;;  %v1086_v40 = vld [vmem:[%s6265_s4 + $0x38] sm:$0xff] }
  0xe0   : > { %1116 = vst.msk [vmem:[%s6316_s11 + $0x28] sm:$0xff] %vm1013_vm0, %v1084_v38  ;;  %v1087_v41 = vld [vmem:[%s6265_s4 + $0x40] sm:$0xff]  ;;  %1117 = vst.msk [vmem:[%s6316_s11 + $0x30] sm:$0xff] %vm1013_vm0, %v1085_v39  ;;  %v1088_v42 = vld [vmem:[%s6265_s4 + $0x48] sm:$0xff] }
  0xe1   : > { %1118 = vst.msk [vmem:[%s6316_s11 + $0x38] sm:$0xff] %vm1013_vm0, %v1086_v40  ;;  %1119 = vst.msk [vmem:[%s6316_s11 + $0x40] sm:$0xff] %vm1013_vm0, %v1087_v41  ;;  %v1089_v43 = vld [vmem:[%s6265_s4 + $0x50] sm:$0xff]  ;;  %v1090_v44 = vld [vmem:[%s6265_s4 + $0x58] sm:$0xff] }
  0xe2   : > { %1120 = vst.msk [vmem:[%s6316_s11 + $0x48] sm:$0xff] %vm1013_vm0, %v1088_v42  ;;  %1121 = vst.msk [vmem:[%s6316_s11 + $0x50] sm:$0xff] %vm1013_vm0, %v1089_v43  ;;  %v1091_v45 = vld [vmem:[%s6265_s4 + $0x60] sm:$0xff]  ;;  %v1092_v46 = vld [vmem:[%s6265_s4 + $0x68] sm:$0xff] }
  0xe3   : > { %1122 = vst.msk [vmem:[%s6316_s11 + $0x58] sm:$0xff] %vm1013_vm0, %v1090_v44  ;;  %v1093_v47 = vld [vmem:[%s6265_s4 + $0x70] sm:$0xff]  ;;  %1123 = vst.msk [vmem:[%s6316_s11 + $0x60] sm:$0xff] %vm1013_vm0, %v1091_v45  ;;  %v1094_v48 = vld [vmem:[%s6265_s4 + $0x78] sm:$0xff] }
  0xe4   : > { %1124 = vst.msk [vmem:[%s6316_s11 + $0x68] sm:$0xff] %vm1013_vm0, %v1092_v46  ;;  %1125 = vst.msk [vmem:[%s6316_s11 + $0x70] sm:$0xff] %vm1013_vm0, %v1093_v47  ;;  %v1095_v49 = vld [vmem:[%s6265_s4 + $0x80] sm:$0xff]  ;;  %v1096_v50 = vld [vmem:[%s6265_s4 + $0x88] sm:$0xff] }
  0xe5   : > { %1126 = vst.msk [vmem:[%s6316_s11 + $0x78] sm:$0xff] %vm1013_vm0, %v1094_v48  ;;  %1127 = vst.msk [vmem:[%s6316_s11 + $0x80] sm:$0xff] %vm1013_vm0, %v1095_v49  ;;  %v1097_v51 = vld [vmem:[%s6265_s4 + $0x90] sm:$0xff]  ;;  %v1098_v52 = vld [vmem:[%s6265_s4 + $0x98] sm:$0xff] }
  0xe6   : > { %1128 = vst.msk [vmem:[%s6316_s11 + $0x88] sm:$0xff] %vm1013_vm0, %v1096_v50  ;;  %v1099_v53 = vld [vmem:[%s6265_s4 + $0xa0] sm:$0xff]  ;;  %1129 = vst.msk [vmem:[%s6316_s11 + $0x90] sm:$0xff] %vm1013_vm0, %v1097_v51  ;;  %v1100_v54 = vld [vmem:[%s6265_s4 + $0xa8] sm:$0xff] }
  0xe7   : > { %1130 = vst.msk [vmem:[%s6316_s11 + $0x98] sm:$0xff] %vm1013_vm0, %v1098_v52  ;;  %1131 = vst.msk [vmem:[%s6316_s11 + $0xa0] sm:$0xff] %vm1013_vm0, %v1099_v53  ;;  %v1101_v55 = vld [vmem:[%s6265_s4 + $0xb0] sm:$0xff]  ;;  %v1102_v56 = vld [vmem:[%s6265_s4 + $0xb8] sm:$0xff] }
  0xe8   : > { %1132 = vst.msk [vmem:[%s6316_s11 + $0xa8] sm:$0xff] %vm1013_vm0, %v1100_v54  ;;  %1133 = vst.msk [vmem:[%s6316_s11 + $0xb0] sm:$0xff] %vm1013_vm0, %v1101_v55  ;;  %v1103_v57 = vld [vmem:[%s6265_s4 + $0xc0] sm:$0xff]  ;;  %v1104_v58 = vld [vmem:[%s6265_s4 + $0xc8] sm:$0xff] }
  0xe9   : > { %1134 = vst.msk [vmem:[%s6316_s11 + $0xb8] sm:$0xff] %vm1013_vm0, %v1102_v56  ;;  %v1105_v59 = vld [vmem:[%s6265_s4 + $0xd0] sm:$0xff]  ;;  %1135 = vst.msk [vmem:[%s6316_s11 + $0xc0] sm:$0xff] %vm1013_vm0, %v1103_v57  ;;  %v1106_v60 = vld [vmem:[%s6265_s4 + $0xd8] sm:$0xff] }
  0xea   : > { %1136 = vst.msk [vmem:[%s6316_s11 + $0xc8] sm:$0xff] %vm1013_vm0, %v1104_v58  ;;  %1137 = vst.msk [vmem:[%s6316_s11 + $0xd0] sm:$0xff] %vm1013_vm0, %v1105_v59  ;;  %v1107_v61 = vld [vmem:[%s6265_s4 + $0xe0] sm:$0xff]  ;;  %v1108_v62 = vld [vmem:[%s6265_s4 + $0xe8] sm:$0xff] }
  0xeb   : > { %1138 = vst.msk [vmem:[%s6316_s11 + $0xd8] sm:$0xff] %vm1013_vm0, %v1106_v60  ;;  %1139 = vst.msk [vmem:[%s6316_s11 + $0xe0] sm:$0xff] %vm1013_vm0, %v1107_v61  ;;  %v1109_v63 = vld [vmem:[%s6265_s4 + $0xf0] sm:$0xff]  ;;  %v1110_v0 = vld [vmem:[%s6265_s4 + $0xf8] sm:$0xff] }
  0xec   : > { %1140 = vst.msk [vmem:[%s6316_s11 + $0xe8] sm:$0xff] %vm1013_vm0, %v1108_v62  ;;  %v1143_v1 = vld [vmem:[%s8650_s8] sm:$0xff]  ;;  %1141 = vst.msk [vmem:[%s6316_s11 + $0xf0] sm:$0xff] %vm1013_vm0, %v1109_v63  ;;  %v1145_v2 = vld [vmem:[%s6276_s28] sm:$0xff] }
  0xed   : > { %1142 = vst.msk [vmem:[%s6316_s11 + $0xf8] sm:$0xff] %vm1013_vm0, %v1110_v0  ;;  %1144 = vst.msk [vmem:[%s6319_s20] sm:$0xff] %vm1013_vm0, %v1143_v1  ;;  %v1146_v3 = vld [vmem:[%s6276_s28 + $0x8] sm:$0xff]  ;;  %v1147_v4 = vld [vmem:[%s6276_s28 + $0x10] sm:$0xff] }
  0xee   : > { %1177 = vst.msk [vmem:[%s6322_s16] sm:$0xff] %vm1013_vm0, %v1145_v2  ;;  %1178 = vst.msk [vmem:[%s6322_s16 + $0x8] sm:$0xff] %vm1013_vm0, %v1146_v3  ;;  %v1148_v5 = vld [vmem:[%s6276_s28 + $0x18] sm:$0xff]  ;;  %v1149_v6 = vld [vmem:[%s6276_s28 + $0x20] sm:$0xff] }
  0xef   : > { %1179 = vst.msk [vmem:[%s6322_s16 + $0x10] sm:$0xff] %vm1013_vm0, %v1147_v4  ;;  %v1150_v7 = vld [vmem:[%s6276_s28 + $0x28] sm:$0xff]  ;;  %1180 = vst.msk [vmem:[%s6322_s16 + $0x18] sm:$0xff] %vm1013_vm0, %v1148_v5  ;;  %v1151_v8 = vld [vmem:[%s6276_s28 + $0x30] sm:$0xff] }
  0xf0   : > { %1181 = vst.msk [vmem:[%s6322_s16 + $0x20] sm:$0xff] %vm1013_vm0, %v1149_v6  ;;  %1182 = vst.msk [vmem:[%s6322_s16 + $0x28] sm:$0xff] %vm1013_vm0, %v1150_v7  ;;  %v1152_v9 = vld [vmem:[%s6276_s28 + $0x38] sm:$0xff]  ;;  %v1153_v10 = vld [vmem:[%s6276_s28 + $0x40] sm:$0xff] }
  0xf1   : > { %1183 = vst.msk [vmem:[%s6322_s16 + $0x30] sm:$0xff] %vm1013_vm0, %v1151_v8  ;;  %1184 = vst.msk [vmem:[%s6322_s16 + $0x38] sm:$0xff] %vm1013_vm0, %v1152_v9  ;;  %v1154_v11 = vld [vmem:[%s6276_s28 + $0x48] sm:$0xff]  ;;  %v1155_v12 = vld [vmem:[%s6276_s28 + $0x50] sm:$0xff] }
  0xf2   : > { %1185 = vst.msk [vmem:[%s6322_s16 + $0x40] sm:$0xff] %vm1013_vm0, %v1153_v10  ;;  %v1156_v13 = vld [vmem:[%s6276_s28 + $0x58] sm:$0xff]  ;;  %1186 = vst.msk [vmem:[%s6322_s16 + $0x48] sm:$0xff] %vm1013_vm0, %v1154_v11  ;;  %v1157_v14 = vld [vmem:[%s6276_s28 + $0x60] sm:$0xff] }
  0xf3   : > { %1187 = vst.msk [vmem:[%s6322_s16 + $0x50] sm:$0xff] %vm1013_vm0, %v1155_v12  ;;  %1188 = vst.msk [vmem:[%s6322_s16 + $0x58] sm:$0xff] %vm1013_vm0, %v1156_v13  ;;  %v1158_v15 = vld [vmem:[%s6276_s28 + $0x68] sm:$0xff]  ;;  %v1159_v16 = vld [vmem:[%s6276_s28 + $0x70] sm:$0xff] }
  0xf4   : > { %1189 = vst.msk [vmem:[%s6322_s16 + $0x60] sm:$0xff] %vm1013_vm0, %v1157_v14  ;;  %1190 = vst.msk [vmem:[%s6322_s16 + $0x68] sm:$0xff] %vm1013_vm0, %v1158_v15  ;;  %v1160_v17 = vld [vmem:[%s6276_s28 + $0x78] sm:$0xff]  ;;  %v1161_v18 = vld [vmem:[%s6276_s28 + $0x80] sm:$0xff] }
  0xf5   : > { %1191 = vst.msk [vmem:[%s6322_s16 + $0x70] sm:$0xff] %vm1013_vm0, %v1159_v16  ;;  %v1162_v19 = vld [vmem:[%s6276_s28 + $0x88] sm:$0xff]  ;;  %1192 = vst.msk [vmem:[%s6322_s16 + $0x78] sm:$0xff] %vm1013_vm0, %v1160_v17  ;;  %v1163_v20 = vld [vmem:[%s6276_s28 + $0x90] sm:$0xff] }
  0xf6   : > { %1193 = vst.msk [vmem:[%s6322_s16 + $0x80] sm:$0xff] %vm1013_vm0, %v1161_v18  ;;  %1194 = vst.msk [vmem:[%s6322_s16 + $0x88] sm:$0xff] %vm1013_vm0, %v1162_v19  ;;  %v1164_v21 = vld [vmem:[%s6276_s28 + $0x98] sm:$0xff]  ;;  %v1165_v22 = vld [vmem:[%s6276_s28 + $0xa0] sm:$0xff] }
  0xf7   : > { %1195 = vst.msk [vmem:[%s6322_s16 + $0x90] sm:$0xff] %vm1013_vm0, %v1163_v20  ;;  %1196 = vst.msk [vmem:[%s6322_s16 + $0x98] sm:$0xff] %vm1013_vm0, %v1164_v21  ;;  %v1166_v23 = vld [vmem:[%s6276_s28 + $0xa8] sm:$0xff]  ;;  %v1167_v24 = vld [vmem:[%s6276_s28 + $0xb0] sm:$0xff] }
  0xf8   : > { %1197 = vst.msk [vmem:[%s6322_s16 + $0xa0] sm:$0xff] %vm1013_vm0, %v1165_v22  ;;  %v1168_v25 = vld [vmem:[%s6276_s28 + $0xb8] sm:$0xff]  ;;  %1198 = vst.msk [vmem:[%s6322_s16 + $0xa8] sm:$0xff] %vm1013_vm0, %v1166_v23  ;;  %v1169_v26 = vld [vmem:[%s6276_s28 + $0xc0] sm:$0xff] }
  0xf9   : > { %1199 = vst.msk [vmem:[%s6322_s16 + $0xb0] sm:$0xff] %vm1013_vm0, %v1167_v24  ;;  %1200 = vst.msk [vmem:[%s6322_s16 + $0xb8] sm:$0xff] %vm1013_vm0, %v1168_v25  ;;  %v1170_v27 = vld [vmem:[%s6276_s28 + $0xc8] sm:$0xff]  ;;  %v1171_v28 = vld [vmem:[%s6276_s28 + $0xd0] sm:$0xff] }
  0xfa   : > { %1201 = vst.msk [vmem:[%s6322_s16 + $0xc0] sm:$0xff] %vm1013_vm0, %v1169_v26  ;;  %1202 = vst.msk [vmem:[%s6322_s16 + $0xc8] sm:$0xff] %vm1013_vm0, %v1170_v27  ;;  %v1172_v29 = vld [vmem:[%s6276_s28 + $0xd8] sm:$0xff]  ;;  %v1173_v30 = vld [vmem:[%s6276_s28 + $0xe0] sm:$0xff] }
  0xfb   : > { %1203 = vst.msk [vmem:[%s6322_s16 + $0xd0] sm:$0xff] %vm1013_vm0, %v1171_v28  ;;  %v1174_v31 = vld [vmem:[%s6276_s28 + $0xe8] sm:$0xff]  ;;  %1204 = vst.msk [vmem:[%s6322_s16 + $0xd8] sm:$0xff] %vm1013_vm0, %v1172_v29  ;;  %v1175_v32 = vld [vmem:[%s6276_s28 + $0xf0] sm:$0xff] }
  0xfc   : > { %1205 = vst.msk [vmem:[%s6322_s16 + $0xe0] sm:$0xff] %vm1013_vm0, %v1173_v30  ;;  %1206 = vst.msk [vmem:[%s6322_s16 + $0xe8] sm:$0xff] %vm1013_vm0, %v1174_v31  ;;  %v1176_v33 = vld [vmem:[%s6276_s28 + $0xf8] sm:$0xff]  ;;  %v1209_v34 = vld [vmem:[%s6283_s22] sm:$0xff] }
  0xfd   : > { %1207 = vst.msk [vmem:[%s6322_s16 + $0xf0] sm:$0xff] %vm1013_vm0, %v1175_v32  ;;  %1208 = vst.msk [vmem:[%s6322_s16 + $0xf8] sm:$0xff] %vm1013_vm0, %v1176_v33  ;;  %v1210_v35 = vld [vmem:[%s6283_s22 + $0x8] sm:$0xff]  ;;  %v1211_v36 = vld [vmem:[%s6283_s22 + $0x10] sm:$0xff] }
  0xfe   : > { %1241 = vst.msk [vmem:[%s6325_s25] sm:$0xff] %vm1013_vm0, %v1209_v34  ;;  %v1212_v37 = vld [vmem:[%s6283_s22 + $0x18] sm:$0xff]  ;;  %1242 = vst.msk [vmem:[%s6325_s25 + $0x8] sm:$0xff] %vm1013_vm0, %v1210_v35  ;;  %v1213_v38 = vld [vmem:[%s6283_s22 + $0x20] sm:$0xff] }
  0xff   : > { %1243 = vst.msk [vmem:[%s6325_s25 + $0x10] sm:$0xff] %vm1013_vm0, %v1211_v36  ;;  %1244 = vst.msk [vmem:[%s6325_s25 + $0x18] sm:$0xff] %vm1013_vm0, %v1212_v37  ;;  %v1214_v39 = vld [vmem:[%s6283_s22 + $0x28] sm:$0xff]  ;;  %v1215_v40 = vld [vmem:[%s6283_s22 + $0x30] sm:$0xff] }
 0x100   : > { %1245 = vst.msk [vmem:[%s6325_s25 + $0x20] sm:$0xff] %vm1013_vm0, %v1213_v38  ;;  %1246 = vst.msk [vmem:[%s6325_s25 + $0x28] sm:$0xff] %vm1013_vm0, %v1214_v39  ;;  %v1216_v41 = vld [vmem:[%s6283_s22 + $0x38] sm:$0xff]  ;;  %v1217_v42 = vld [vmem:[%s6283_s22 + $0x40] sm:$0xff] }
 0x101   : > { %1247 = vst.msk [vmem:[%s6325_s25 + $0x30] sm:$0xff] %vm1013_vm0, %v1215_v40  ;;  %v1218_v43 = vld [vmem:[%s6283_s22 + $0x48] sm:$0xff]  ;;  %1248 = vst.msk [vmem:[%s6325_s25 + $0x38] sm:$0xff] %vm1013_vm0, %v1216_v41  ;;  %v1219_v44 = vld [vmem:[%s6283_s22 + $0x50] sm:$0xff] }
 0x102   : > { %1249 = vst.msk [vmem:[%s6325_s25 + $0x40] sm:$0xff] %vm1013_vm0, %v1217_v42  ;;  %1250 = vst.msk [vmem:[%s6325_s25 + $0x48] sm:$0xff] %vm1013_vm0, %v1218_v43  ;;  %v1220_v45 = vld [vmem:[%s6283_s22 + $0x58] sm:$0xff]  ;;  %v1221_v46 = vld [vmem:[%s6283_s22 + $0x60] sm:$0xff] }
 0x103   : > { %1251 = vst.msk [vmem:[%s6325_s25 + $0x50] sm:$0xff] %vm1013_vm0, %v1219_v44  ;;  %1252 = vst.msk [vmem:[%s6325_s25 + $0x58] sm:$0xff] %vm1013_vm0, %v1220_v45  ;;  %v1222_v47 = vld [vmem:[%s6283_s22 + $0x68] sm:$0xff]  ;;  %v1223_v48 = vld [vmem:[%s6283_s22 + $0x70] sm:$0xff] }
 0x104   : > { %1253 = vst.msk [vmem:[%s6325_s25 + $0x60] sm:$0xff] %vm1013_vm0, %v1221_v46  ;;  %v1224_v49 = vld [vmem:[%s6283_s22 + $0x78] sm:$0xff]  ;;  %1254 = vst.msk [vmem:[%s6325_s25 + $0x68] sm:$0xff] %vm1013_vm0, %v1222_v47  ;;  %v1225_v50 = vld [vmem:[%s6283_s22 + $0x80] sm:$0xff] }
 0x105   : > { %1255 = vst.msk [vmem:[%s6325_s25 + $0x70] sm:$0xff] %vm1013_vm0, %v1223_v48  ;;  %1256 = vst.msk [vmem:[%s6325_s25 + $0x78] sm:$0xff] %vm1013_vm0, %v1224_v49  ;;  %v1226_v51 = vld [vmem:[%s6283_s22 + $0x88] sm:$0xff]  ;;  %v1227_v52 = vld [vmem:[%s6283_s22 + $0x90] sm:$0xff] }
 0x106   : > { %1257 = vst.msk [vmem:[%s6325_s25 + $0x80] sm:$0xff] %vm1013_vm0, %v1225_v50  ;;  %1258 = vst.msk [vmem:[%s6325_s25 + $0x88] sm:$0xff] %vm1013_vm0, %v1226_v51  ;;  %v1228_v53 = vld [vmem:[%s6283_s22 + $0x98] sm:$0xff]  ;;  %v1229_v54 = vld [vmem:[%s6283_s22 + $0xa0] sm:$0xff] }
 0x107   : > { %1259 = vst.msk [vmem:[%s6325_s25 + $0x90] sm:$0xff] %vm1013_vm0, %v1227_v52  ;;  %v1230_v55 = vld [vmem:[%s6283_s22 + $0xa8] sm:$0xff]  ;;  %1260 = vst.msk [vmem:[%s6325_s25 + $0x98] sm:$0xff] %vm1013_vm0, %v1228_v53  ;;  %v1231_v56 = vld [vmem:[%s6283_s22 + $0xb0] sm:$0xff] }
 0x108   : > { %1261 = vst.msk [vmem:[%s6325_s25 + $0xa0] sm:$0xff] %vm1013_vm0, %v1229_v54  ;;  %1262 = vst.msk [vmem:[%s6325_s25 + $0xa8] sm:$0xff] %vm1013_vm0, %v1230_v55  ;;  %v1232_v57 = vld [vmem:[%s6283_s22 + $0xb8] sm:$0xff]  ;;  %v1233_v58 = vld [vmem:[%s6283_s22 + $0xc0] sm:$0xff] }
 0x109   : > { %1263 = vst.msk [vmem:[%s6325_s25 + $0xb0] sm:$0xff] %vm1013_vm0, %v1231_v56  ;;  %1264 = vst.msk [vmem:[%s6325_s25 + $0xb8] sm:$0xff] %vm1013_vm0, %v1232_v57  ;;  %v1234_v59 = vld [vmem:[%s6283_s22 + $0xc8] sm:$0xff]  ;;  %v1235_v60 = vld [vmem:[%s6283_s22 + $0xd0] sm:$0xff] }
 0x10a   : > { %1265 = vst.msk [vmem:[%s6325_s25 + $0xc0] sm:$0xff] %vm1013_vm0, %v1233_v58  ;;  %v1236_v61 = vld [vmem:[%s6283_s22 + $0xd8] sm:$0xff]  ;;  %1266 = vst.msk [vmem:[%s6325_s25 + $0xc8] sm:$0xff] %vm1013_vm0, %v1234_v59  ;;  %v1237_v62 = vld [vmem:[%s6283_s22 + $0xe0] sm:$0xff] }
 0x10b   : > { %1267 = vst.msk [vmem:[%s6325_s25 + $0xd0] sm:$0xff] %vm1013_vm0, %v1235_v60  ;;  %1268 = vst.msk [vmem:[%s6325_s25 + $0xd8] sm:$0xff] %vm1013_vm0, %v1236_v61  ;;  %v1238_v63 = vld [vmem:[%s6283_s22 + $0xe8] sm:$0xff]  ;;  %v1239_v0 = vld [vmem:[%s6283_s22 + $0xf0] sm:$0xff] }
 0x10c   : > { %1269 = vst.msk [vmem:[%s6325_s25 + $0xe0] sm:$0xff] %vm1013_vm0, %v1237_v62  ;;  %1270 = vst.msk [vmem:[%s6325_s25 + $0xe8] sm:$0xff] %vm1013_vm0, %v1238_v63  ;;  %v1240_v1 = vld [vmem:[%s6283_s22 + $0xf8] sm:$0xff]  ;;  %v1273_v2 = vld [vmem:[%s8651_s23] sm:$0xff] }
 0x10d   : > { %1271 = vst.msk [vmem:[%s6325_s25 + $0xf0] sm:$0xff] %vm1013_vm0, %v1239_v0  ;;  %1272 = vst.msk [vmem:[%s6325_s25 + $0xf8] sm:$0xff] %vm1013_vm0, %v1240_v1 }
 0x10e   : > { %1274 = vst.msk [vmem:[%s6328_s0] sm:$0xff] %vm1013_vm0, %v1273_v2 }
 0x10f PF: > { %s8652_s15 = sld [smem:[#allocation64_spill]]  ;;  %vm1281_vm1 = vcmask 261120   ;;  %v5875_v6 = vmov 0.0   ;;  %v6746_v11 = vld [vmem:[%s6305_s17] sm:$0xff]  ;;  %vm5876_vm2 = vmmov 0   ;;  %v6797_v35 = vld [vmem:[%s6309_s24] sm:$0xff] }
 0x110   : > { %4953 = vmatprep.subr.mxu0 %v5875_v6  ;;  %4964 = vmatprep.subr.mxu1 %v5875_v6  ;;  %v1283_v13 = vsel %vm1281_vm1, %v6746_v11, 0  ;;  %s8653_s2 = sld [smem:[#allocation65_spill]]  ;;  %v1775_v37 = vsel %vm1281_vm1, %v6797_v35, 0  ;;  %s5877_s5 = smov 64  }
 0x111   : > { %4961 = vmatprep.mubr.msk.f32.mxu0 %vm5876_vm2, %v5875_v6  ;;  %4972 = vmatprep.mubr.msk.f32.mxu1 %vm5876_vm2, %v5875_v6  ;;  %v6758_v15 = vand.u32 4294901760, %v1283_v13  ;;  %v6824_v41 = vand.u32 4294901760, %v1775_v37  ;;  %s8655_s10 = sld [smem:[#allocation66_spill]]  ;;  %s5878_s26 = smov 96  }
 0x112   : > { %s8657_s27 = sld [smem:[#allocation68_spill]]  ;;  %s8573_s22 = smov 32  }
 0x113   : > { %v6772_v20 = vsub.f32 %v1283_v13, %v6758_v15  ;;  %v6843_v46 = vsub.f32 %v1775_v37, %v6824_v41  ;;  %s8678_s23 = sld [smem:[#allocation76_spill]]  ;;  %s8574_s28 = scalar_lea.sflag [#allocation15], %s6261_s1 }
 0x115   : > { %v1280_v3 = vld [vmem:[%s8652_s15 + $0x18] sm:$0xff]  ;;  %v1279_v4 = vld [vmem:[%s8652_s15 + $0x10] sm:$0xff]  ;;  %v1278_v5 = vld [vmem:[%s8652_s15 + $0x8] sm:$0xff]  ;;  %v1356_v25 = vand.u32 4294901760, %v6772_v20  ;;  %v1848_v51 = vand.u32 4294901760, %v6843_v46 }
 0x116   : > { %v6735_v7 = vand.u32 4294901760, %v1280_v3  ;;  %v6737_v8 = vand.u32 4294901760, %v1279_v4  ;;  %v6739_v9 = vand.u32 4294901760, %v1278_v5  ;;  %v1277_v10 = vld [vmem:[%s8652_s15] sm:$0xff]  ;;  %s8654_s13 = smov %s8653_s2  ;;  %v1773_v36 = vld [vmem:[%s8653_s2 + $0x18] sm:$0xff]  ;;  %s8656_s2 = sld [smem:[#allocation67_spill]] }
 0x117   : > { %v6748_v12 = vand.u32 4294901760, %v1277_v10  ;;  %v1357_v29 = vsub.f32 %v6772_v20, %v1356_v25  ;;  %v6812_v38 = vand.u32 4294901760, %v1773_v36  ;;  %v1772_v39 = vld [vmem:[%s8654_s13 + $0x10] sm:$0xff]  ;;  %v1771_v40 = vld [vmem:[%s8654_s13 + $0x8] sm:$0xff]  ;;  %v1770_v44 = vld [vmem:[%s8654_s13] sm:$0xff]  ;;  %v1849_v56 = vsub.f32 %v6843_v46, %v1848_v51 }
 0x118   : > { %4954 = vmatpush3.msra.mxu0 %v6735_v7  ;;  %v1390_v14 = vsub.f32 %v1280_v3, %v6735_v7  ;;  %v6761_v16 = vsub.f32 %v1279_v4, %v6737_v8  ;;  %v6764_v17 = vsub.f32 %v1278_v5, %v6739_v9  ;;  %v6827_v42 = vand.u32 4294901760, %v1772_v39 }
 0x119   : > { %4955 = vmatprep.subr.mxu0 %v5875_v6  ;;  %v6768_v18 = vsub.f32 %v1277_v10, %v6748_v12  ;;  %v1358_v32 = vand.u32 4294901760, %v1357_v29  ;;  %v6832_v43 = vsub.f32 %v1773_v36, %v6812_v38  ;;  %v6838_v45 = vand.u32 4294901760, %v1771_v40  ;;  %v3600_v10 = vld [vmem:[%s8655_s10 + $0x18] sm:$0xff] }
 0x11a   : > { %4956 = vmatpush3.msra.mxu0 %v6737_v8  ;;  %v1391_v19 = vand.u32 4294901760, %v1390_v14  ;;  %v1398_v21 = vand.u32 4294901760, %v6761_v16  ;;  %v1405_v22 = vand.u32 4294901760, %v6764_v17  ;;  %v6849_v47 = vsub.f32 %v1772_v39, %v6827_v42 }
 0x11b   : > { %4957 = vmatprep.subr.mxu0 %v5875_v6  ;;  %v1412_v23 = vand.u32 4294901760, %v6768_v18  ;;  %v6851_v48 = vand.u32 4294901760, %v1770_v44  ;;  %v1883_v49 = vand.u32 4294901760, %v6832_v43  ;;  %v6859_v50 = vsub.f32 %v1771_v40, %v6838_v45 }
 0x11c   : > { %4958 = vmatpush3.msra.mxu0 %v6739_v9  ;;  %v1392_v24 = vsub.f32 %v1390_v14, %v1391_v19  ;;  %v1399_v26 = vsub.f32 %v6761_v16, %v1398_v21  ;;  %v1406_v27 = vsub.f32 %v6764_v17, %v1405_v22  ;;  %v1890_v53 = vand.u32 4294901760, %v6849_v47 }
 0x11d   : > { %4959 = vmatprep.subr.mxu0 %v5875_v6  ;;  %v1413_v31 = vsub.f32 %v6768_v18, %v1412_v23  ;;  %v6869_v52 = vsub.f32 %v1770_v44, %v6851_v48  ;;  %v1884_v54 = vsub.f32 %v6832_v43, %v1883_v49  ;;  %v1897_v55 = vand.u32 4294901760, %v6859_v50 }
 0x11e   : > { %4960 = vmatpush3.msra.mxu0 %v6748_v12  ;;  %v1393_v28 = vand.u32 4294901760, %v1392_v24  ;;  %v1400_v30 = vand.u32 4294901760, %v1399_v26  ;;  %v1407_v33 = vand.u32 4294901760, %v1406_v27  ;;  %v1891_v57 = vsub.f32 %v6849_v47, %v1890_v53 }
 0x11f   : > { %4975 = vmatprep.subr.mxu0 %v5875_v6  ;;  %4962 = vmatmul.mubr.f32.vlgmr.msra.gmra.mxu0 %v1358_v32  ;;  %v1414_v34 = vand.u32 4294901760, %v1413_v31  ;;  %v1904_v58 = vand.u32 4294901760, %v6869_v52  ;;  %v1885_v59 = vand.u32 4294901760, %v1884_v54  ;;  %v1898_v60 = vsub.f32 %v6859_v50, %v1897_v55 }
 0x120   : > { %4965 = vmatpush3.msra.mxu1 %v1393_v28  ;;  %4976 = vmatpush3.msra.mxu0 %v1390_v14  ;;  %v1850_v61 = vand.u32 4294901760, %v1849_v56  ;;  %v1892_v62 = vand.u32 4294901760, %v1891_v57  ;;  %v6961_v13 = vand.u32 4294901760, %v3600_v10 }
 0x121   : > { %4966 = vmatprep.subr.mxu1 %v5875_v6  ;;  %4977 = vmatprep.subr.mxu0 %v5875_v6  ;;  %v1905_v63 = vsub.f32 %v6869_v52, %v1904_v58  ;;  %v1899_v0 = vand.u32 4294901760, %v1898_v60 }
 0x122   : > { %4967 = vmatpush3.msra.mxu1 %v1400_v30  ;;  %4978 = vmatpush3.msra.mxu0 %v6761_v16 }
 0x123   : > { %4968 = vmatprep.subr.mxu1 %v5875_v6  ;;  %4979 = vmatprep.subr.mxu0 %v5875_v6  ;;  %v1906_v1 = vand.u32 4294901760, %v1905_v63  ;;  %v4815_v63 = vld [vmem:[%s8657_s27] ss:$0 sm:$0xff]  ;;  %s5881_s27 = smov [#allocation14]  }
 0x124   : > { %4969 = vmatpush3.msra.mxu1 %v1407_v33  ;;  %4980 = vmatpush3.msra.mxu0 %v6764_v17 }
 0x125   : > { %4970 = vmatprep.subr.mxu1 %v5875_v6  ;;  %4981 = vmatprep.subr.mxu0 %v5875_v6 }
 0x126   : > { %4971 = vmatpush3.msra.mxu1 %v1414_v34  ;;  %4982 = vmatpush3.msra.mxu0 %v6768_v18 }
 0x127   : > { %4973 = vmatmul.mubr.f32.vlgmr.msra.gmra.mxu1 %v6758_v15  ;;  %4986 = vmatprep.subr.mxu1 %v5875_v6 }
 0x128   : > { %4983 = vmatprep.mubr.msk.f32.mxu0 %vm5876_vm2, %v5875_v6  ;;  %4987 = vmatpush3.msra.mxu1 %v6735_v7 }
 0x129   : > { %4984 = vmatmul.mubr.f32.vlgmr.msra.gmra.mxu0 %v6772_v20  ;;  %4988 = vmatprep.subr.mxu1 %v5875_v6 }
 0x12a   : > { %4997 = vmatprep.subr.mxu0 %v5875_v6  ;;  %4989 = vmatpush3.msra.mxu1 %v6737_v8 }
 0x12b   : > { %4998 = vmatpush3.msra.mxu0 %v1391_v19  ;;  %4990 = vmatprep.subr.mxu1 %v5875_v6 }
 0x12c   : > { %4999 = vmatprep.subr.mxu0 %v5875_v6  ;;  %4991 = vmatpush3.msra.mxu1 %v6739_v9 }
 0x12d   : > { %5000 = vmatpush3.msra.mxu0 %v1398_v21  ;;  %4992 = vmatprep.subr.mxu1 %v5875_v6 }
 0x12e   : > { %5001 = vmatprep.subr.mxu0 %v5875_v6  ;;  %4993 = vmatpush3.msra.mxu1 %v6748_v12 }
 0x12f   : > { %4994 = vmatprep.mubr.msk.f32.mxu1 %vm5876_vm2, %v5875_v6  ;;  %5002 = vmatpush3.msra.mxu0 %v1405_v22 }
 0x130   : > { %4995 = vmatmul.mubr.f32.vlgmr.msra.gmra.mxu1 %v1356_v25  ;;  %5003 = vmatprep.subr.mxu0 %v5875_v6 }
 0x131   : > { %5008 = vmatprep.subr.mxu1 %v5875_v6  ;;  %5004 = vmatpush3.msra.mxu0 %v1412_v23 }
 0x132   : > { %5005 = vmatprep.mubr.msk.f32.mxu0 %vm5876_vm2, %v5875_v6  ;;  %5009 = vmatpush3.msra.mxu1 %v6735_v7 }
 0x133   : > { %5006 = vmatmul.mubr.f32.vlgmr.msra.gmra.mxu0 %v6758_v15  ;;  %5010 = vmatprep.subr.mxu1 %v5875_v6 }
 0x134   : > { %5019 = vmatprep.subr.mxu0 %v5875_v6  ;;  %5011 = vmatpush3.msra.mxu1 %v6737_v8 }
 0x135   : > { %5020 = vmatpush3.msra.mxu0 %v6812_v38  ;;  %5012 = vmatprep.subr.mxu1 %v5875_v6 }
 0x136   : > { %5021 = vmatprep.subr.mxu0 %v5875_v6  ;;  %5013 = vmatpush3.msra.mxu1 %v6739_v9 }
 0x137   : > { %5022 = vmatpush3.msra.mxu0 %v6827_v42  ;;  %5014 = vmatprep.subr.mxu1 %v5875_v6 }
 0x138   : > { %5023 = vmatprep.subr.mxu0 %v5875_v6  ;;  %5015 = vmatpush3.msra.mxu1 %v6748_v12 }
 0x139   : > { %5016 = vmatprep.mubr.msk.f32.mxu1 %vm5876_vm2, %v5875_v6  ;;  %5024 = vmatpush3.msra.mxu0 %v6838_v45 }
 0x13a   : > { %5017 = vmatmul.mubr.f32.vlgmr.msra.gmra.mxu1 %v6758_v15  ;;  %5025 = vmatprep.subr.mxu0 %v5875_v6  ;;  %v6964_v15 = vsub.f32 %v3600_v10, %v6961_v13 }
 0x13b   : > { %5030 = vmatprep.subr.mxu1 %v5875_v6  ;;  %5026 = vmatpush3.msra.mxu0 %v6851_v48 }
 0x13c   : > { %5031 = vmatpush3.msra.mxu1 %v1885_v59  ;;  %5027 = vmatprep.mubr.msk.f32.mxu0 %vm5876_vm2, %v5875_v6  ;;  %v3710_v17 = vand.u32 4294901760, %v6964_v15 }
 0x13d   : > { %5032 = vmatprep.subr.mxu1 %v5875_v6  ;;  %5041 = vmatprep.subr.mxu0 %v5875_v6 }
 0x13e   : > { %5028 = vmatmul.mubr.f32.vlgmr.msra.gmra.mxu0 %v1850_v61  ;;  %5033 = vmatpush3.msra.mxu1 %v1892_v62  ;;  %v3711_v18 = vsub.f32 %v6964_v15, %v3710_v17 }
 0x13f   : > { %5042 = vmatpush3.msra.mxu0 %v6832_v43  ;;  %5034 = vmatprep.subr.mxu1 %v5875_v6 }
 0x140   : > { %5043 = vmatprep.subr.mxu0 %v5875_v6  ;;  %5035 = vmatpush3.msra.mxu1 %v1899_v0  ;;  %v3712_v20 = vand.u32 4294901760, %v3711_v18 }
 0x141   : > { %5044 = vmatpush3.msra.mxu0 %v6849_v47  ;;  %5036 = vmatprep.subr.mxu1 %v5875_v6 }
 0x142   : > { %5045 = vmatprep.subr.mxu0 %v5875_v6  ;;  %5037 = vmatpush3.msra.mxu1 %v1906_v1 }
 0x143   : > { %5038 = vmatprep.mubr.msk.f32.mxu1 %vm5876_vm2, %v5875_v6  ;;  %5046 = vmatpush3.msra.mxu0 %v6859_v50 }
 0x144   : > { %5039 = vmatmul.mubr.f32.vlgmr.msra.gmra.mxu1 %v6824_v41  ;;  %5047 = vmatprep.subr.mxu0 %v5875_v6 }
 0x145   : > { %5052 = vmatprep.subr.mxu1 %v5875_v6  ;;  %5048 = vmatpush3.msra.mxu0 %v6869_v52  ;;  %v3597_v52 = vld [vmem:[%s8655_s10] sm:$0xff] }
 0x146   : > { %5049 = vmatprep.mubr.msk.f32.mxu0 %vm5876_vm2, %v5875_v6  ;;  %5053 = vmatpush3.msra.mxu1 %v6812_v38  ;;  %v7001_v56 = vand.u32 4294901760, %v3597_v52 }
 0x147   : > { %5050 = vmatmul.mubr.f32.vlgmr.msra.gmra.mxu0 %v6843_v46  ;;  %5054 = vmatprep.subr.mxu1 %v5875_v6  ;;  %v4813_v46 = vld [vmem:[%s8656_s2] ss:$0 sm:$0xff]  ;;  %s4192_s2 = sshll.u32 %s6309_s24, 4  ;;  %s4193_s2 = int_to_ptr.vmem [resolvable:$true] %s4192_s2 }
 0x148   : > { %5063 = vmatprep.subr.mxu0 %v5875_v6  ;;  %5055 = vmatpush3.msra.mxu1 %v6827_v42  ;;  %v7010_v59 = vsub.f32 %v3597_v52, %v7001_v56  ;;  %s5505_s18 = scalar_lea.vmem %s4193_s2, 128 }
 0x149   : > { %5064 = vmatpush3.msra.mxu0 %v1883_v49  ;;  %5056 = vmatprep.subr.mxu1 %v5875_v6  ;;  %p5506_p0 = scmp.ne.s32.totalorder %s4193_s2, %s5505_s18 }
 0x14a   : > { %5065 = vmatprep.subr.mxu0 %v5875_v6  ;;  %5057 = vmatpush3.msra.mxu1 %v6838_v45  ;;  %v3731_v62 = vand.u32 4294901760, %v7010_v59 }
 0x14b   : > { %5066 = vmatpush3.msra.mxu0 %v1890_v53  ;;  %5058 = vmatprep.subr.mxu1 %v5875_v6  ;;  %p5507_p6 = pnand %p5506_p0, %p6114_p2 }
 0x14c   : > { %5067 = vmatprep.subr.mxu0 %v5875_v6  ;;  %5059 = vmatpush3.msra.mxu1 %v6851_v48  ;;  %v3732_v1 = vsub.f32 %v7010_v59, %v3731_v62 }
 0x14d   : > { %5060 = vmatprep.mubr.msk.f32.mxu1 %vm5876_vm2, %v5875_v6  ;;  %5068 = vmatpush3.msra.mxu0 %v1897_v55  ;;  %p5508_p4 = pneg %p5507_p6 }
 0x14e   : > { %5061 = vmatmul.mubr.f32.vlgmr.msra.gmra.mxu1 %v1848_v51  ;;  %5069 = vmatprep.subr.mxu0 %v5875_v6 }
 0x14f   : > { %5074 = vmatprep.subr.mxu1 %v5875_v6  ;;  %5070 = vmatpush3.msra.mxu0 %v1904_v58 }
 0x150   : > { %5071 = vmatprep.mubr.msk.f32.mxu0 %vm5876_vm2, %v5875_v6  ;;  %5075 = vmatpush3.msra.mxu1 %v6812_v38 }
 0x151   : > { %5072 = vmatmul.mubr.f32.vlgmr.msra.gmra.mxu0 %v6824_v41  ;;  %5076 = vmatprep.subr.mxu1 %v5875_v6 }
 0x152   : > { %5082 = vmatprep.mubr.msk.f32.mxu1 %vm5876_vm2, %v5875_v6  ;;  %5077 = vmatpush3.msra.mxu1 %v6827_v42  ;;  %v3599_v42 = vld [vmem:[%s8655_s10 + $0x10] sm:$0xff] }
 0x153   : > { %5085 = vmatprep.subr.mxu0 %v5875_v6  ;;  %5078 = vmatprep.subr.mxu1 %v5875_v6 }
 0x154   : > { %5093 = vmatprep.mubr.msk.f32.mxu0 %vm5876_vm2, %v5875_v6  ;;  %5079 = vmatpush3.msra.mxu1 %v6838_v45  ;;  %v6978_v45 = vand.u32 4294901760, %v3599_v42 }
 0x155   : > { %5080 = vmatprep.subr.mxu1 %v5875_v6  ;;  %5086 = vmatpush3.msra.mxu0 %v6961_v13 }
 0x156   : > { %5081 = vmatpush3.msra.mxu1 %v6851_v48  ;;  %5087 = vmatprep.subr.mxu0 %v5875_v6  ;;  %v3598_v48 = vld [vmem:[%s8655_s10 + $0x8] sm:$0xff]  ;;  %v6988_v50 = vsub.f32 %v3599_v42, %v6978_v45 }
 0x157   : > { %5083 = vmatmul.mubr.f32.vlgmr.msra.gmra.mxu1 %v6824_v41  ;;  %5096 = vmatprep.subr.mxu1 %v5875_v6  ;;  %v6990_v51 = vand.u32 4294901760, %v3598_v48 }
 0x158   : > { %5104 = vmatprep.mubr.msk.f32.mxu1 %vm5876_vm2, %v5875_v6  ;;  %5097 = vmatpush3.msra.mxu1 %v3712_v20  ;;  %v3717_v54 = vand.u32 4294901760, %v6988_v50 }
 0x159   : > { %5098 = vmatprep.subr.mxu1 %v5875_v6  ;;  %5088 = vmatpush3.msra.mxu0 %v6978_v45  ;;  %v6999_v55 = vsub.f32 %v3598_v48, %v6990_v51 }
 0x15a   : > { %5089 = vmatprep.subr.mxu0 %v5875_v6  ;;  %v3718_v57 = vsub.f32 %v6988_v50, %v3717_v54  ;;  %4100 = vrot.lane.b32.xlu1 %v4815_v63, %s5877_s5 }
 0x15b   : > { %5090 = vmatpush3.msra.mxu0 %v6990_v51  ;;  %v3724_v58 = vand.u32 4294901760, %v6999_v55 }
 0x15c   : > { %5091 = vmatprep.subr.mxu0 %v5875_v6  ;;  %v3719_v60 = vand.u32 4294901760, %v3718_v57 }
 0x15d   : > { %5092 = vmatpush3.msra.mxu0 %v7001_v56  ;;  %v3725_v61 = vsub.f32 %v6999_v55, %v3724_v58 }
 0x15e   : > { %5107 = vmatprep.subr.mxu0 %v5875_v6  ;;  %5099 = vmatpush3.msra.mxu1 %v3719_v60 }
 0x15f   : > { %v3726_v0 = vand.u32 4294901760, %v3725_v61  ;;  %5100 = vmatprep.subr.mxu1 %v5875_v6 }
 0x161   : > { %5101 = vmatpush3.msra.mxu1 %v3726_v0 }
 0x162   : > { %5102 = vmatprep.subr.mxu1 %v5875_v6 }
 0x1df   : > { %v1360_v2 = vpop.f32.mrf.mxu0 }
 0x1e1   : > { %v4963_v3 = vpop.f32.mrf.mxu0 }
 0x1e2   : > { %v2303_v3 = vlaneseq }
 0x1e7   : > { %v1451_v4 = vpop.f32.mrf.mxu1 }
 0x1e8   : > { %v1452_v28 = vadd.f32 %v1451_v4, %v1360_v2  ;;  %v3733_v2 = vand.u32 4294901760, %v3732_v1  ;;  %v7028_v4 = vshrl.u32 %v2303_v3, 7 }
 0x1e9   : > { %v4974_v5 = vpop.f32.mrf.mxu1  ;;  %v1531_v7 = vpop.f32.mrf.mxu0 }
 0x1ea   : > { %v1532_v32 = vadd.f32 %v1531_v7, %v1452_v28  ;;  %5103 = vmatpush3.msra.mxu1 %v3733_v2  ;;  %v7068_v18 = vsub.s32 2, %v7028_v4  ;;  %v7077_v20 = vsub.s32 3, %v7028_v4  ;;  %v7113_v28 = vsub.s32 7, %v7028_v4 }
 0x1eb   : > { %v4985_v8 = vpop.f32.mrf.mxu0  ;;  %5118 = vmatprep.subr.mxu1 %v5875_v6 }
 0x1f0   : > { %v1608_v9 = vpop.f32.mrf.mxu1 }
 0x1f1   : > { %v1609_v36 = vadd.f32 %v1608_v9, %v1532_v32  ;;  %v7041_v9 = vsub.s32 0, %v7028_v4 }
 0x1f2   : > { %v4996_v12 = vpop.f32.mrf.mxu1 }
 0x1f3   : > { %v1691_v14 = vpop.f32.mrf.mxu0 }
 0x1f4   : > { %v1692_v39 = vadd.f32 %v1691_v14, %v1609_v36  ;;  %v7059_v14 = vsub.s32 1, %v7028_v4 }
 0x1f5   : > { %v5007_v16 = vpop.f32.mrf.mxu0 }
 0x1fa   : > { %v1766_v19 = vpop.f32.mrf.mxu1 }
 0x1fb   : > { %v6976_v43 = vadd.f32 %v1766_v19, %v1692_v39 }
 0x1fc   : > { %v5018_v21 = vpop.f32.mrf.mxu1 }
 0x1fe   : > { %v1852_v22 = vpop.f32.mrf.mxu0 }
 0x200   : > { %v5029_v23 = vpop.f32.mrf.mxu0 }
 0x204   : > { %v1943_v24 = vpop.f32.mrf.mxu1 }
 0x205   : > { %v1944_v29 = vadd.f32 %v1943_v24, %v1852_v22  ;;  %v7086_v22 = vsub.s32 4, %v7028_v4  ;;  %v7095_v24 = vsub.s32 5, %v7028_v4 }
 0x206   : > { %v5040_v25 = vpop.f32.mrf.mxu1 }
 0x207   : > { %v2023_v26 = vpop.f32.mrf.mxu0 }
 0x208   : > { %v2024_v33 = vadd.f32 %v2023_v26, %v1944_v29  ;;  %v7104_v26 = vsub.s32 6, %v7028_v4 }
 0x209   : > { %v5051_v27 = vpop.f32.mrf.mxu0 }
 0x20e   : > { %v2100_v30 = vpop.f32.mrf.mxu1 }
 0x20f   : > { %v2101_v37 = vadd.f32 %v2100_v30, %v2024_v33 }
 0x210   : > { %v5062_v31 = vpop.f32.mrf.mxu1 }
 0x211   : > { %v2183_v34 = vpop.f32.mrf.mxu0 }
 0x212   : > { %v2184_v40 = vadd.f32 %v2183_v34, %v2101_v37 }
 0x213   : > { %v5073_v38 = vpop.f32.mrf.mxu0 }
 0x217   : > { %v2258_v41 = vpop.f32.mrf.mxu1 }
 0x218   : > { %v2259_v44 = vadd.f32 %v2258_v41, %v2184_v40 }
 0x219   : > { %v5084_v47 = vpop.f32.mrf.mxu1 }
 0x21a   : > { %v2262_v49 = vadd.f32 %v2259_v44, %v6976_v43 }
 0x21c   : > { %v2270_v53 = vadd.f32 %v4813_v46, %v2262_v49 }
 0x21e   : > { %5328 = vtanh.f32 %v2270_v53 }
 0x22b   : > { %v7030_v5 = vpop.eup %5328 }
 0x22c   : > { %v7033_v7 = vmax.f32 %v7030_v5, 0.0  ;;  %2297 = vrot.lane.b32.xlu0 %v7030_v5, %s5878_s26  ;;  %v2280_v63 = vmul.f32 %v7030_v5, %v7030_v5 }
 0x22e   : > { %v7038_v8 = vsub.f32 1.0, %v7033_v7  ;;  %vm2274_vm3 = vcmp.gt.f32.partialorder %v7033_v7, 0.0  ;;  %v2281_v1 = vsub.f32 1.0, %v2280_v63 }
 0x22f   : > { %v7045_v10 = vsel %vm2274_vm3, 1.0, %v5875_v6 }
 0x230   : > { %2282 = vrot.lane.b32.xlu0 %v6797_v35, %s8573_s22  ;;  %4121 = vst.msk [vmem:[%s8572_s14] sm:$0xff] %vm1281_vm1, %v7045_v10  ;;  %v7055_v12 = vrot.slane %v7038_v8, %v7041_v9  ;;  %v7064_v16 = vrot.slane %v7038_v8, %v7059_v14  ;;  %v7073_v19 = vrot.slane %v7038_v8, %v7068_v18 }
 0x231   : > { %v7082_v21 = vrot.slane %v7038_v8, %v7077_v20  ;;  %v7091_v23 = vrot.slane %v7038_v8, %v7086_v22  ;;  %v7100_v25 = vrot.slane %v7038_v8, %v7095_v24  ;;  %v7109_v27 = vrot.slane %v7038_v8, %v7104_v26 }
 0x232   : > { %v7118_v29 = vrot.slane %v7038_v8, %v7113_v28  ;;  %v2301_v32 = vmul.f32 %v7038_v8, %v6797_v35 }
 0x234   : > { %2308 = vbcast.lane.b32.xlu0 %v7055_v12, 256 }
 0x238   : > { %2316 = vbcast.lane.b32.xlu0 %v7055_v12, 272 }
 0x23c   : > { %2327 = vbcast.lane.b32.xlu0 %v7064_v16, 256 }
 0x240   : > { %2335 = vbcast.lane.b32.xlu0 %v7064_v16, 272 }
 0x244   : > { %2346 = vbcast.lane.b32.xlu0 %v7073_v19, 256 }
 0x248   : > { %2354 = vbcast.lane.b32.xlu0 %v7073_v19, 272 }
 0x24c   : > { %2365 = vbcast.lane.b32.xlu0 %v7082_v21, 256 }
 0x250   : > { %2373 = vbcast.lane.b32.xlu0 %v7082_v21, 272 }
 0x254   : > { %2384 = vbcast.lane.b32.xlu0 %v7091_v23, 256 }
 0x258   : > { %2392 = vbcast.lane.b32.xlu0 %v7091_v23, 272 }
 0x25c   : > { %2403 = vbcast.lane.b32.xlu0 %v7100_v25, 256 }
 0x260   : > { %2411 = vbcast.lane.b32.xlu0 %v7100_v25, 272 }
 0x264   : > { %2422 = vbcast.lane.b32.xlu0 %v7109_v27, 256 }
 0x268   : > { %2430 = vbcast.lane.b32.xlu0 %v7109_v27, 272 }
 0x26c   : > { %2441 = vbcast.lane.b32.xlu0 %v7118_v29, 256 }
 0x270   : > { %2449 = vbcast.lane.b32.xlu0 %v7118_v29, 272 }
 0x29e   : > { %v2298_v30 = vpop.permute.xlu0 %2297 }
 0x29f   : > { %v2300_v31 = vmul.f32 %v2298_v30, %v7033_v7 }
 0x2a1   : > { %v2302_v33 = vadd.f32 %v2301_v32, %v2300_v31 }
 0x2a2   : > { %v2283_v34 = vpop.permute.xlu0 %2282 }
 0x2a3   : > { %v3602_v36 = vsel %vm1281_vm1, %v2302_v33, 0  ;;  %4122 = vst.msk [vmem:[%s6309_s24] sm:$0xff] %vm1281_vm1, %v2302_v33  ;;  %v2285_v37 = vsub.f32 %v7030_v5, %v2283_v34  ;;  %v5880_v34 = vmov 1966171168  }
 0x2a4   : > { %v3673_v38 = vand.u32 4294901760, %v3602_v36 }
 0x2a5   : > { %2287 = vrot.lane.b32.xlu1 %v2285_v37, %s5878_s26 }
 0x2a6   : > { %v3674_v39 = vsub.f32 %v3602_v36, %v3673_v38  ;;  %5105 = vmatmul.mubr.f32.vlgmr.msra.gmra.mxu1 %v3673_v38  ;;  %v2769_v36 = vunpack.c.l.s4 %v5880_v34 }
 0x2a7   : > { %5119 = vmatpush3.msra.mxu1 %v6961_v13  ;;  %5126 = vmatprep.mubr.msk.f32.mxu1 %vm5876_vm2, %v5875_v6 }
 0x2a8   : > { %5120 = vmatprep.subr.mxu1 %v5875_v6  ;;  %v3675_v40 = vand.u32 4294901760, %v3674_v39 }
 0x2a9   : > { %5121 = vmatpush3.msra.mxu1 %v6978_v45  ;;  %2292 = vrot.lane.b32.xlu1 %v7033_v7, %s8573_s22 }
 0x2aa   : > { %5122 = vmatprep.subr.mxu1 %v5875_v6  ;;  %v3676_v41 = vsub.f32 %v3674_v39, %v3675_v40 }
 0x2ab   : > { %5123 = vmatpush3.msra.mxu1 %v6990_v51 }
 0x2ac   : > { %5124 = vmatprep.subr.mxu1 %v5875_v6  ;;  %v3677_v42 = vand.u32 4294901760, %v3676_v41 }
 0x2ad   : > { %5125 = vmatpush3.msra.mxu1 %v7001_v56  ;;  %2312 = vbcast.lane.b32.xlu1 %v7055_v12, 264 }
 0x2ae   : > { %5127 = vmatmul.mubr.f32.vlgmr.msra.gmra.mxu1 %v3675_v40  ;;  %5140 = vmatprep.subr.mxu1 %v5875_v6 }
 0x2af   : > { %5094 = vmatmul.mubr.f32.vlgmr.msra.gmra.mxu0 %v3677_v42  ;;  %5141 = vmatpush3.msra.mxu1 %v6961_v13  ;;  %v7192_v13 = vpop.permute.xlu1 %4100 }
 0x2b0   : > { %5108 = vmatpush3.msra.mxu0 %v6964_v15  ;;  %5142 = vmatprep.subr.mxu1 %v5875_v6 }
 0x2b1   : > { %5109 = vmatprep.subr.mxu0 %v5875_v6  ;;  %5143 = vmatpush3.msra.mxu1 %v6978_v45  ;;  %v3265_v45 = vld [vmem:[%s6319_s20] sm:$0xff] }
 0x2b2   : > { %5110 = vmatpush3.msra.mxu0 %v6988_v50  ;;  %2320 = vbcast.lane.b32.xlu1 %v7055_v12, 280  ;;  %v3266_v48 = vmul.f32 %v3265_v45, %v7038_v8 }
 0x2b3   : > { %5111 = vmatprep.subr.mxu0 %v5875_v6  ;;  %5144 = vmatprep.subr.mxu1 %v5875_v6 }
 0x2b4   : > { %5112 = vmatpush3.msra.mxu0 %v6999_v55  ;;  %5145 = vmatpush3.msra.mxu1 %v6990_v51 }
 0x2b5   : > { %5113 = vmatprep.subr.mxu0 %v5875_v6  ;;  %5146 = vmatprep.subr.mxu1 %v5875_v6 }
 0x2b6   : > { %5114 = vmatpush3.msra.mxu0 %v7010_v59  ;;  %5115 = vmatprep.mubr.msk.f32.mxu0 %vm5876_vm2, %v5875_v6 }
 0x2b7   : > { %5147 = vmatpush3.msra.mxu1 %v7001_v56  ;;  %5148 = vmatprep.mubr.msk.f32.mxu1 %vm5876_vm2, %v5875_v6 }
 0x2b8   : > { %2331 = vbcast.lane.b32.xlu1 %v7064_v16, 264  ;;  %5116 = vmatmul.mubr.f32.vlgmr.msra.gmra.mxu0 %v3674_v39 }
 0x2b9   : > { %5129 = vmatprep.subr.mxu0 %v5875_v6  ;;  %5149 = vmatmul.mubr.f32.vlgmr.msra.gmra.mxu1 %v3673_v38 }
 0x2ba   : > { %5130 = vmatpush3.msra.mxu0 %v3710_v17  ;;  %5137 = vmatprep.mubr.msk.f32.mxu0 %vm5876_vm2, %v5875_v6 }
 0x2bb   : > { %5131 = vmatprep.subr.mxu0 %v5875_v6 }
 0x2bc   : > { %5132 = vmatpush3.msra.mxu0 %v3717_v54  ;;  %2339 = vbcast.lane.b32.xlu1 %v7064_v16, 280 }
 0x2bd   : > { %5133 = vmatprep.subr.mxu0 %v5875_v6 }
 0x2be   : > { %5134 = vmatpush3.msra.mxu0 %v3724_v58 }
 0x2bf   : > { %5135 = vmatprep.subr.mxu0 %v5875_v6  ;;  %v2277_v6 = vmul.f32 %v7033_v7, %v7033_v7 }
 0x2c0   : > { %5136 = vmatpush3.msra.mxu0 %v3731_v62  ;;  %2350 = vbcast.lane.b32.xlu1 %v7073_v19, 264 }
 0x2c1   : > { %5138 = vmatmul.mubr.f32.vlgmr.msra.gmra.mxu0 %v3673_v38  ;;  %v2278_v15 = vsub.f32 1.0, %v2277_v6 }
 0x2c3   : > { %v2279_v17 = vmul.f32 %v7045_v10, %v2278_v15  ;;  %v2770_v15 = vunpack.c.0.s8 %v2769_v36 }
 0x2c4   : > { %2358 = vbcast.lane.b32.xlu1 %v7073_v19, 280 }
 0x2c5   : > { %v7307_v45 = vsub.s32 %v2770_v15, %v7028_v4 }
 0x2c8   : > { %2369 = vbcast.lane.b32.xlu1 %v7082_v21, 264 }
 0x2cc   : > { %2377 = vbcast.lane.b32.xlu1 %v7082_v21, 280 }
 0x2d0   : > { %2388 = vbcast.lane.b32.xlu1 %v7091_v23, 264 }
 0x2d4   : > { %2396 = vbcast.lane.b32.xlu1 %v7091_v23, 280 }
 0x2d8   : > { %2407 = vbcast.lane.b32.xlu1 %v7100_v25, 264 }
 0x2dc   : > { %2415 = vbcast.lane.b32.xlu1 %v7100_v25, 280 }
 0x2e0   : > { %2426 = vbcast.lane.b32.xlu1 %v7109_v27, 264 }
 0x2e4   : > { %2434 = vbcast.lane.b32.xlu1 %v7109_v27, 280  ;;  %v7282_v27 = vpop.permute.xlu0 %2308 }
 0x2e8   : > { %2445 = vbcast.lane.b32.xlu1 %v7118_v29, 264 }
 0x2ec   : > { %2453 = vbcast.lane.b32.xlu1 %v7118_v29, 280 }
 0x317   : > { %v2288_v44 = vpop.permute.xlu1 %2287 }
 0x318   : > { %v2290_v46 = vmul.f32 %v2288_v44, %v2279_v17 }
 0x31a   : > { %v7197_v47 = vrot.slane %v2290_v46, %v7041_v9  ;;  %v3267_v49 = vadd.f32 %v3266_v48, %v2290_v46  ;;  %v7205_v50 = vrot.slane %v2290_v46, %v7059_v14  ;;  %v7210_v52 = vrot.slane %v2290_v46, %v7068_v18 }
 0x31b   : > { %v2293_v51 = vpop.permute.xlu1 %2292  ;;  %v7217_v54 = vrot.slane %v2290_v46, %v7077_v20  ;;  %v7224_v56 = vrot.slane %v2290_v46, %v7086_v22  ;;  %v7233_v59 = vrot.slane %v2290_v46, %v7095_v24  ;;  %v7240_v61 = vrot.slane %v2290_v46, %v7104_v26 }
 0x31c   : > { %2464 = vbcast.lane.b32.xlu1 %v7197_v47, 264  ;;  %3268 = vst.msk [vmem:[%s6319_s20] sm:$0xff] %vm1281_vm1, %v3267_v49  ;;  %v7249_v0 = vrot.slane %v2290_v46, %v7113_v28  ;;  %v7254_v3 = vmul.f32 %v2293_v51, %v2281_v1  ;;  %v2774_v1 = vrot.slane %v6746_v11, %v7307_v45 }
 0x31e   : > { %v7261_v10 = vrot.slane %v7254_v3, %v7041_v9  ;;  %v7269_v12 = vrot.slane %v7254_v3, %v7059_v14  ;;  %v7277_v23 = vrot.slane %v7254_v3, %v7068_v18  ;;  %v7289_v33 = vrot.slane %v7254_v3, %v7077_v20  ;;  %v7291_v18 = vpop.permute.xlu0 %2316 }
 0x31f   : > { %v7213_v53 = vpop.permute.xlu1 %2312  ;;  %v7301_v20 = vrot.slane %v7254_v3, %v7086_v22  ;;  %v7314_v22 = vrot.slane %v7254_v3, %v7095_v24  ;;  %v7327_v24 = vrot.slane %v2774_v1, %v7307_v45 }
 0x320   : > { %2472 = vbcast.lane.b32.xlu1 %v7197_v47, 280  ;;  %8658 = vst [vmem:[#allocation52_spill] sm:$0xff] %v7213_v53 }
 0x321   : > { %8663 = vst [vmem:[#allocation57_spill] sm:$0xff] %v7314_v22 }
 0x322   : > { %v7297_v40 = vpop.permute.xlu0 %2327 }
 0x324   : > { %2483 = vbcast.lane.b32.xlu1 %v7205_v50, 264  ;;  %v7220_v55 = vpop.permute.xlu1 %2320 }
 0x325   : > { %8659 = vst [vmem:[#allocation53_spill] sm:$0xff] %v7220_v55 }
 0x326   : > { %v7309_v46 = vpop.permute.xlu0 %2335 }
 0x328   : > { %2491 = vbcast.lane.b32.xlu1 %v7205_v50, 280 }
 0x32a   : > { %v7226_v57 = vpop.permute.xlu1 %2331 }
 0x32b   : > { %8660 = vst [vmem:[#allocation54_spill] sm:$0xff] %v7226_v57 }
 0x32c   : > { %2498 = vbcast.lane.b32.xlu1 %v7210_v52, 256 }
 0x32e   : > { %v7230_v58 = vpop.permute.xlu1 %2339 }
 0x32f   : > { %8661 = vst [vmem:[#allocation55_spill] sm:$0xff] %v7230_v58 }
 0x330   : > { %2506 = vbcast.lane.b32.xlu1 %v7210_v52, 272 }
 0x332   : > { %v7236_v60 = vpop.permute.xlu1 %2350 }
 0x334   : > { %2517 = vbcast.lane.b32.xlu1 %v7217_v54, 256 }
 0x336   : > { %v7243_v62 = vpop.permute.xlu1 %2358 }
 0x338   : > { %2525 = vbcast.lane.b32.xlu1 %v7217_v54, 272 }
 0x33a   : > { %v7251_v2 = vpop.permute.xlu1 %2369 }
 0x33c   : > { %2536 = vbcast.lane.b32.xlu1 %v7224_v56, 256 }
 0x33e   : > { %v7257_v7 = vpop.permute.xlu1 %2377 }
 0x340   : > { %2544 = vbcast.lane.b32.xlu1 %v7224_v56, 272 }
 0x342   : > { %v7264_v5 = vpop.permute.xlu1 %2388 }
 0x344   : > { %2555 = vbcast.lane.b32.xlu1 %v7233_v59, 256 }
 0x346   : > { %v7272_v16 = vpop.permute.xlu1 %2396 }
 0x348   : > { %2563 = vbcast.lane.b32.xlu1 %v7233_v59, 272 }
 0x34a   : > { %v7279_v25 = vpop.permute.xlu1 %2407 }
 0x34c   : > { %2574 = vbcast.lane.b32.xlu1 %v7240_v61, 256 }
 0x34e   : > { %v7285_v32 = vpop.permute.xlu1 %2415 }
 0x350   : > { %2582 = vbcast.lane.b32.xlu1 %v7240_v61, 272 }
 0x352   : > { %v7294_v37 = vpop.permute.xlu1 %2426 }
 0x354   : > { %2593 = vbcast.lane.b32.xlu1 %v7249_v0, 256 }
 0x356   : > { %v7304_v44 = vpop.permute.xlu1 %2434 }
 0x357   : > { %8662 = vst [vmem:[#allocation56_spill] sm:$0xff] %v7304_v44 }
 0x358   : > { %2601 = vbcast.lane.b32.xlu1 %v7249_v0, 272 }
 0x35a   : > { %v7320_v4 = vpop.permute.xlu1 %2445 }
 0x35b   : > { %8664 = vst [vmem:[#allocation58_spill] sm:$0xff] %v7320_v4 }
 0x35c   : > { %2613 = vbcast.lane.b32.xlu1 %v7261_v10, 288 }
 0x35e   : > { %v7331_v11 = vpop.permute.xlu1 %2453 }
 0x35f   : > { %8665 = vst [vmem:[#allocation59_spill] sm:$0xff] %v7331_v11 }
 0x360   : > { %2621 = vbcast.lane.b32.xlu1 %v7261_v10, 304 }
 0x364   : > { %2633 = vbcast.lane.b32.xlu1 %v7269_v12, 288 }
 0x366   : > { %v3770_v19 = vpop.f32.mrf.mxu1 }
 0x368   : > { %2641 = vbcast.lane.b32.xlu1 %v7269_v12, 304  ;;  %v5106_v21 = vpop.f32.mrf.mxu1 }
 0x36c   : > { %2653 = vbcast.lane.b32.xlu1 %v7277_v23, 288 }
 0x36e   : > { %v3927_v14 = vpop.f32.mrf.mxu1 }
 0x36f   : > { %v3679_v29 = vpop.f32.mrf.mxu0 }
 0x370   : > { %v5128_v30 = vpop.f32.mrf.mxu1  ;;  %2661 = vbcast.lane.b32.xlu1 %v7277_v23, 304  ;;  %v3771_v41 = vadd.f32 %v3770_v19, %v3679_v29  ;;  %v2823_v19 = vrot.slane %v6797_v35, %v7307_v45 }
 0x371   : > { %v5095_v31 = vpop.f32.mrf.mxu0  ;;  %v7336_v30 = vrot.slane %v7254_v3, %v7104_v26 }
 0x372   : > { %v2839_v29 = vrot.slane %v2823_v19, %v7307_v45  ;;  %v2782_v31 = vcombine.high %v2774_v1, %v2774_v1  ;;  %v2831_v34 = vcombine.high %v2823_v19, %v2823_v19 }
 0x373   : > { %8666 = vst [vmem:[#allocation60_spill] sm:$0xff] %v7336_v30 }
 0x374   : > { %2673 = vbcast.lane.b32.xlu1 %v7289_v33, 288  ;;  %v7339_v36 = vrot.slane %v2839_v29, %v7041_v9  ;;  %v7355_v15 = vrot.slane %v2831_v34, %v7307_v45  ;;  %v7369_v34 = vrot.slane %v7254_v3, %v7113_v28 }
 0x376   : > { %8667 = vst [vmem:[#allocation61_spill] sm:$0xff] %v7369_v34 }
 0x378   : > { %v3850_v38 = vpop.f32.mrf.mxu0  ;;  %2681 = vbcast.lane.b32.xlu1 %v7289_v33, 304 }
 0x379   : > { %v4085_v39 = vpop.f32.mrf.mxu1  ;;  %v3851_v17 = vadd.f32 %v3850_v38, %v3771_v41  ;;  %v7343_v38 = vrot.slane %v7327_v24, %v7041_v9  ;;  %v2866_v41 = vld [vmem:[%s6316_s11 + $0x8] sm:$0xff] }
 0x37a   : > { %v5117_v42 = vpop.f32.mrf.mxu0 }
 0x37b   : > { %v5150_v6 = vpop.f32.mrf.mxu1  ;;  %v3928_v48 = vadd.f32 %v3927_v14, %v3851_v17  ;;  %v7323_v14 = vpop.permute.xlu0 %2346  ;;  %v3066_v42 = vld [vmem:[%s6313_s9 + $0x8] sm:$0xff]  ;;  %v2898_v17 = vmul.f32 %v2866_v41, %v7213_v53  ;;  %v7373_v41 = vrot.slane %v7355_v15, %v7041_v9 }
 0x37c   : > { %2693 = vbcast.lane.b32.xlu1 %v7301_v20, 288  ;;  %v7352_v6 = vrot.slane %v2782_v31, %v7307_v45 }
 0x380   : > { %2701 = vbcast.lane.b32.xlu1 %v7301_v20, 304 }
 0x381   : > { %v4010_v49 = vpop.f32.mrf.mxu0 }
 0x382   : > { %v4011_v51 = vadd.f32 %v4010_v49, %v3928_v48  ;;  %v3098_v48 = vmul.f32 %v3066_v42, %v7213_v53  ;;  %v7377_v42 = vrot.slane %v7352_v6, %v7041_v9 }
 0x383   : > { %v5139_v63 = vpop.f32.mrf.mxu0 }
 0x384   : > { %v4086_v21 = vadd.f32 %v4085_v39, %v4011_v51  ;;  %2713 = vbcast.lane.b32.xlu1 %v7314_v22, 288  ;;  %v7345_v39 = vpop.permute.xlu0 %2354  ;;  %v3068_v63 = vld [vmem:[%s6313_s9 + $0x18] sm:$0xff] }
 0x386   : > { %4090 = vrot.lane.b32.xlu0 %v4086_v21, %s5877_s5  ;;  %s5509_s5 = sshll.u32 %s5881_s27, 4  ;;  %s5510_s5 = int_to_ptr.vmem [resolvable:$false] %s5509_s5 }
 0x387   : > { %p5512_p9 = scmp.lt.s32.totalorder %s4193_s2, %s5510_s5 }
 0x388   : > { %2721 = vbcast.lane.b32.xlu1 %v7314_v22, 304  ;;  %v7364_v21 = vpop.permute.xlu0 %2365  ;;  %v2891_v22 = vld [vmem:[%s6316_s11 + $0xd0] sm:$0xff] }
 0x38a   : > { %2460 = vbcast.lane.b32.xlu0 %v7197_v47, 256 }
 0x38c   : > { %2733 = vbcast.lane.b32.xlu1 %v7336_v30, 288 }
 0x38e   : > { %2468 = vbcast.lane.b32.xlu0 %v7197_v47, 272  ;;  %v2465_v26 = vpop.permute.xlu1 %2464  ;;  %v2868_v47 = vld [vmem:[%s6316_s11 + $0x18] sm:$0xff] }
 0x38f   : > { %v2970_v49 = vmul.f32 %v7339_v36, %v2465_v26  ;;  %v3170_v51 = vmul.f32 %v7343_v38, %v2465_v26  ;;  %v2900_v26 = vmul.f32 %v2868_v47, %v7220_v55  ;;  %v2812_v47 = vcombine.high %v7327_v24, %v7327_v24  ;;  %v2872_v24 = vld [vmem:[%s6316_s11 + $0x38] sm:$0xff] }
 0x390   : > { %2741 = vbcast.lane.b32.xlu1 %v7336_v30, 304 }
 0x391   : > { %v3002_v1 = vadd.f32 %v2970_v49, %v2898_v17  ;;  %v3202_v19 = vadd.f32 %v3170_v51, %v3098_v48  ;;  %v3100_v17 = vmul.f32 %v3068_v63, %v7220_v55  ;;  %v2870_v49 = vld [vmem:[%s6316_s11 + $0x28] sm:$0xff] }
 0x392   : > { %2479 = vbcast.lane.b32.xlu0 %v7205_v50, 256  ;;  %v2473_v31 = vpop.permute.xlu1 %2472  ;;  %v3070_v51 = vld [vmem:[%s6313_s9 + $0x28] sm:$0xff]  ;;  %v2902_v63 = vmul.f32 %v2870_v49, %v7226_v57  ;;  %v7411_v49 = vrot.slane %v2812_v47, %v7041_v9 }
 0x393   : > { %3034 = vst.msk [vmem:[%s6316_s11 + $0x8] sm:$0xff] %vm1281_vm1, %v3002_v1  ;;  %3234 = vst.msk [vmem:[%s6313_s9 + $0x8] sm:$0xff] %vm1281_vm1, %v3202_v19  ;;  %v2972_v28 = vmul.f32 %v7339_v36, %v2473_v31  ;;  %v3172_v48 = vmul.f32 %v7343_v38, %v2473_v31  ;;  %v2861_v19 = vcombine.high %v2839_v29, %v2839_v29 }
 0x394   : > { %2753 = vbcast.lane.b32.xlu1 %v7369_v34, 288  ;;  %v3102_v31 = vmul.f32 %v3070_v51, %v7226_v57  ;;  %v2904_v51 = vmul.f32 %v2872_v24, %v7230_v58  ;;  %v2816_v57 = vcombine.high %v6797_v35, %v6797_v35 }
 0x395   : > { %v3004_v53 = vadd.f32 %v2972_v28, %v2900_v26  ;;  %v3204_v11 = vadd.f32 %v3172_v48, %v3100_v17  ;;  %v7408_v48 = vrot.slane %v2861_v19, %v7041_v9  ;;  %v2873_v19 = vld [vmem:[%s6316_s11 + $0x40] sm:$0xff] }
 0x396   : > { %2487 = vbcast.lane.b32.xlu0 %v7205_v50, 272  ;;  %v2484_v1 = vpop.permute.xlu1 %2483  ;;  %v7401_v50 = vpop.permute.xlu0 %2373 }
 0x397   : > { %3036 = vst.msk [vmem:[%s6316_s11 + $0x18] sm:$0xff] %vm1281_vm1, %v3004_v53  ;;  %3236 = vst.msk [vmem:[%s6313_s9 + $0x18] sm:$0xff] %vm1281_vm1, %v3204_v11  ;;  %v2974_v26 = vmul.f32 %v7373_v41, %v2484_v1  ;;  %v3174_v17 = vmul.f32 %v7377_v42, %v2484_v1  ;;  %v3072_v53 = vld [vmem:[%s6313_s9 + $0x38] sm:$0xff] }
 0x398   : > { %2761 = vbcast.lane.b32.xlu1 %v7369_v34, 304  ;;  %v3104_v1 = vmul.f32 %v3072_v53, %v7230_v58  ;;  %v2905_v53 = vmul.f32 %v2873_v19, %v7323_v14  ;;  %v5336_v58 = vld [vmem:[%s6305_s17] sm:$0xff]  ;;  %s8675_s17 = sld [smem:[#allocation41_spill]] }
 0x399   : > { %v3006_v29 = vadd.f32 %v2974_v26, %v2902_v63  ;;  %v3206_v28 = vadd.f32 %v3174_v17, %v3102_v31  ;;  %v3073_v26 = vld [vmem:[%s6313_s9 + $0x40] sm:$0xff] }
 0x39a   : > { %2502 = vbcast.lane.b32.xlu0 %v7210_v52, 264  ;;  %v2492_v11 = vpop.permute.xlu1 %2491 }
 0x39b   : > { %3038 = vst.msk [vmem:[%s6316_s11 + $0x28] sm:$0xff] %vm1281_vm1, %v3006_v29  ;;  %3238 = vst.msk [vmem:[%s6313_s9 + $0x28] sm:$0xff] %vm1281_vm1, %v3206_v28  ;;  %v2976_v63 = vmul.f32 %v7373_v41, %v2492_v11  ;;  %v3176_v31 = vmul.f32 %v7377_v42, %v2492_v11  ;;  %v7425_v29 = vpop.permute.xlu0 %2384  ;;  %v3105_v28 = vmul.f32 %v3073_v26, %v7323_v14 }
 0x39c   : > { %3592 = vrot.lane.b32.xlu1 %v7254_v3, %s5878_s26  ;;  %v2767_v11 = vcombine.high %v5336_v58, %v5336_v58  ;;  %v2863_v58 = vcombine.high %v7355_v15, %v7355_v15  ;;  %s5511_s26 = scalar_lea.vmem %s5510_s5, 256 }
 0x39d   : > { %v3008_v47 = vadd.f32 %v2976_v63, %v2904_v51  ;;  %v3208_v17 = vadd.f32 %v3176_v31, %v3104_v1  ;;  %v2875_v51 = vld [vmem:[%s6316_s11 + $0x50] sm:$0xff]  ;;  %v2814_v63 = vcombine.high %v7352_v6, %v7352_v6  ;;  %p5513_p13 = scmp.lt.s32.totalorder %s5511_s26, %s5505_s18 }
 0x39e   : > { %2510 = vbcast.lane.b32.xlu0 %v7210_v52, 280  ;;  %v2499_v24 = vpop.permute.xlu1 %2498  ;;  %v3075_v1 = vld [vmem:[%s6313_s9 + $0x50] sm:$0xff]  ;;  %v2907_v26 = vmul.f32 %v2875_v51, %v7345_v39  ;;  %s8005_s19 = sshll.u32 %s8675_s17, 7 }
 0x39f   : > { %3040 = vst.msk [vmem:[%s6316_s11 + $0x38] sm:$0xff] %vm1281_vm1, %v3008_v47  ;;  %3240 = vst.msk [vmem:[%s6313_s9 + $0x38] sm:$0xff] %vm1281_vm1, %v3208_v17  ;;  %v2977_v3 = vmul.f32 %v7408_v48, %v2499_v24  ;;  %v3177_v52 = vmul.f32 %v7411_v49, %v2499_v24  ;;  %v3107_v47 = vmul.f32 %v3075_v1, %v7345_v39  ;;  %s4190_s4 = scalar_lea.hbm %s8678_s23, %s8005_s19  ;;  %p5514_p8 = por %p5513_p13, %p5512_p9 }
 0x3a0   : > { %v2781_v17 = vrot.slane %v2767_v11, %v7307_v45  ;;  %v2830_v24 = vrot.slane %v2816_v57, %v7307_v45  ;;  %v7462_v11 = vpop.permute.xlu0 %2392  ;;  %v2877_v57 = vld [vmem:[%s6316_s11 + $0x60] sm:$0xff] }
 0x3a1   : > { %v3009_v35 = vadd.f32 %v2977_v3, %v2905_v53  ;;  %v3209_v31 = vadd.f32 %v3177_v52, %v3105_v28  ;;  %v7457_v53 = vrot.slane %v2863_v58, %v7041_v9  ;;  %v7460_v28 = vrot.slane %v2814_v63, %v7041_v9  ;;  %v3077_v3 = vld [vmem:[%s6313_s9 + $0x60] sm:$0xff]  ;;  %p5515_p3 = pnand %p5514_p8, %p5508_p4 }
 0x3a2   : > { %2521 = vbcast.lane.b32.xlu0 %v7217_v54, 264  ;;  %v2507_v19 = vpop.permute.xlu1 %2506  ;;  %v7471_v58 = vrot.slane %v2830_v24, %v7307_v45  ;;  %v2909_v63 = vmul.f32 %v2877_v57, %v7364_v21 }
 0x3a3   : > { %3041 = vst.msk [vmem:[%s6316_s11 + $0x40] sm:$0xff] %vm1281_vm1, %v3009_v35  ;;  %3241 = vst.msk [vmem:[%s6313_s9 + $0x40] sm:$0xff] %vm1281_vm1, %v3209_v31  ;;  %v2979_v6 = vmul.f32 %v7408_v48, %v2507_v19  ;;  %v3179_v15 = vmul.f32 %v7411_v49, %v2507_v19  ;;  %v7468_v35 = vrot.slane %v2781_v17, %v7307_v45 }
 0x3a4   : > { %v3109_v19 = vmul.f32 %v3077_v3, %v7364_v21  ;;  %v7483_v55 = vpop.permute.xlu0 %2403  ;;  %v7490_v3 = vrot.slane %v7471_v58, %v7041_v9 }
 0x3a5   : > { %v3011_v52 = vadd.f32 %v2979_v6, %v2907_v26  ;;  %v3211_v51 = vadd.f32 %v3179_v15, %v3107_v47  ;;  %v2879_v26 = vld [vmem:[%s6316_s11 + $0x70] sm:$0xff] }
 0x3a6   : > { %2529 = vbcast.lane.b32.xlu0 %v7217_v54, 280  ;;  %v2518_v1 = vpop.permute.xlu1 %2517  ;;  %v3079_v47 = vld [vmem:[%s6313_s9 + $0x70] sm:$0xff]  ;;  %v2911_v57 = vmul.f32 %v2879_v26, %v7401_v50  ;;  %v2783_v26 = vcombine.high %v2781_v17, %v2781_v17 }
 0x3a7   : > { %3043 = vst.msk [vmem:[%s6316_s11 + $0x50] sm:$0xff] %vm1281_vm1, %v3011_v52  ;;  %3243 = vst.msk [vmem:[%s6313_s9 + $0x50] sm:$0xff] %vm1281_vm1, %v3211_v51  ;;  %v2981_v31 = vmul.f32 %v7457_v53, %v2518_v1  ;;  %v3181_v54 = vmul.f32 %v7460_v28, %v2518_v1  ;;  %v3111_v51 = vmul.f32 %v3079_v47, %v7401_v50 }
 0x3a8   : > { %v7494_v1 = vrot.slane %v7468_v35, %v7041_v9  ;;  %v2832_v47 = vcombine.high %v2830_v24, %v2830_v24  ;;  %v2883_v24 = vld [vmem:[%s6316_s11 + $0x90] sm:$0xff] }
 0x3a9   : > { %v3013_v6 = vadd.f32 %v2981_v31, %v2909_v63  ;;  %v3213_v15 = vadd.f32 %v3181_v54, %v3109_v19  ;;  %v2881_v19 = vld [vmem:[%s6316_s11 + $0x80] sm:$0xff] }
 0x3aa   : > { %2540 = vbcast.lane.b32.xlu0 %v7224_v56, 264  ;;  %v2526_v52 = vpop.permute.xlu1 %2525  ;;  %v3081_v54 = vld [vmem:[%s6313_s9 + $0x80] sm:$0xff]  ;;  %v2913_v44 = vmul.f32 %v2881_v19, %v7425_v29 }
 0x3ab   : > { %3045 = vst.msk [vmem:[%s6316_s11 + $0x60] sm:$0xff] %vm1281_vm1, %v3013_v6  ;;  %3245 = vst.msk [vmem:[%s6313_s9 + $0x60] sm:$0xff] %vm1281_vm1, %v3213_v15  ;;  %v2983_v63 = vmul.f32 %v7457_v53, %v2526_v52  ;;  %v3183_v31 = vmul.f32 %v7460_v28, %v2526_v52  ;;  %v3113_v6 = vmul.f32 %v3081_v54, %v7425_v29  ;;  %v3083_v52 = vld [vmem:[%s6313_s9 + $0x90] sm:$0xff] }
 0x3ad   : > { %v3015_v34 = vadd.f32 %v2983_v63, %v2911_v57  ;;  %v3215_v30 = vadd.f32 %v3183_v31, %v3111_v51  ;;  %v7519_v57 = vrot.slane %v2832_v47, %v7307_v45  ;;  %v7521_v51 = vpop.permute.xlu0 %2411  ;;  %v2915_v31 = vmul.f32 %v2883_v24, %v7462_v11 }
 0x3ae   : > { %2548 = vbcast.lane.b32.xlu0 %v7224_v56, 280  ;;  %v2537_v4 = vpop.permute.xlu1 %2536  ;;  %v7516_v56 = vrot.slane %v2783_v26, %v7307_v45  ;;  %v3085_v26 = vld [vmem:[%s6313_s9 + $0xa0] sm:$0xff] }
 0x3af   : > { %3047 = vst.msk [vmem:[%s6316_s11 + $0x70] sm:$0xff] %vm1281_vm1, %v3015_v34  ;;  %3247 = vst.msk [vmem:[%s6313_s9 + $0x70] sm:$0xff] %vm1281_vm1, %v3215_v30  ;;  %v2985_v15 = vmul.f32 %v7490_v3, %v2537_v4  ;;  %v3185_v17 = vmul.f32 %v7494_v1, %v2537_v4  ;;  %v3115_v4 = vmul.f32 %v3083_v52, %v7462_v11 }
 0x3b0   : > { %v7535_v54 = vrot.slane %v7519_v57, %v7041_v9  ;;  %v7540_v47 = vrot.slane %v7516_v56, %v7041_v9 }
 0x3b1   : > { %v3017_v34 = vadd.f32 %v2985_v15, %v2913_v44  ;;  %v3217_v63 = vadd.f32 %v3185_v17, %v3113_v6  ;;  %v2885_v44 = vld [vmem:[%s6316_s11 + $0xa0] sm:$0xff]  ;;  %v7542_v17 = vpop.permute.xlu0 %2422 }
 0x3b2   : > { %2559 = vbcast.lane.b32.xlu0 %v7233_v59, 264  ;;  %v2545_v30 = vpop.permute.xlu1 %2544  ;;  %v2917_v52 = vmul.f32 %v2885_v44, %v7483_v55 }
 0x3b3   : > { %3049 = vst.msk [vmem:[%s6316_s11 + $0x80] sm:$0xff] %vm1281_vm1, %v3017_v34  ;;  %3249 = vst.msk [vmem:[%s6313_s9 + $0x80] sm:$0xff] %vm1281_vm1, %v3217_v63  ;;  %v2987_v45 = vmul.f32 %v7490_v3, %v2545_v30  ;;  %v3187_v19 = vmul.f32 %v7494_v1, %v2545_v30  ;;  %v3117_v34 = vmul.f32 %v3085_v26, %v7483_v55 }
 0x3b5   : > { %v3019_v6 = vadd.f32 %v2987_v45, %v2915_v31  ;;  %v3219_v15 = vadd.f32 %v3187_v19, %v3115_v4  ;;  %v2887_v31 = vld [vmem:[%s6316_s11 + $0xb0] sm:$0xff]  ;;  %v2862_v45 = vcombine.high %v7471_v58, %v7471_v58  ;;  %v2889_v58 = vld [vmem:[%s6316_s11 + $0xc0] sm:$0xff] }
 0x3b6   : > { %2567 = vbcast.lane.b32.xlu0 %v7233_v59, 280  ;;  %v2556_v24 = vpop.permute.xlu1 %2555  ;;  %v3087_v4 = vld [vmem:[%s6313_s9 + $0xb0] sm:$0xff]  ;;  %v2813_v59 = vcombine.high %v7468_v35, %v7468_v35 }
 0x3b7   : > { %3051 = vst.msk [vmem:[%s6316_s11 + $0x90] sm:$0xff] %vm1281_vm1, %v3019_v6  ;;  %3251 = vst.msk [vmem:[%s6313_s9 + $0x90] sm:$0xff] %vm1281_vm1, %v3219_v15  ;;  %v2989_v63 = vmul.f32 %v7535_v54, %v2556_v24  ;;  %v3189_v30 = vmul.f32 %v7540_v47, %v2556_v24  ;;  %v2919_v6 = vmul.f32 %v2887_v31, %v7521_v51 }
 0x3b8   : > { %v3119_v15 = vmul.f32 %v3087_v4, %v7521_v51 }
 0x3b9   : > { %v3021_v19 = vadd.f32 %v2989_v63, %v2917_v52  ;;  %v3221_v44 = vadd.f32 %v3189_v30, %v3117_v34  ;;  %v7570_v52 = vrot.slane %v2862_v45, %v7041_v9  ;;  %v3089_v34 = vld [vmem:[%s6313_s9 + $0xc0] sm:$0xff]  ;;  %v7574_v63 = vrot.slane %v2813_v59, %v7041_v9  ;;  %v7576_v30 = vpop.permute.xlu0 %2430 }
 0x3ba   : > { %2578 = vbcast.lane.b32.xlu0 %v7240_v61, 264  ;;  %v2564_v26 = vpop.permute.xlu1 %2563 }
 0x3bb   : > { %3053 = vst.msk [vmem:[%s6316_s11 + $0xa0] sm:$0xff] %vm1281_vm1, %v3021_v19  ;;  %3253 = vst.msk [vmem:[%s6313_s9 + $0xa0] sm:$0xff] %vm1281_vm1, %v3221_v44  ;;  %v2991_v35 = vmul.f32 %v7535_v54, %v2564_v26  ;;  %v3191_v24 = vmul.f32 %v7540_v47, %v2564_v26  ;;  %v2921_v44 = vmul.f32 %v2889_v58, %v7542_v17 }
 0x3bc   : > { %v3121_v26 = vmul.f32 %v3089_v34, %v7542_v17 }
 0x3bd   : > { %v3023_v31 = vadd.f32 %v2991_v35, %v2919_v6  ;;  %v3223_v4 = vadd.f32 %v3191_v24, %v3119_v15  ;;  %v3091_v6 = vld [vmem:[%s6313_s9 + $0xd0] sm:$0xff]  ;;  %v2864_v15 = vcombine.high %v7519_v57, %v7519_v57  ;;  %v7593_v58 = vpop.permute.xlu0 %2441 }
 0x3be   : > { %2586 = vbcast.lane.b32.xlu0 %v7240_v61, 280  ;;  %v2575_v19 = vpop.permute.xlu1 %2574  ;;  %v2815_v61 = vcombine.high %v7516_v56, %v7516_v56 }
 0x3bf   : > { %3055 = vst.msk [vmem:[%s6316_s11 + $0xb0] sm:$0xff] %vm1281_vm1, %v3023_v31  ;;  %3255 = vst.msk [vmem:[%s6313_s9 + $0xb0] sm:$0xff] %vm1281_vm1, %v3223_v4  ;;  %v2993_v59 = vmul.f32 %v7570_v52, %v2575_v19  ;;  %v3193_v45 = vmul.f32 %v7574_v63, %v2575_v19  ;;  %v2923_v31 = vmul.f32 %v2891_v22, %v7576_v30  ;;  %v3093_v22 = vld [vmem:[%s6313_s9 + $0xe0] sm:$0xff] }
 0x3c0   : > { %v3123_v4 = vmul.f32 %v3091_v6, %v7576_v30  ;;  %v7605_v19 = vrot.slane %v2864_v15, %v7041_v9 }
 0x3c1   : > { %v3025_v35 = vadd.f32 %v2993_v59, %v2921_v44  ;;  %v3225_v24 = vadd.f32 %v3193_v45, %v3121_v26  ;;  %v7608_v44 = vrot.slane %v2815_v61, %v7041_v9  ;;  %v2893_v26 = vld [vmem:[%s6316_s11 + $0xe0] sm:$0xff]  ;;  %v3125_v9 = vmul.f32 %v3093_v22, %v7593_v58 }
 0x3c2   : > { %2597 = vbcast.lane.b32.xlu0 %v7249_v0, 264  ;;  %v2583_v34 = vpop.permute.xlu1 %2582  ;;  %v2925_v15 = vmul.f32 %v2893_v26, %v7593_v58 }
 0x3c3   : > { %3057 = vst.msk [vmem:[%s6316_s11 + $0xc0] sm:$0xff] %vm1281_vm1, %v3025_v35  ;;  %3257 = vst.msk [vmem:[%s6313_s9 + $0xc0] sm:$0xff] %vm1281_vm1, %v3225_v24  ;;  %v2995_v56 = vmul.f32 %v7570_v52, %v2583_v34  ;;  %v3195_v57 = vmul.f32 %v7574_v63, %v2583_v34  ;;  %v7621_v24 = vpop.permute.xlu0 %2449  ;;  %v2895_v34 = vld [vmem:[%s6316_s11 + $0xf0] sm:$0xff] }
 0x3c5   : > { %v3027_v59 = vadd.f32 %v2995_v56, %v2923_v31  ;;  %v3227_v45 = vadd.f32 %v3195_v57, %v3123_v4  ;;  %v2927_v57 = vmul.f32 %v2895_v34, %v7621_v24 }
 0x3c6   : > { %2605 = vbcast.lane.b32.xlu0 %v7249_v0, 280  ;;  %v2594_v6 = vpop.permute.xlu1 %2593  ;;  %v3095_v0 = vld [vmem:[%s6313_s9 + $0xf0] sm:$0xff] }
 0x3c7   : > { %3059 = vst.msk [vmem:[%s6316_s11 + $0xd0] sm:$0xff] %vm1281_vm1, %v3027_v59  ;;  %3259 = vst.msk [vmem:[%s6313_s9 + $0xd0] sm:$0xff] %vm1281_vm1, %v3227_v45  ;;  %v2997_v35 = vmul.f32 %v7605_v19, %v2594_v6  ;;  %v3197_v61 = vmul.f32 %v7608_v44, %v2594_v6  ;;  %v3127_v22 = vmul.f32 %v3095_v0, %v7621_v24  ;;  %v3269_v45 = vld [vmem:[%s6325_s25] sm:$0xff] }
 0x3c8   : > { %v3429_v6 = vld [vmem:[%s6322_s16] sm:$0xff] }
 0x3c9   : > { %v3029_v31 = vadd.f32 %v2997_v35, %v2925_v15  ;;  %v3229_v4 = vadd.f32 %v3197_v61, %v3125_v9  ;;  %v3301_v61 = vmul.f32 %v3269_v45, %v7282_v27  ;;  %v3461_v0 = vmul.f32 %v3429_v6, %v7282_v27 }
 0x3ca   : > { %2617 = vbcast.lane.b32.xlu0 %v7261_v10, 296  ;;  %v2602_v56 = vpop.permute.xlu1 %2601 }
 0x3cb   : > { %3061 = vst.msk [vmem:[%s6316_s11 + $0xe0] sm:$0xff] %vm1281_vm1, %v3029_v31  ;;  %3261 = vst.msk [vmem:[%s6313_s9 + $0xe0] sm:$0xff] %vm1281_vm1, %v3229_v4  ;;  %v2999_v26 = vmul.f32 %v7605_v19, %v2602_v56  ;;  %v3199_v59 = vmul.f32 %v7608_v44, %v2602_v56  ;;  %v3271_v4 = vld [vmem:[%s6325_s25 + $0x10] sm:$0xff] }
 0x3cc   : > { %v3431_v56 = vld [vmem:[%s6322_s16 + $0x10] sm:$0xff] }
 0x3cd   : > { %v3031_v15 = vadd.f32 %v2999_v26, %v2927_v57  ;;  %v3231_v35 = vadd.f32 %v3199_v59, %v3127_v22  ;;  %v3303_v22 = vmul.f32 %v3271_v4, %v7291_v18  ;;  %v3463_v45 = vmul.f32 %v3431_v56, %v7291_v18 }
 0x3ce   : > { %2625 = vbcast.lane.b32.xlu0 %v7261_v10, 312  ;;  %v2614_v9 = vpop.permute.xlu1 %2613 }
 0x3cf   : > { %3063 = vst.msk [vmem:[%s6316_s11 + $0xf0] sm:$0xff] %vm1281_vm1, %v3031_v15  ;;  %3263 = vst.msk [vmem:[%s6313_s9 + $0xf0] sm:$0xff] %vm1281_vm1, %v3231_v35  ;;  %v3333_v34 = vmul.f32 %v7339_v36, %v2614_v9  ;;  %v3493_v31 = vmul.f32 %v7343_v38, %v2614_v9  ;;  %v3273_v15 = vld [vmem:[%s6325_s25 + $0x20] sm:$0xff] }
 0x3d0   : > { %v3433_v35 = vld [vmem:[%s6322_s16 + $0x20] sm:$0xff] }
 0x3d1   : > { %v3365_v10 = vadd.f32 %v3333_v34, %v3301_v61  ;;  %v3525_v57 = vadd.f32 %v3493_v31, %v3461_v0  ;;  %v3305_v0 = vmul.f32 %v3273_v15, %v7297_v40  ;;  %v3465_v4 = vmul.f32 %v3433_v35, %v7297_v40 }
 0x3d2   : > { %v2622_v26 = vpop.permute.xlu1 %2621 }
 0x3d3   : > { %3397 = vst.msk [vmem:[%s6325_s25] sm:$0xff] %vm1281_vm1, %v3365_v10  ;;  %3557 = vst.msk [vmem:[%s6322_s16] sm:$0xff] %vm1281_vm1, %v3525_v57  ;;  %v3335_v59 = vmul.f32 %v7339_v36, %v2622_v26  ;;  %v3495_v6 = vmul.f32 %v7343_v38, %v2622_v26  ;;  %v3275_v10 = vld [vmem:[%s6325_s25 + $0x30] sm:$0xff] }
 0x3d4   : > { %v3435_v57 = vld [vmem:[%s6322_s16 + $0x30] sm:$0xff] }
 0x3d5   : > { %v3367_v9 = vadd.f32 %v3335_v59, %v3303_v22  ;;  %v3527_v61 = vadd.f32 %v3495_v6, %v3463_v45  ;;  %v3307_v45 = vmul.f32 %v3275_v10, %v7309_v46  ;;  %v3467_v15 = vmul.f32 %v3435_v57, %v7309_v46 }
 0x3d6   : > { %v2634_v34 = vpop.permute.xlu1 %2633 }
 0x3d7   : > { %3399 = vst.msk [vmem:[%s6325_s25 + $0x10] sm:$0xff] %vm1281_vm1, %v3367_v9  ;;  %3559 = vst.msk [vmem:[%s6322_s16 + $0x10] sm:$0xff] %vm1281_vm1, %v3527_v61  ;;  %v3337_v31 = vmul.f32 %v7373_v41, %v2634_v34  ;;  %v3497_v56 = vmul.f32 %v7377_v42, %v2634_v34  ;;  %v3277_v9 = vld [vmem:[%s6325_s25 + $0x40] sm:$0xff] }
 0x3d8   : > { %v3437_v61 = vld [vmem:[%s6322_s16 + $0x40] sm:$0xff] }
 0x3d9   : > { %v3369_v26 = vadd.f32 %v3337_v31, %v3305_v0  ;;  %v3529_v22 = vadd.f32 %v3497_v56, %v3465_v4  ;;  %v3309_v4 = vmul.f32 %v3277_v9, %v7323_v14  ;;  %v3469_v10 = vmul.f32 %v3437_v61, %v7323_v14  ;;  %v3281_v61 = vld [vmem:[%s6325_s25 + $0x60] sm:$0xff] }
 0x3da   : > { %v2642_v59 = vpop.permute.xlu1 %2641 }
 0x3db   : > { %3401 = vst.msk [vmem:[%s6325_s25 + $0x20] sm:$0xff] %vm1281_vm1, %v3369_v26  ;;  %3561 = vst.msk [vmem:[%s6322_s16 + $0x20] sm:$0xff] %vm1281_vm1, %v3529_v22  ;;  %v3339_v6 = vmul.f32 %v7373_v41, %v2642_v59  ;;  %v3499_v35 = vmul.f32 %v7377_v42, %v2642_v59  ;;  %v3279_v26 = vld [vmem:[%s6325_s25 + $0x50] sm:$0xff] }
 0x3dc   : > { %v3439_v22 = vld [vmem:[%s6322_s16 + $0x50] sm:$0xff] }
 0x3dd   : > { %v3371_v34 = vadd.f32 %v3339_v6, %v3307_v45  ;;  %v3531_v0 = vadd.f32 %v3499_v35, %v3467_v15  ;;  %v3311_v15 = vmul.f32 %v3279_v26, %v7345_v39  ;;  %v3471_v14 = vmul.f32 %v3439_v22, %v7345_v39  ;;  %v3283_v26 = vld [vmem:[%s6325_s25 + $0x70] sm:$0xff] }
 0x3de   : > { %v2654_v31 = vpop.permute.xlu1 %2653  ;;  %v3443_v22 = vld [vmem:[%s6322_s16 + $0x70] sm:$0xff] }
 0x3df   : > { %3403 = vst.msk [vmem:[%s6325_s25 + $0x30] sm:$0xff] %vm1281_vm1, %v3371_v34  ;;  %3563 = vst.msk [vmem:[%s6322_s16 + $0x30] sm:$0xff] %vm1281_vm1, %v3531_v0  ;;  %v3341_v56 = vmul.f32 %v7408_v48, %v2654_v31  ;;  %v3501_v57 = vmul.f32 %v7411_v49, %v2654_v31  ;;  %v3441_v34 = vld [vmem:[%s6322_s16 + $0x60] sm:$0xff] }
 0x3e0   : > { %v3473_v39 = vmul.f32 %v3441_v34, %v7364_v21 }
 0x3e1   : > { %v3373_v59 = vadd.f32 %v3341_v56, %v3309_v4  ;;  %v3533_v45 = vadd.f32 %v3501_v57, %v3469_v10  ;;  %v3313_v56 = vmul.f32 %v3281_v61, %v7364_v21  ;;  %v3475_v21 = vmul.f32 %v3443_v22, %v7401_v50  ;;  %v3445_v61 = vld [vmem:[%s6322_s16 + $0x80] sm:$0xff] }
 0x3e2   : > { %v2662_v6 = vpop.permute.xlu1 %2661 }
 0x3e3   : > { %3405 = vst.msk [vmem:[%s6325_s25 + $0x40] sm:$0xff] %vm1281_vm1, %v3373_v59  ;;  %3565 = vst.msk [vmem:[%s6322_s16 + $0x40] sm:$0xff] %vm1281_vm1, %v3533_v45  ;;  %v3343_v35 = vmul.f32 %v7408_v48, %v2662_v6  ;;  %v3503_v9 = vmul.f32 %v7411_v49, %v2662_v6 }
 0x3e5   : > { %v3375_v0 = vadd.f32 %v3343_v35, %v3311_v15  ;;  %v3535_v31 = vadd.f32 %v3503_v9, %v3471_v14  ;;  %v3315_v15 = vmul.f32 %v3283_v26, %v7401_v50  ;;  %v3285_v9 = vld [vmem:[%s6325_s25 + $0x80] sm:$0xff]  ;;  %v3477_v50 = vmul.f32 %v3445_v61, %v7425_v29 }
 0x3e6   : > { %v2674_v4 = vpop.permute.xlu1 %2673 }
 0x3e7   : > { %3407 = vst.msk [vmem:[%s6325_s25 + $0x50] sm:$0xff] %vm1281_vm1, %v3375_v0  ;;  %3567 = vst.msk [vmem:[%s6322_s16 + $0x50] sm:$0xff] %vm1281_vm1, %v3535_v31  ;;  %v3345_v10 = vmul.f32 %v7457_v53, %v2674_v4  ;;  %v3505_v57 = vmul.f32 %v7460_v28, %v2674_v4  ;;  %v3317_v4 = vmul.f32 %v3285_v9, %v7425_v29 }
 0x3e9   : > { %v3377_v59 = vadd.f32 %v3345_v10, %v3313_v56  ;;  %v3537_v45 = vadd.f32 %v3505_v57, %v3473_v39  ;;  %v3287_v39 = vld [vmem:[%s6325_s25 + $0x90] sm:$0xff] }
 0x3ea   : > { %v2682_v6 = vpop.permute.xlu1 %2681  ;;  %v3447_v57 = vld [vmem:[%s6322_s16 + $0x90] sm:$0xff] }
 0x3eb   : > { %3409 = vst.msk [vmem:[%s6325_s25 + $0x60] sm:$0xff] %vm1281_vm1, %v3377_v59  ;;  %3569 = vst.msk [vmem:[%s6322_s16 + $0x60] sm:$0xff] %vm1281_vm1, %v3537_v45  ;;  %v3347_v35 = vmul.f32 %v7457_v53, %v2682_v6  ;;  %v3507_v14 = vmul.f32 %v7460_v28, %v2682_v6  ;;  %v3319_v45 = vmul.f32 %v3287_v39, %v7462_v11  ;;  %v2865_v39 = vld [vmem:[%s6316_s11] sm:$0xff] }
 0x3ed   : > { %v3379_v34 = vadd.f32 %v3347_v35, %v3315_v15  ;;  %v3539_v0 = vadd.f32 %v3507_v14, %v3475_v21  ;;  %v3479_v15 = vmul.f32 %v3447_v57, %v7462_v11  ;;  %v3289_v35 = vld [vmem:[%s6325_s25 + $0xa0] sm:$0xff]  ;;  %v3291_v57 = vld [vmem:[%s6325_s25 + $0xb0] sm:$0xff] }
 0x3ee   : > { %v2694_v31 = vpop.permute.xlu1 %2693  ;;  %v3449_v21 = vld [vmem:[%s6322_s16 + $0xa0] sm:$0xff] }
 0x3ef   : > { %3411 = vst.msk [vmem:[%s6325_s25 + $0x70] sm:$0xff] %vm1281_vm1, %v3379_v34  ;;  %3571 = vst.msk [vmem:[%s6322_s16 + $0x70] sm:$0xff] %vm1281_vm1, %v3539_v0  ;;  %v3349_v56 = vmul.f32 %v7490_v3, %v2694_v31  ;;  %v3509_v10 = vmul.f32 %v7494_v1, %v2694_v31  ;;  %v3321_v34 = vmul.f32 %v3289_v35, %v7483_v55 }
 0x3f0   : > { %v3481_v0 = vmul.f32 %v3449_v21, %v7483_v55  ;;  %v3293_v21 = vld [vmem:[%s6325_s25 + $0xc0] sm:$0xff] }
 0x3f1   : > { %v3381_v26 = vadd.f32 %v3349_v56, %v3317_v4  ;;  %v3541_v22 = vadd.f32 %v3509_v10, %v3477_v50 }
 0x3f2   : > { %v2702_v59 = vpop.permute.xlu1 %2701 }
 0x3f3   : > { %3413 = vst.msk [vmem:[%s6325_s25 + $0x80] sm:$0xff] %vm1281_vm1, %v3381_v26  ;;  %3573 = vst.msk [vmem:[%s6322_s16 + $0x80] sm:$0xff] %vm1281_vm1, %v3541_v22  ;;  %v3351_v6 = vmul.f32 %v7490_v3, %v2702_v59  ;;  %v3511_v29 = vmul.f32 %v7494_v1, %v2702_v59  ;;  %v3451_v26 = vld [vmem:[%s6322_s16 + $0xb0] sm:$0xff] }
 0x3f4   : > { %v3065_v22 = vld [vmem:[%s6313_s9] sm:$0xff]  ;;  %v3483_v35 = vmul.f32 %v3451_v26, %v7521_v51 }
 0x3f5   : > { %v3383_v14 = vadd.f32 %v3351_v6, %v3319_v45  ;;  %v3543_v9 = vadd.f32 %v3511_v29, %v3479_v15  ;;  %v2897_v6 = vmul.f32 %v2865_v39, %v7282_v27  ;;  %v3323_v29 = vmul.f32 %v3291_v57, %v7521_v51  ;;  %v3067_v51 = vld [vmem:[%s6313_s9 + $0x10] sm:$0xff]  ;;  %v3455_v39 = vld [vmem:[%s6322_s16 + $0xd0] sm:$0xff] }
 0x3f6   : > { %v2714_v61 = vpop.permute.xlu1 %2713 }
 0x3f7   : > { %3415 = vst.msk [vmem:[%s6325_s25 + $0x90] sm:$0xff] %vm1281_vm1, %v3383_v14  ;;  %3575 = vst.msk [vmem:[%s6322_s16 + $0x90] sm:$0xff] %vm1281_vm1, %v3543_v9  ;;  %v3353_v11 = vmul.f32 %v7535_v54, %v2714_v61  ;;  %v3513_v31 = vmul.f32 %v7540_v47, %v2714_v61  ;;  %v2867_v61 = vld [vmem:[%s6316_s11 + $0x10] sm:$0xff] }
 0x3f8   : > { %v4091_v4 = vpop.permute.xlu0 %4090  ;;  %v2899_v57 = vmul.f32 %v2867_v61, %v7291_v18 }
 0x3f9   : > { %v4093_v56 = vadd.f32 %v4091_v4, %v6976_v43  ;;  %v3385_v50 = vadd.f32 %v3353_v11, %v3321_v34  ;;  %v3545_v10 = vadd.f32 %v3513_v31, %v3481_v0  ;;  %v3453_v34 = vld [vmem:[%s6322_s16 + $0xc0] sm:$0xff] }
 0x3fa   : > { %v2722_v59 = vpop.permute.xlu1 %2721 }
 0x3fb   : > { %v7751_v45 = vadd.f32 %v7192_v13, %v4093_v56  ;;  %3417 = vst.msk [vmem:[%s6325_s25 + $0xa0] sm:$0xff] %vm1281_vm1, %v3385_v50  ;;  %3577 = vst.msk [vmem:[%s6322_s16 + $0xa0] sm:$0xff] %vm1281_vm1, %v3545_v10  ;;  %v3355_v43 = vmul.f32 %v7535_v54, %v2722_v59  ;;  %v3515_v55 = vmul.f32 %v7540_v47, %v2722_v59  ;;  %v3295_v10 = vld [vmem:[%s6325_s25 + $0xd0] sm:$0xff] }
 0x3fc   : > { %v2461_v15 = vpop.permute.xlu0 %2460  ;;  %v3097_v13 = vmul.f32 %v3065_v22, %v7282_v27  ;;  %v3325_v50 = vmul.f32 %v3293_v21, %v7542_v17  ;;  %v3485_v22 = vmul.f32 %v3453_v34, %v7542_v17 }
 0x3fd   : > { %5330 = vtanh.f32 %v7751_v45  ;;  %v2969_v14 = vmul.f32 %v7339_v36, %v2461_v15  ;;  %v3169_v9 = vmul.f32 %v7343_v38, %v2461_v15  ;;  %v3387_v11 = vadd.f32 %v3355_v43, %v3323_v29  ;;  %v2869_v29 = vld [vmem:[%s6316_s11 + $0x20] sm:$0xff] }
 0x3fe   : > { %v3547_v0 = vadd.f32 %v3515_v55, %v3483_v35  ;;  %v2734_v31 = vpop.permute.xlu1 %2733  ;;  %v3099_v43 = vmul.f32 %v3067_v51, %v7291_v18  ;;  %v3069_v35 = vld [vmem:[%s6313_s9 + $0x20] sm:$0xff]  ;;  %v2901_v51 = vmul.f32 %v2869_v29, %v7297_v40 }
 0x3ff   : > { %v3001_v4 = vadd.f32 %v2969_v14, %v2897_v6  ;;  %v3201_v56 = vadd.f32 %v3169_v9, %v3097_v13  ;;  %v3357_v27 = vmul.f32 %v7570_v52, %v2734_v31  ;;  %3419 = vst.msk [vmem:[%s6325_s25 + $0xb0] sm:$0xff] %vm1281_vm1, %v3387_v11  ;;  %v3517_v59 = vmul.f32 %v7574_v63, %v2734_v31  ;;  %v3297_v11 = vld [vmem:[%s6325_s25 + $0xe0] sm:$0xff] }
 0x400   : > { %3579 = vst.msk [vmem:[%s6322_s16 + $0xb0] sm:$0xff] %vm1281_vm1, %v3547_v0  ;;  %v2469_v26 = vpop.permute.xlu0 %2468  ;;  %v3327_v13 = vmul.f32 %v3295_v10, %v7576_v30  ;;  %v3487_v14 = vmul.f32 %v3455_v39, %v7576_v30  ;;  %v3457_v0 = vld [vmem:[%s6322_s16 + $0xe0] sm:$0xff]  ;;  %v3101_v31 = vmul.f32 %v3069_v35, %v7297_v40  ;;  %v3329_v40 = vmul.f32 %v3297_v11, %v7593_v58 }
 0x401   : > { %3033 = vst.msk [vmem:[%s6316_s11] sm:$0xff] %vm1281_vm1, %v3001_v4  ;;  %3233 = vst.msk [vmem:[%s6313_s9] sm:$0xff] %vm1281_vm1, %v3201_v56  ;;  %v2971_v55 = vmul.f32 %v7339_v36, %v2469_v26  ;;  %v3171_v6 = vmul.f32 %v7343_v38, %v2469_v26  ;;  %v3389_v15 = vadd.f32 %v3357_v27, %v3325_v50  ;;  %v2871_v10 = vld [vmem:[%s6316_s11 + $0x30] sm:$0xff] }
 0x402   : > { %v3549_v17 = vadd.f32 %v3517_v59, %v3485_v22  ;;  %v2742_v21 = vpop.permute.xlu1 %2741  ;;  %v3071_v39 = vld [vmem:[%s6313_s9 + $0x30] sm:$0xff]  ;;  %v3489_v26 = vmul.f32 %v3457_v0, %v7593_v58 }
 0x403   : > { %v3003_v9 = vadd.f32 %v2971_v55, %v2899_v57  ;;  %v3203_v61 = vadd.f32 %v3171_v6, %v3099_v43  ;;  %3421 = vst.msk [vmem:[%s6325_s25 + $0xc0] sm:$0xff] %vm1281_vm1, %v3389_v15  ;;  %v3359_v18 = vmul.f32 %v7570_v52, %v2742_v21  ;;  %v3519_v34 = vmul.f32 %v7574_v63, %v2742_v21  ;;  %v3299_v6 = vld [vmem:[%s6325_s25 + $0xf0] sm:$0xff] }
 0x404   : > { %3581 = vst.msk [vmem:[%s6322_s16 + $0xc0] sm:$0xff] %vm1281_vm1, %v3549_v17  ;;  %v2480_v30 = vpop.permute.xlu0 %2479  ;;  %v2903_v15 = vmul.f32 %v2871_v10, %v7309_v46  ;;  %v3103_v29 = vmul.f32 %v3071_v39, %v7309_v46  ;;  %v3074_v46 = vld [vmem:[%s6313_s9 + $0x48] sm:$0xff]  ;;  %v3331_v11 = vmul.f32 %v3299_v6, %v7621_v24 }
 0x405   : > { %3035 = vst.msk [vmem:[%s6316_s11 + $0x10] sm:$0xff] %vm1281_vm1, %v3003_v9  ;;  %3235 = vst.msk [vmem:[%s6313_s9 + $0x10] sm:$0xff] %vm1281_vm1, %v3203_v61  ;;  %v2973_v4 = vmul.f32 %v7373_v41, %v2480_v30  ;;  %v3173_v56 = vmul.f32 %v7377_v42, %v2480_v30  ;;  %v3391_v50 = vadd.f32 %v3359_v18, %v3327_v13  ;;  %v3459_v9 = vld [vmem:[%s6322_s16 + $0xf0] sm:$0xff]  ;;  %v3589_v61 = vld [vmem:[%s6328_s0] sm:$0xff] }
 0x406   : > { %v3551_v27 = vadd.f32 %v3519_v34, %v3487_v14  ;;  %v2754_v57 = vpop.permute.xlu1 %2753  ;;  %v2874_v14 = vld [vmem:[%s6316_s11 + $0x48] sm:$0xff]  ;;  %v3106_v10 = vmul.f32 %v3074_v46, %v7236_v60 }
 0x407   : > { %v3005_v22 = vadd.f32 %v2973_v4, %v2901_v51  ;;  %v3205_v59 = vadd.f32 %v3173_v56, %v3101_v31  ;;  %3423 = vst.msk [vmem:[%s6325_s25 + $0xd0] sm:$0xff] %vm1281_vm1, %v3391_v50  ;;  %v3361_v43 = vmul.f32 %v7605_v19, %v2754_v57  ;;  %v3521_v55 = vmul.f32 %v7608_v44, %v2754_v57 }
 0x408   : > { %3583 = vst.msk [vmem:[%s6322_s16 + $0xd0] sm:$0xff] %vm1281_vm1, %v3551_v27  ;;  %v2488_v58 = vpop.permute.xlu0 %2487  ;;  %v2906_v4 = vmul.f32 %v2874_v14, %v7236_v60  ;;  %v3491_v50 = vmul.f32 %v3459_v9, %v7621_v24  ;;  %v3590_v27 = vmul.f32 %v3589_v61, %v7038_v8  ;;  %v3076_v24 = vld [vmem:[%s6313_s9 + $0x58] sm:$0xff] }
 0x409   : > { %3037 = vst.msk [vmem:[%s6316_s11 + $0x20] sm:$0xff] %vm1281_vm1, %v3005_v22  ;;  %3237 = vst.msk [vmem:[%s6313_s9 + $0x20] sm:$0xff] %vm1281_vm1, %v3205_v59  ;;  %v2975_v35 = vmul.f32 %v7373_v41, %v2488_v58  ;;  %v3175_v17 = vmul.f32 %v7377_v42, %v2488_v58  ;;  %v3393_v21 = vadd.f32 %v3361_v43, %v3329_v40  ;;  %v2876_v22 = vld [vmem:[%s6316_s11 + $0x58] sm:$0xff] }
 0x40a   : > { %v3553_v13 = vadd.f32 %v3521_v55, %v3489_v26  ;;  %v5331_v18 = vpop.eup %5330  ;;  %v2762_v34 = vpop.permute.xlu1 %2761 }
 0x40b   : > { %v3007_v0 = vadd.f32 %v2975_v35, %v2903_v15  ;;  %v3207_v51 = vadd.f32 %v3175_v17, %v3103_v29  ;;  %3425 = vst.msk [vmem:[%s6325_s25 + $0xe0] sm:$0xff] %vm1281_vm1, %v3393_v21  ;;  %4112 = vrot.lane.b32.xlu0 %v5331_v18, %s8573_s22  ;;  %v3363_v31 = vmul.f32 %v7605_v19, %v2762_v34  ;;  %v2878_v17 = vld [vmem:[%s6316_s11 + $0x68] sm:$0xff] }
 0x40c   : > { %3585 = vst.msk [vmem:[%s6322_s16 + $0xe0] sm:$0xff] %vm1281_vm1, %v3553_v13  ;;  %v3523_v30 = vmul.f32 %v7608_v44, %v2762_v34  ;;  %v2503_v56 = vpop.permute.xlu0 %2502  ;;  %v2908_v15 = vmul.f32 %v2876_v22, %v7243_v62  ;;  %v3108_v29 = vmul.f32 %v3076_v24, %v7243_v62  ;;  %v3078_v21 = vld [vmem:[%s6313_s9 + $0x68] sm:$0xff]  ;;  %v2910_v61 = vmul.f32 %v2878_v17, %v7251_v2 }
 0x40d   : > { %3039 = vst.msk [vmem:[%s6316_s11 + $0x30] sm:$0xff] %vm1281_vm1, %v3007_v0  ;;  %3239 = vst.msk [vmem:[%s6313_s9 + $0x30] sm:$0xff] %vm1281_vm1, %v3207_v51  ;;  %v2978_v39 = vmul.f32 %v7408_v48, %v2503_v56  ;;  %v3178_v57 = vmul.f32 %v7411_v49, %v2503_v56  ;;  %v3395_v40 = vadd.f32 %v3363_v31, %v3331_v11  ;;  %v2880_v11 = vld [vmem:[%s6316_s11 + $0x78] sm:$0xff]  ;;  %v2886_v17 = vld [vmem:[%s6316_s11 + $0xa8] sm:$0xff] }
 0x40e   : > { %v3555_v26 = vadd.f32 %v3523_v30, %v3491_v50  ;;  %v3593_v8 = vpop.permute.xlu1 %3592  ;;  %v3110_v18 = vmul.f32 %v3078_v21, %v7251_v2  ;;  %v3080_v0 = vld [vmem:[%s6313_s9 + $0x78] sm:$0xff]  ;;  %v2912_v30 = vmul.f32 %v2880_v11, %v7257_v7  ;;  %v3086_v21 = vld [vmem:[%s6313_s9 + $0xa8] sm:$0xff] }
 0x40f   : > { %v3010_v59 = vadd.f32 %v2978_v39, %v2906_v4  ;;  %v3210_v43 = vadd.f32 %v3178_v57, %v3106_v10  ;;  %3427 = vst.msk [vmem:[%s6325_s25 + $0xf0] sm:$0xff] %vm1281_vm1, %v3395_v40  ;;  %2637 = vbcast.lane.b32.xlu0 %v7269_v12, 296  ;;  %v3595_v55 = vadd.f32 %v3593_v8, %v3590_v27  ;;  %v2882_v27 = vld [vmem:[%s6316_s11 + $0x88] sm:$0xff]  ;;  %v2888_v11 = vld [vmem:[%s6316_s11 + $0xb8] sm:$0xff] }
 0x410   : > { %3587 = vst.msk [vmem:[%s6322_s16 + $0xf0] sm:$0xff] %vm1281_vm1, %v3555_v26  ;;  %v2511_v6 = vpop.permute.xlu0 %2510  ;;  %v3112_v4 = vmul.f32 %v3080_v0, %v7257_v7  ;;  %v3082_v10 = vld [vmem:[%s6313_s9 + $0x88] sm:$0xff]  ;;  %v2914_v26 = vmul.f32 %v2882_v27, %v7264_v5  ;;  %v3088_v0 = vld [vmem:[%s6313_s9 + $0xb8] sm:$0xff] }
 0x411   : > { %3042 = vst.msk [vmem:[%s6316_s11 + $0x48] sm:$0xff] %vm1281_vm1, %v3010_v59  ;;  %3242 = vst.msk [vmem:[%s6313_s9 + $0x48] sm:$0xff] %vm1281_vm1, %v3210_v43  ;;  %v2980_v58 = vmul.f32 %v7408_v48, %v2511_v6  ;;  %v3180_v35 = vmul.f32 %v7411_v49, %v2511_v6  ;;  %v3114_v22 = vmul.f32 %v3082_v10, %v7264_v5  ;;  %v2884_v59 = vld [vmem:[%s6316_s11 + $0x98] sm:$0xff]  ;;  %v3090_v27 = vld [vmem:[%s6313_s9 + $0xc8] sm:$0xff] }
 0x412   : > { %3596 = vst.msk [vmem:[%s6328_s0] sm:$0xff] %vm1281_vm1, %v3595_v55  ;;  %v3084_v43 = vld [vmem:[%s6313_s9 + $0x98] sm:$0xff] }
 0x413   : > { %v3012_v13 = vadd.f32 %v2980_v58, %v2908_v15  ;;  %v3212_v14 = vadd.f32 %v3180_v35, %v3108_v29  ;;  %2645 = vbcast.lane.b32.xlu0 %v7269_v12, 312  ;;  %v2916_v15 = vmul.f32 %v2884_v59, %v7272_v16  ;;  %v3116_v29 = vmul.f32 %v3084_v43, %v7272_v16  ;;  %v3092_v59 = vld [vmem:[%s6313_s9 + $0xd8] sm:$0xff] }
 0x414   : > { %v2522_v9 = vpop.permute.xlu0 %2521 }
 0x415   : > { %3044 = vst.msk [vmem:[%s6316_s11 + $0x58] sm:$0xff] %vm1281_vm1, %v3012_v13  ;;  %3244 = vst.msk [vmem:[%s6313_s9 + $0x58] sm:$0xff] %vm1281_vm1, %v3212_v14  ;;  %v2982_v46 = vmul.f32 %v7457_v53, %v2522_v9  ;;  %v3182_v34 = vmul.f32 %v7460_v28, %v2522_v9 }
 0x417   : > { %v3014_v51 = vadd.f32 %v2982_v46, %v2910_v61  ;;  %v3214_v12 = vadd.f32 %v3182_v34, %v3110_v18  ;;  %2657 = vbcast.lane.b32.xlu0 %v7277_v23, 296  ;;  %v2918_v61 = vmul.f32 %v2886_v17, %v7279_v25  ;;  %v3118_v18 = vmul.f32 %v3086_v21, %v7279_v25  ;;  %v2894_v17 = vld [vmem:[%s6316_s11 + $0xe8] sm:$0xff] }
 0x418   : > { %v2530_v31 = vpop.permute.xlu0 %2529  ;;  %v3094_v21 = vld [vmem:[%s6313_s9 + $0xe8] sm:$0xff] }
 0x419   : > { %3046 = vst.msk [vmem:[%s6316_s11 + $0x68] sm:$0xff] %vm1281_vm1, %v3014_v51  ;;  %3246 = vst.msk [vmem:[%s6313_s9 + $0x68] sm:$0xff] %vm1281_vm1, %v3214_v12  ;;  %v2984_v56 = vmul.f32 %v7457_v53, %v2530_v31  ;;  %v3184_v50 = vmul.f32 %v7460_v28, %v2530_v31  ;;  %v2920_v31 = vmul.f32 %v2888_v11, %v7285_v32 }
 0x41b   : > { %v3016_v39 = vadd.f32 %v2984_v56, %v2912_v30  ;;  %v3216_v57 = vadd.f32 %v3184_v50, %v3112_v4  ;;  %2665 = vbcast.lane.b32.xlu0 %v7277_v23, 312  ;;  %v3120_v30 = vmul.f32 %v3088_v0, %v7285_v32  ;;  %v2890_v50 = vld [vmem:[%s6316_s11 + $0xc8] sm:$0xff]  ;;  %v2896_v0 = vld [vmem:[%s6316_s11 + $0xf8] sm:$0xff] }
 0x41c   : > { %v2541_v40 = vpop.permute.xlu0 %2540 }
 0x41d   : > { %3048 = vst.msk [vmem:[%s6316_s11 + $0x78] sm:$0xff] %vm1281_vm1, %v3016_v39  ;;  %3248 = vst.msk [vmem:[%s6313_s9 + $0x78] sm:$0xff] %vm1281_vm1, %v3216_v57  ;;  %v2986_v24 = vmul.f32 %v7490_v3, %v2541_v40  ;;  %v3186_v8 = vmul.f32 %v7494_v1, %v2541_v40  ;;  %v2922_v40 = vmul.f32 %v2890_v50, %v7294_v37 }
 0x41f   : > { %v3018_v55 = vadd.f32 %v2986_v24, %v2914_v26  ;;  %v3218_v23 = vadd.f32 %v3186_v8, %v3114_v22  ;;  %2677 = vbcast.lane.b32.xlu0 %v7289_v33, 296  ;;  %v3122_v26 = vmul.f32 %v3090_v27, %v7294_v37  ;;  %v2892_v8 = vld [vmem:[%s6316_s11 + $0xd8] sm:$0xff] }
 0x420   : > { %v2549_v6 = vpop.permute.xlu0 %2548 }
 0x421   : > { %3050 = vst.msk [vmem:[%s6316_s11 + $0x88] sm:$0xff] %vm1281_vm1, %v3018_v55  ;;  %3250 = vst.msk [vmem:[%s6313_s9 + $0x88] sm:$0xff] %vm1281_vm1, %v3218_v23  ;;  %v2988_v58 = vmul.f32 %v7490_v3, %v2549_v6  ;;  %v3188_v35 = vmul.f32 %v7494_v1, %v2549_v6  ;;  %v8668_v55 = vld [vmem:[#allocation57_spill] sm:$0xff]  ;;  %v8669_v6 = vld [vmem:[#allocation56_spill] sm:$0xff] }
 0x423   : > { %v3020_v13 = vadd.f32 %v2988_v58, %v2916_v15  ;;  %v3220_v14 = vadd.f32 %v3188_v35, %v3116_v29  ;;  %2685 = vbcast.lane.b32.xlu0 %v7289_v33, 312  ;;  %v2924_v15 = vmul.f32 %v2892_v8, %v8669_v6  ;;  %v3124_v29 = vmul.f32 %v3092_v59, %v8669_v6 }
 0x424   : > { %v2560_v9 = vpop.permute.xlu0 %2559 }
 0x425   : > { %3052 = vst.msk [vmem:[%s6316_s11 + $0x98] sm:$0xff] %vm1281_vm1, %v3020_v13  ;;  %3252 = vst.msk [vmem:[%s6313_s9 + $0x98] sm:$0xff] %vm1281_vm1, %v3220_v14  ;;  %v2990_v46 = vmul.f32 %v7535_v54, %v2560_v9  ;;  %v3190_v34 = vmul.f32 %v7540_v47, %v2560_v9 }
 0x427   : > { %v3022_v51 = vadd.f32 %v2990_v46, %v2918_v61  ;;  %v3222_v33 = vadd.f32 %v3190_v34, %v3118_v18  ;;  %2697 = vbcast.lane.b32.xlu0 %v7301_v20, 296  ;;  %v8670_v61 = vld [vmem:[#allocation58_spill] sm:$0xff] }
 0x428   : > { %v2568_v12 = vpop.permute.xlu0 %2567  ;;  %v2926_v18 = vmul.f32 %v2894_v17, %v8670_v61  ;;  %v3126_v46 = vmul.f32 %v3094_v21, %v8670_v61  ;;  %v8676_v17 = vld [vmem:[#allocation53_spill] sm:$0xff] }
 0x429   : > { %3054 = vst.msk [vmem:[%s6316_s11 + $0xa8] sm:$0xff] %vm1281_vm1, %v3022_v51  ;;  %3254 = vst.msk [vmem:[%s6313_s9 + $0xa8] sm:$0xff] %vm1281_vm1, %v3222_v33  ;;  %v2992_v4 = vmul.f32 %v7535_v54, %v2568_v12  ;;  %v3192_v56 = vmul.f32 %v7540_v47, %v2568_v12  ;;  %v3096_v51 = vld [vmem:[%s6313_s9 + $0xf8] sm:$0xff] }
 0x42b   : > { %v3024_v10 = vadd.f32 %v2992_v4, %v2920_v31  ;;  %v3224_v39 = vadd.f32 %v3192_v56, %v3120_v30  ;;  %2705 = vbcast.lane.b32.xlu0 %v7301_v20, 312  ;;  %v8671_v31 = vld [vmem:[#allocation60_spill] sm:$0xff]  ;;  %v8672_v4 = vld [vmem:[#allocation59_spill] sm:$0xff] }
 0x42c   : > { %v2579_v57 = vpop.permute.xlu0 %2578  ;;  %v2928_v56 = vmul.f32 %v2896_v0, %v8672_v4  ;;  %v3128_v50 = vmul.f32 %v3096_v51, %v8672_v4 }
 0x42d   : > { %3056 = vst.msk [vmem:[%s6316_s11 + $0xb8] sm:$0xff] %vm1281_vm1, %v3024_v10  ;;  %3256 = vst.msk [vmem:[%s6313_s9 + $0xb8] sm:$0xff] %vm1281_vm1, %v3224_v39  ;;  %v2994_v22 = vmul.f32 %v7570_v52, %v2579_v57  ;;  %v3194_v24 = vmul.f32 %v7574_v63, %v2579_v57  ;;  %v3270_v39 = vld [vmem:[%s6325_s25 + $0x8] sm:$0xff] }
 0x42e   : > { %v3430_v57 = vld [vmem:[%s6322_s16 + $0x8] sm:$0xff] }
 0x42f   : > { %v3026_v43 = vadd.f32 %v2994_v22, %v2922_v40  ;;  %v3226_v20 = vadd.f32 %v3194_v24, %v3122_v26  ;;  %2717 = vbcast.lane.b32.xlu0 %v8668_v55, 296  ;;  %v8673_v24 = vld [vmem:[#allocation52_spill] sm:$0xff] }
 0x430   : > { %v2587_v23 = vpop.permute.xlu0 %2586  ;;  %v3302_v8 = vmul.f32 %v3270_v39, %v8673_v24  ;;  %v3462_v59 = vmul.f32 %v3430_v57, %v8673_v24 }
 0x431   : > { %3058 = vst.msk [vmem:[%s6316_s11 + $0xc8] sm:$0xff] %vm1281_vm1, %v3026_v43  ;;  %3258 = vst.msk [vmem:[%s6313_s9 + $0xc8] sm:$0xff] %vm1281_vm1, %v3226_v20  ;;  %v2996_v58 = vmul.f32 %v7570_v52, %v2587_v23  ;;  %v3196_v35 = vmul.f32 %v7574_v63, %v2587_v23  ;;  %v3432_v23 = vld [vmem:[%s6322_s16 + $0x18] sm:$0xff] }
 0x433   : > { %v3028_v13 = vadd.f32 %v2996_v58, %v2924_v15  ;;  %v3228_v14 = vadd.f32 %v3196_v35, %v3124_v29  ;;  %2725 = vbcast.lane.b32.xlu0 %v8668_v55, 312  ;;  %v3272_v55 = vld [vmem:[%s6325_s25 + $0x18] sm:$0xff] }
 0x434   : > { %v2598_v9 = vpop.permute.xlu0 %2597  ;;  %v8674_v58 = vld [vmem:[#allocation61_spill] sm:$0xff]  ;;  %v3304_v21 = vmul.f32 %v3272_v55, %v8676_v17 }
 0x435   : > { %3060 = vst.msk [vmem:[%s6316_s11 + $0xd8] sm:$0xff] %vm1281_vm1, %v3028_v13  ;;  %3260 = vst.msk [vmem:[%s6313_s9 + $0xd8] sm:$0xff] %vm1281_vm1, %v3228_v14  ;;  %v2998_v34 = vmul.f32 %v7605_v19, %v2598_v9  ;;  %v3198_v11 = vmul.f32 %v7608_v44, %v2598_v9  ;;  %v3464_v13 = vmul.f32 %v3432_v23, %v8676_v17 }
 0x437   : > { %v3030_v33 = vadd.f32 %v2998_v34, %v2926_v18  ;;  %v3230_v12 = vadd.f32 %v3198_v11, %v3126_v46  ;;  %2737 = vbcast.lane.b32.xlu0 %v8671_v31, 296  ;;  %v4816_v34 = vmul.f32 -1.442695, %v7751_v45 }
 0x438   : > { %v2606_v30 = vpop.permute.xlu0 %2605 }
 0x439   : > { %3062 = vst.msk [vmem:[%s6316_s11 + $0xe8] sm:$0xff] %vm1281_vm1, %v3030_v33  ;;  %3262 = vst.msk [vmem:[%s6313_s9 + $0xe8] sm:$0xff] %vm1281_vm1, %v3230_v12  ;;  %v3000_v27 = vmul.f32 %v7605_v19, %v2606_v30  ;;  %v3200_v10 = vmul.f32 %v7608_v44, %v2606_v30  ;;  %5332 = vpow2.f32 %v4816_v34 }
 0x43b   : > { %v3032_v40 = vadd.f32 %v3000_v27, %v2928_v56  ;;  %v3232_v26 = vadd.f32 %v3200_v10, %v3128_v50  ;;  %2745 = vbcast.lane.b32.xlu0 %v8671_v31, 312 }
 0x43c   : > { %v2618_v22 = vpop.permute.xlu0 %2617 }
 0x43d   : > { %3064 = vst.msk [vmem:[%s6316_s11 + $0xf8] sm:$0xff] %vm1281_vm1, %v3032_v40  ;;  %3264 = vst.msk [vmem:[%s6313_s9 + $0xf8] sm:$0xff] %vm1281_vm1, %v3232_v26  ;;  %v3334_v43 = vmul.f32 %v7339_v36, %v2618_v22  ;;  %v3494_v20 = vmul.f32 %v7343_v38, %v2618_v22 }
 0x43f   : > { %v3366_v15 = vadd.f32 %v3334_v43, %v3302_v8  ;;  %v3526_v29 = vadd.f32 %v3494_v20, %v3462_v59  ;;  %2757 = vbcast.lane.b32.xlu0 %v8674_v58, 296 }
 0x440   : > { %v2626_v35 = vpop.permute.xlu0 %2625 }
 0x441   : > { %3398 = vst.msk [vmem:[%s6325_s25 + $0x8] sm:$0xff] %vm1281_vm1, %v3366_v15  ;;  %3558 = vst.msk [vmem:[%s6322_s16 + $0x8] sm:$0xff] %vm1281_vm1, %v3526_v29  ;;  %v3336_v14 = vmul.f32 %v7339_v36, %v2626_v35  ;;  %v3496_v9 = vmul.f32 %v7343_v38, %v2626_v35 }
 0x443   : > { %v3368_v18 = vadd.f32 %v3336_v14, %v3304_v21  ;;  %v3528_v46 = vadd.f32 %v3496_v9, %v3464_v13  ;;  %2765 = vbcast.lane.b32.xlu0 %v8674_v58, 312 }
 0x445   : > { %3400 = vst.msk [vmem:[%s6325_s25 + $0x18] sm:$0xff] %vm1281_vm1, %v3368_v18  ;;  %3560 = vst.msk [vmem:[%s6322_s16 + $0x18] sm:$0xff] %vm1281_vm1, %v3528_v46 }
 0x446   : > { %v5333_v11 = vpop.eup %5332 }
 0x447   : > { %v4108_v0 = vadd.f32 1.0, %v5333_v11 }
 0x449   : > { %5334 = vrcp.f32 %v4108_v0 }
 0x44a   : > { %5518 = shalt.err (!%p5515_p3)
}
 0x44b   : > { %s5519_s24 = scalar_lea.hbm %s4190_s4, 128  ;;  %s5523_s21 = scalar_lea.hbm %s8678_s23, 256 }
 0x44c   : > { %p5520_p11 = scmp.ne.s32.totalorder %s4190_s4, %s5519_s24  ;;  %p5524_p7 = scmp.lt.s32.totalorder %s4190_s4, %s8678_s23 }
 0x44d   : > { %p5525_p0 = scmp.lt.s32.totalorder %s5523_s21, %s5519_s24 }
 0x44e   : > { %p5521_p1 = pnand %p5520_p11, %p6114_p2 }
 0x44f   : > { %p5526_p6 = por %p5525_p0, %p5524_p7 }
 0x450   : > { %p5522_p10 = pneg %p5521_p1 }
 0x452   : > { %p5527_p5 = pnand %p5526_p6, %p5522_p10 }
 0x454   : > { %5530 = shalt.err (!%p5527_p5)
}
 0x455   : > { %5164 = dma.vmem_to_hbm [thread:$0]  (%p6114_p2), %s4193_s2, 128, %s4190_s4, %s8574_s28  }
 0x456   : > { %s8028_s18 = sshll.u32 %s8675_s17, 12  ;;  %s4221_s27 = sshll.u32 %s6313_s9, 4  ;;  %s8037_s27 = int_to_ptr.vmem [resolvable:$true] %s4221_s27 }
 0x457   : > { %s8679_s22 = sld [smem:[#allocation78_spill]]  ;;  %s8576_s26 = scalar_lea.sflag [#allocation18], %s6261_s1 }
 0x458   : > { %s5531_s24 = scalar_lea.vmem %s8037_s27, 4096  ;;  %s5882_s2 = smov [#allocation17]  }
 0x459   : > { %p5532_p5 = scmp.ne.s32.totalorder %s8037_s27, %s5531_s24  ;;  %s5535_s4 = sshll.u32 %s5882_s2, 4  ;;  %s5536_s4 = int_to_ptr.vmem [resolvable:$false] %s5535_s4 }
 0x45a   : > { %s5537_s9 = scalar_lea.vmem %s5536_s4, 8192  ;;  %p5538_p13 = scmp.lt.s32.totalorder %s8037_s27, %s5536_s4 }
 0x45b   : > { %p5533_p4 = pnand %p5532_p5, %p6114_p2  ;;  %p5539_p8 = scmp.lt.s32.totalorder %s5537_s9, %s5531_s24 }
 0x45d   : > { %s8035_s21 = scalar_lea.hbm %s8679_s22, %s8028_s18  ;;  %p5534_p9 = pneg %p5533_p4 }
 0x45e   : > { %p5540_p3 = por %p5539_p8, %p5538_p13 }
 0x460   : > { %p5541_p11 = pnand %p5540_p3, %p5534_p9 }
 0x462   : > { %5544 = shalt.err (!%p5541_p11)
}
 0x463   : > { %s5545_s7 = scalar_lea.hbm %s8035_s21, 4096  ;;  %s5549_s14 = scalar_lea.hbm %s8679_s22, 8192 }
 0x464   : > { %p5546_p1 = scmp.ne.s32.totalorder %s8035_s21, %s5545_s7  ;;  %p5550_p0 = scmp.lt.s32.totalorder %s8035_s21, %s8679_s22 }
 0x465   : > { %p5551_p6 = scmp.lt.s32.totalorder %s5549_s14, %s5545_s7 }
 0x466   : > { %p5547_p10 = pnand %p5546_p1, %p6114_p2 }
 0x467   : > { %p5552_p5 = por %p5551_p6, %p5550_p0 }
 0x468   : > { %p5548_p7 = pneg %p5547_p10 }
 0x46a   : > { %p5553_p4 = pnand %p5552_p5, %p5548_p7 }
 0x46c   : > { %5556 = shalt.err (!%p5553_p4)
}
 0x46d   : > { %s8577_s24 = smov 128   ;;  %s8680_s4 = sld [smem:[#allocation40_spill]]  ;;  %v5335_v36 = vpop.eup %5334 }
 0x46e   : > { %s8579_s9 = smov 8   ;;  %s8681_s8 = sld [smem:[#allocation80_spill]] }
 0x46f   : > { %5166 = dma.vmem_to_hbm [thread:$0]  (%p6114_p2), %s8037_s27, 4096, %s8035_s21, %s8576_s26, %s8577_s24, %s8577_s24, %s8579_s9  }
 0x470   : > { %s4254_s14 = sshll.u32 %s6319_s20, 4  ;;  %s8581_s10 = scalar_lea.sflag [#allocation21], %s6261_s1  ;;  %s8072_s14 = int_to_ptr.vmem [resolvable:$true] %s4254_s14 }
 0x471   : > { %s5557_s12 = scalar_lea.vmem %s8072_s14, 128  ;;  %s5885_s27 = smov [#allocation20]  }
 0x472   : > { %p5558_p9 = scmp.ne.s32.totalorder %s8072_s14, %s5557_s12  ;;  %s5561_s21 = sshll.u32 %s5885_s27, 4  ;;  %s5562_s21 = int_to_ptr.vmem [resolvable:$false] %s5561_s21 }
 0x473   : > { %s4826_s2 = sshll.u32 %s8680_s4, 1  ;;  %s5563_s28 = scalar_lea.vmem %s5562_s21, 256 }
 0x474   : > { %s8069_s5 = scalar_lea.hbm %s8681_s8, %s8005_s19  ;;  %p5559_p13 = pnand %p5558_p9, %p6114_p2 }
 0x475   : > { %p5564_p3 = scmp.lt.s32.totalorder %s8072_s14, %s5562_s21  ;;  %p5565_p11 = scmp.lt.s32.totalorder %s5563_s28, %s5557_s12 }
 0x476   : > { %p5560_p8 = pneg %p5559_p13 }
 0x477   : > { %p5566_p1 = por %p5565_p11, %p5564_p3 }
 0x479   : > { %p5567_p10 = pnand %p5566_p1, %p5560_p8 }
 0x47d   : > { %v4113_v38 = vpop.permute.xlu0 %4112 }
 0x47e   : > { %5570 = shalt.err (!%p5567_p10)
}
 0x47f   : > { %s5571_s20 = scalar_lea.hbm %s8069_s5, 128  ;;  %s5575_s27 = scalar_lea.hbm %s8681_s8, 256 }
 0x480   : > { %p5572_p7 = scmp.ne.s32.totalorder %s8069_s5, %s5571_s20  ;;  %p5576_p5 = scmp.lt.s32.totalorder %s8069_s5, %s8681_s8 }
 0x481   : > { %p5577_p4 = scmp.lt.s32.totalorder %s5575_s27, %s5571_s20 }
 0x482   : > { %p5573_p0 = pnand %p5572_p7, %p6114_p2 }
 0x483   : > { %p5578_p9 = por %p5577_p4, %p5576_p5 }
 0x484   : > { %p5574_p6 = pneg %p5573_p0 }
 0x486   : > { %p5579_p13 = pnand %p5578_p9, %p5574_p6 }
 0x488   : > { %5582 = shalt.err (!%p5579_p13)
}
 0x489   : > { %5168 = dma.vmem_to_hbm [thread:$0]  (%p6114_p2), %s8072_s14, 128, %s8069_s5, %s8581_s10   ;;  %v4115_v45 = vmul.f32 %v5335_v36, %v4113_v38  ;;  %v3274_v51 = vld [vmem:[%s6325_s25 + $0x28] sm:$0xff]  ;;  %v2638_v12 = vpop.permute.xlu0 %2637  ;;  %v8686_v31 = vld [vmem:[#allocation54_spill] sm:$0xff]  ;;  %v3276_v10 = vld [vmem:[%s6325_s25 + $0x38] sm:$0xff] }
 0x48a   : > { %v3434_v33 = vld [vmem:[%s6322_s16 + $0x28] sm:$0xff]  ;;  %s8103_s12 = sadd.s32 %s8675_s17, %s4826_s2  ;;  %s8682_s26 = smov 32   ;;  %v3306_v30 = vmul.f32 %v3274_v51, %v8686_v31  ;;  %v3338_v50 = vmul.f32 %v7373_v41, %v2638_v12  ;;  %v3498_v27 = vmul.f32 %v7377_v42, %v2638_v12  ;;  %v3436_v39 = vld [vmem:[%s6322_s16 + $0x38] sm:$0xff] }
 0x48b   : > { %4117 = vrot.lane.b32.xlu0 %v4115_v45, %s8682_s26  ;;  %s8584_s24 = sshll.u32 %s8103_s12, 7  ;;  %s8683_s28 = sld [smem:[#allocation79_spill]]  ;;  %v3466_v56 = vmul.f32 %v3434_v33, %v8686_v31 }
 0x48c   : > { %s8687_s5 = sld [smem:[#allocation77_spill]]  ;;  %s8689_s26 = scalar_lea.vmem [#allocation16], %s6293_s29  ;;  %v3370_v57 = vadd.f32 %v3338_v50, %v3306_v30 }
 0x48d   : > { %s4207_s10 = sshll.u32 %s8689_s26, 4  ;;  %s4238_s9 = sshll.u32 %s6316_s11, 4  ;;  %v3530_v40 = vadd.f32 %v3498_v27, %v3466_v56  ;;  %s4208_s10 = int_to_ptr.vmem [resolvable:$true] %s4207_s10  ;;  %s8147_s9 = int_to_ptr.vmem [resolvable:$true] %s4238_s9 }
 0x48e   : > { %s5583_s21 = scalar_lea.vmem %s4208_s10, 128 }
 0x48f   : > { %p5584_p8 = scmp.ne.s32.totalorder %s4208_s10, %s5583_s21 }
 0x491   : > { %s8684_s20 = smov %s8683_s28  ;;  %s8111_s27 = scalar_lea.hbm %s8683_s28, %s8028_s18 }
 0x492   : > { %s8688_s14 = smov %s8687_s5  ;;  %s8122_s2 = scalar_lea.hbm %s8687_s5, %s8584_s24 }
 0x493   : > { %p5585_p3 = pnand %p5584_p8, %p6097_p12  ;;  %s5886_s28 = smov [#allocation16]  }
 0x494   : > { %s5587_s8 = sshll.u32 %s5886_s28, 4  ;;  %s5588_s8 = int_to_ptr.vmem [resolvable:$false] %s5587_s8 }
 0x495   : > { %p5586_p11 = pneg %p5585_p3  ;;  %s5589_s13 = scalar_lea.vmem %s5588_s8, 256 }
 0x496   : > { %p5590_p1 = scmp.lt.s32.totalorder %s4208_s10, %s5588_s8  ;;  %p5591_p10 = scmp.lt.s32.totalorder %s5589_s13, %s5583_s21 }
 0x498   : > { %p5592_p7 = por %p5591_p10, %p5590_p1 }
 0x49a   : > { %p5593_p0 = pnand %p5592_p7, %p5586_p11 }
 0x49c   : > { %5596 = shalt.err (!%p5593_p0)
}
 0x49d   : > { %s5597_s11 = scalar_lea.hbm %s8122_s2, 128  ;;  %s5601_s5 = scalar_lea.hbm %s8688_s14, 1024 }
 0x49e   : > { %p5598_p6 = scmp.ne.s32.totalorder %s8122_s2, %s5597_s11  ;;  %p5602_p9 = scmp.lt.s32.totalorder %s8122_s2, %s8688_s14 }
 0x49f   : > { %p5603_p13 = scmp.lt.s32.totalorder %s5601_s5, %s5597_s11 }
 0x4a0   : > { %p5599_p5 = pnand %p5598_p6, %p6097_p12 }
 0x4a1   : > { %p5604_p8 = por %p5603_p13, %p5602_p9 }
 0x4a2   : > { %p5600_p4 = pneg %p5599_p5 }
 0x4a4   : > { %p5605_p3 = pnand %p5604_p8, %p5600_p4 }
 0x4a6   : > { %5608 = shalt.err (!%p5605_p3)
}
 0x4a7   : > { %s8690_s13 = scalar_lea.sflag [#allocation15], %s6261_s1  ;;  %v2646_v26 = vpop.permute.xlu0 %2645  ;;  %3402 = vst.msk [vmem:[%s6325_s25 + $0x28] sm:$0xff] %vm1281_vm1, %v3370_v57  ;;  %3562 = vst.msk [vmem:[%s6322_s16 + $0x28] sm:$0xff] %vm1281_vm1, %v3530_v40  ;;  %v8691_v22 = vld [vmem:[#allocation55_spill] sm:$0xff]  ;;  %s5609_s8 = scalar_lea.vmem %s8147_s9, 4096 }
 0x4a8   : > { %5165 = dma.vmem_to_hbm [thread:$0]  (%p6097_p12), %s4208_s10, 128, %s8122_s2, %s8690_s13   ;;  %v3308_v24 = vmul.f32 %v3276_v10, %v8691_v22  ;;  %v3468_v8 = vmul.f32 %v3436_v39, %v8691_v22  ;;  %v3340_v59 = vmul.f32 %v7373_v41, %v2646_v26  ;;  %v3500_v43 = vmul.f32 %v7377_v42, %v2646_v26 }
 0x4a9   : > { %p5610_p11 = scmp.ne.s32.totalorder %s8147_s9, %s5609_s8  ;;  %s5887_s10 = smov [#allocation19]  }
 0x4aa   : > { %s5613_s2 = sshll.u32 %s5887_s10, 4  ;;  %s5614_s2 = int_to_ptr.vmem [resolvable:$false] %s5613_s2 }
 0x4ab   : > { %p5611_p1 = pnand %p5610_p11, %p6114_p2  ;;  %s5615_s21 = scalar_lea.vmem %s5614_s2, 8192 }
 0x4ac   : > { %p5616_p7 = scmp.lt.s32.totalorder %s8147_s9, %s5614_s2  ;;  %p5617_p0 = scmp.lt.s32.totalorder %s5615_s21, %s5609_s8 }
 0x4ad   : > { %p5612_p10 = pneg %p5611_p1 }
 0x4ae   : > { %p5618_p6 = por %p5617_p0, %p5616_p7 }
 0x4b0   : > { %p5619_p5 = pnand %p5618_p6, %p5612_p10 }
 0x4b2   : > { %5622 = shalt.err (!%p5619_p5)
}
 0x4b3   : > { %s5623_s11 = scalar_lea.hbm %s8111_s27, 4096  ;;  %s5627_s5 = scalar_lea.hbm %s8684_s20, 8192 }
 0x4b4   : > { %p5624_p4 = scmp.ne.s32.totalorder %s8111_s27, %s5623_s11  ;;  %p5628_p8 = scmp.lt.s32.totalorder %s8111_s27, %s8684_s20 }
 0x4b5   : > { %p5629_p3 = scmp.lt.s32.totalorder %s5627_s5, %s5623_s11 }
 0x4b6   : > { %p5625_p9 = pnand %p5624_p4, %p6114_p2 }
 0x4b7   : > { %p5630_p11 = por %p5629_p3, %p5628_p8 }
 0x4b8   : > { %p5626_p13 = pneg %p5625_p9 }
 0x4ba   : > { %p5631_p1 = pnand %p5630_p11, %p5626_p13 }
 0x4bc   : > { %5634 = shalt.err (!%p5631_p1)
}
 0x4bd   : > { %s8692_s13 = smov 8   ;;  %s8693_s8 = smov 128   ;;  %v3278_v41 = vld [vmem:[%s6325_s25 + $0x48] sm:$0xff]  ;;  %v3372_v20 = vadd.f32 %v3340_v59, %v3308_v24  ;;  %v3532_v55 = vadd.f32 %v3500_v43, %v3468_v8  ;;  %v2658_v23 = vpop.permute.xlu0 %2657  ;;  %v3280_v17 = vld [vmem:[%s6325_s25 + $0x58] sm:$0xff] }
 0x4be   : > { %s8694_s10 = scalar_lea.sflag [#allocation18], %s6261_s1  ;;  %v3438_v42 = vld [vmem:[%s6322_s16 + $0x48] sm:$0xff]  ;;  %v3310_v15 = vmul.f32 %v3278_v41, %v7236_v60  ;;  %v3342_v58 = vmul.f32 %v7408_v48, %v2658_v23  ;;  %v3502_v35 = vmul.f32 %v7411_v49, %v2658_v23  ;;  %v3440_v21 = vld [vmem:[%s6322_s16 + $0x58] sm:$0xff]  ;;  %v3312_v18 = vmul.f32 %v3280_v17, %v7243_v62  ;;  %s4301_s2 = sshll.u32 %s6328_s0, 4  ;;  %s8331_s2 = int_to_ptr.vmem [resolvable:$true] %s4301_s2 }
 0x4bf   : > { %5167 = dma.vmem_to_hbm [thread:$0]  (%p6114_p2), %s8147_s9, 4096, %s8111_s27, %s8694_s10, %s8693_s8, %s8693_s8, %s8692_s13   ;;  %v3470_v29 = vmul.f32 %v3438_v42, %v7236_v60  ;;  %v3472_v60 = vmul.f32 %v3440_v21, %v7243_v62 }
 0x4c0   : > { %3404 = vst.msk [vmem:[%s6325_s25 + $0x38] sm:$0xff] %vm1281_vm1, %v3372_v20  ;;  %3564 = vst.msk [vmem:[%s6322_s16 + $0x38] sm:$0xff] %vm1281_vm1, %v3532_v55  ;;  %v3374_v13 = vadd.f32 %v3342_v58, %v3310_v15  ;;  %v3282_v11 = vld [vmem:[%s6325_s25 + $0x68] sm:$0xff]  ;;  %v3284_v33 = vld [vmem:[%s6325_s25 + $0x78] sm:$0xff]  ;;  %s4285_s27 = sshll.u32 %s6325_s25, 4  ;;  %s4268_s9 = sshll.u32 %s6322_s16, 4  ;;  %s8311_s27 = int_to_ptr.vmem [resolvable:$true] %s4285_s27  ;;  %s8319_s9 = int_to_ptr.vmem [resolvable:$true] %s4268_s9 }
 0x4c1   : > { %v3534_v14 = vadd.f32 %v3502_v35, %v3470_v29  ;;  %v2666_v9 = vpop.permute.xlu0 %2665  ;;  %v3442_v0 = vld [vmem:[%s6322_s16 + $0x68] sm:$0xff]  ;;  %v3314_v51 = vmul.f32 %v3282_v11, %v7251_v2  ;;  %v3444_v12 = vld [vmem:[%s6322_s16 + $0x78] sm:$0xff]  ;;  %v3316_v50 = vmul.f32 %v3284_v33, %v7257_v7  ;;  %s8695_s17 = sld [smem:[#allocation82_spill]]  ;;  %s4159_s15 = scalar_lea.sflag [#allocation24], %s6261_s1 }
 0x4c2   : > { %3406 = vst.msk [vmem:[%s6325_s25 + $0x48] sm:$0xff] %vm1281_vm1, %v3374_v13  ;;  %v3344_v46 = vmul.f32 %v7408_v48, %v2666_v9  ;;  %v3504_v34 = vmul.f32 %v7411_v49, %v2666_v9  ;;  %v3474_v62 = vmul.f32 %v3442_v0, %v7251_v2  ;;  %v3476_v2 = vmul.f32 %v3444_v12, %v7257_v7  ;;  %v3286_v39 = vld [vmem:[%s6325_s25 + $0x88] sm:$0xff]  ;;  %v3288_v8 = vld [vmem:[%s6325_s25 + $0x98] sm:$0xff]  ;;  %s8696_s28 = sld [smem:[#allocation81_spill]]  ;;  %s5635_s5 = scalar_lea.vmem %s8311_s27, 4096 }
 0x4c3   : > { %3566 = vst.msk [vmem:[%s6322_s16 + $0x48] sm:$0xff] %vm1281_vm1, %v3534_v14  ;;  %v3446_v57 = vld [vmem:[%s6322_s16 + $0x88] sm:$0xff]  ;;  %v3318_v24 = vmul.f32 %v3286_v39, %v7264_v5  ;;  %v3448_v59 = vld [vmem:[%s6322_s16 + $0x98] sm:$0xff]  ;;  %v3320_v20 = vmul.f32 %v3288_v8, %v7272_v16  ;;  %s8698_s11 = sld [smem:[#allocation83_spill]]  ;;  %p5636_p10 = scmp.ne.s32.totalorder %s8311_s27, %s5635_s5 }
 0x4c4   : > { %v3376_v36 = vadd.f32 %v3344_v46, %v3312_v18  ;;  %v3536_v38 = vadd.f32 %v3504_v34, %v3472_v60  ;;  %v3478_v7 = vmul.f32 %v3446_v57, %v7264_v5  ;;  %v3480_v5 = vmul.f32 %v3448_v59, %v7272_v16  ;;  %v3290_v15 = vld [vmem:[%s6325_s25 + $0xa8] sm:$0xff]  ;;  %v3292_v13 = vld [vmem:[%s6325_s25 + $0xb8] sm:$0xff] }
 0x4c5   : > { %v2678_v45 = vpop.permute.xlu0 %2677  ;;  %v3450_v29 = vld [vmem:[%s6322_s16 + $0xa8] sm:$0xff]  ;;  %v3322_v21 = vmul.f32 %v3290_v15, %v7279_v25  ;;  %v3452_v14 = vld [vmem:[%s6322_s16 + $0xb8] sm:$0xff]  ;;  %v3324_v46 = vmul.f32 %v3292_v13, %v7285_v32  ;;  %p5637_p7 = pnand %p5636_p10, %p6114_p2 }
 0x4c6   : > { %3408 = vst.msk [vmem:[%s6325_s25 + $0x58] sm:$0xff] %vm1281_vm1, %v3376_v36  ;;  %3568 = vst.msk [vmem:[%s6322_s16 + $0x58] sm:$0xff] %vm1281_vm1, %v3536_v38  ;;  %v3346_v48 = vmul.f32 %v7457_v53, %v2678_v45  ;;  %v3506_v49 = vmul.f32 %v7460_v28, %v2678_v45  ;;  %v3482_v16 = vmul.f32 %v3450_v29, %v7279_v25  ;;  %v3294_v0 = vld [vmem:[%s6325_s25 + $0xc8] sm:$0xff] }
 0x4c7   : > { %v3484_v25 = vmul.f32 %v3452_v14, %v7285_v32  ;;  %v3454_v36 = vld [vmem:[%s6322_s16 + $0xc8] sm:$0xff]  ;;  %s8309_s4 = scalar_lea.hbm %s8695_s17, %s8028_s18  ;;  %p5638_p0 = pneg %p5637_p7 }
 0x4c8   : > { %v3378_v31 = vadd.f32 %v3346_v48, %v3314_v51  ;;  %v3538_v30 = vadd.f32 %v3506_v49, %v3474_v62  ;;  %v3326_v62 = vmul.f32 %v3294_v0, %v7294_v37  ;;  %v3486_v32 = vmul.f32 %v3454_v36, %v7294_v37  ;;  %v3296_v48 = vld [vmem:[%s6325_s25 + $0xd8] sm:$0xff]  ;;  %s8697_s10 = smov %s8696_s28  ;;  %s8317_s24 = scalar_lea.hbm %s8696_s28, %s8028_s18 }
 0x4c9   : > { %v2686_v56 = vpop.permute.xlu0 %2685  ;;  %v3456_v49 = vld [vmem:[%s6322_s16 + $0xd8] sm:$0xff]  ;;  %s8329_s14 = scalar_lea.hbm %s8698_s11, %s8005_s19  ;;  %s5888_s18 = smov [#allocation23]  }
 0x4ca   : > { %3410 = vst.msk [vmem:[%s6325_s25 + $0x68] sm:$0xff] %vm1281_vm1, %v3378_v31  ;;  %3570 = vst.msk [vmem:[%s6322_s16 + $0x68] sm:$0xff] %vm1281_vm1, %v3538_v30  ;;  %v3348_v27 = vmul.f32 %v7457_v53, %v2686_v56  ;;  %v3508_v10 = vmul.f32 %v7460_v28, %v2686_v56  ;;  %v3328_v30 = vmul.f32 %v3296_v48, %v8669_v6  ;;  %s5639_s26 = sshll.u32 %s5888_s18, 4  ;;  %s5640_s26 = int_to_ptr.vmem [resolvable:$false] %s5639_s26 }
 0x4cb   : > { %v3488_v37 = vmul.f32 %v3456_v49, %v8669_v6  ;;  %s5641_s28 = scalar_lea.vmem %s5640_s26, 8192  ;;  %p5642_p6 = scmp.lt.s32.totalorder %s8311_s27, %s5640_s26 }
 0x4cc   : > { %v3380_v40 = vadd.f32 %v3348_v27, %v3316_v50  ;;  %v3540_v26 = vadd.f32 %v3508_v10, %v3476_v2  ;;  %v3298_v2 = vld [vmem:[%s6325_s25 + $0xe8] sm:$0xff]  ;;  %p5643_p5 = scmp.lt.s32.totalorder %s5641_s28, %s5635_s5 }
 0x4cd   : > { %v2698_v22 = vpop.permute.xlu0 %2697  ;;  %v3458_v27 = vld [vmem:[%s6322_s16 + $0xe8] sm:$0xff] }
 0x4ce   : > { %3412 = vst.msk [vmem:[%s6325_s25 + $0x78] sm:$0xff] %vm1281_vm1, %v3380_v40  ;;  %3572 = vst.msk [vmem:[%s6322_s16 + $0x78] sm:$0xff] %vm1281_vm1, %v3540_v26  ;;  %v3350_v53 = vmul.f32 %v7490_v3, %v2698_v22  ;;  %v3510_v28 = vmul.f32 %v7494_v1, %v2698_v22  ;;  %v3330_v40 = vmul.f32 %v3298_v2, %v8670_v61  ;;  %v3300_v26 = vld [vmem:[%s6325_s25 + $0xf8] sm:$0xff]  ;;  %p5644_p4 = por %p5643_p5, %p5642_p6 }
 0x4cf   : > { %v3490_v6 = vmul.f32 %v3458_v27, %v8670_v61  ;;  %v3460_v22 = vld [vmem:[%s6322_s16 + $0xf8] sm:$0xff]  ;;  %v3332_v61 = vmul.f32 %v3300_v26, %v8672_v4 }
 0x4d0   : > { %v3382_v43 = vadd.f32 %v3350_v53, %v3318_v24  ;;  %v3542_v41 = vadd.f32 %v3510_v28, %v3478_v7  ;;  %v3492_v28 = vmul.f32 %v3460_v22, %v8672_v4  ;;  %p5645_p9 = pnand %p5644_p4, %p5638_p0 }
 0x4d1   : > { %v2706_v42 = vpop.permute.xlu0 %2705 }
 0x4d2   : > { %3414 = vst.msk [vmem:[%s6325_s25 + $0x88] sm:$0xff] %vm1281_vm1, %v3382_v43  ;;  %3574 = vst.msk [vmem:[%s6322_s16 + $0x88] sm:$0xff] %vm1281_vm1, %v3542_v41  ;;  %v3352_v55 = vmul.f32 %v7490_v3, %v2706_v42  ;;  %v3512_v23 = vmul.f32 %v7494_v1, %v2706_v42 }
 0x4d4   : > { %v3384_v58 = vadd.f32 %v3352_v55, %v3320_v20  ;;  %v3544_v35 = vadd.f32 %v3512_v23, %v3480_v5 }
 0x4d5   : > { %v2718_v17 = vpop.permute.xlu0 %2717 }
 0x4d6   : > { %3416 = vst.msk [vmem:[%s6325_s25 + $0x98] sm:$0xff] %vm1281_vm1, %v3384_v58  ;;  %3576 = vst.msk [vmem:[%s6322_s16 + $0x98] sm:$0xff] %vm1281_vm1, %v3544_v35  ;;  %v3354_v3 = vmul.f32 %v7535_v54, %v2718_v17  ;;  %v3514_v1 = vmul.f32 %v7540_v47, %v2718_v17 }
 0x4d8   : > { %v3386_v9 = vadd.f32 %v3354_v3, %v3322_v21  ;;  %v3546_v18 = vadd.f32 %v3514_v1, %v3482_v16 }
 0x4d9   : > { %v2726_v60 = vpop.permute.xlu0 %2725 }
 0x4da   : > { %3418 = vst.msk [vmem:[%s6325_s25 + $0xa8] sm:$0xff] %vm1281_vm1, %v3386_v9  ;;  %3578 = vst.msk [vmem:[%s6322_s16 + $0xa8] sm:$0xff] %vm1281_vm1, %v3546_v18  ;;  %v3356_v34 = vmul.f32 %v7535_v54, %v2726_v60  ;;  %v3516_v11 = vmul.f32 %v7540_v47, %v2726_v60 }
 0x4dc   : > { %v3388_v38 = vadd.f32 %v3356_v34, %v3324_v46  ;;  %v3548_v45 = vadd.f32 %v3516_v11, %v3484_v25 }
 0x4dd   : > { %v2738_v51 = vpop.permute.xlu0 %2737 }
 0x4de   : > { %3420 = vst.msk [vmem:[%s6325_s25 + $0xb8] sm:$0xff] %vm1281_vm1, %v3388_v38  ;;  %3580 = vst.msk [vmem:[%s6322_s16 + $0xb8] sm:$0xff] %vm1281_vm1, %v3548_v45  ;;  %v3358_v54 = vmul.f32 %v7570_v52, %v2738_v51  ;;  %v3518_v47 = vmul.f32 %v7574_v63, %v2738_v51 }
 0x4e0   : > { %v3390_v33 = vadd.f32 %v3358_v54, %v3326_v62  ;;  %v3550_v12 = vadd.f32 %v3518_v47, %v3486_v32 }
 0x4e1   : > { %v2746_v31 = vpop.permute.xlu0 %2745 }
 0x4e2   : > { %3422 = vst.msk [vmem:[%s6325_s25 + $0xc8] sm:$0xff] %vm1281_vm1, %v3390_v33  ;;  %3582 = vst.msk [vmem:[%s6322_s16 + $0xc8] sm:$0xff] %vm1281_vm1, %v3550_v12  ;;  %v3360_v56 = vmul.f32 %v7570_v52, %v2746_v31  ;;  %v3520_v50 = vmul.f32 %v7574_v63, %v2746_v31 }
 0x4e4   : > { %v3392_v10 = vadd.f32 %v3360_v56, %v3328_v30  ;;  %v3552_v39 = vadd.f32 %v3520_v50, %v3488_v37 }
 0x4e5   : > { %v2758_v57 = vpop.permute.xlu0 %2757 }
 0x4e6   : > { %3424 = vst.msk [vmem:[%s6325_s25 + $0xd8] sm:$0xff] %vm1281_vm1, %v3392_v10  ;;  %3584 = vst.msk [vmem:[%s6322_s16 + $0xd8] sm:$0xff] %vm1281_vm1, %v3552_v39  ;;  %v3362_v52 = vmul.f32 %v7605_v19, %v2758_v57  ;;  %v3522_v63 = vmul.f32 %v7608_v44, %v2758_v57 }
 0x4e8   : > { %v3394_v24 = vadd.f32 %v3362_v52, %v3330_v40  ;;  %v3554_v7 = vadd.f32 %v3522_v63, %v3490_v6 }
 0x4e9   : > { %v2766_v53 = vpop.permute.xlu0 %2765 }
 0x4ea   : > { %3426 = vst.msk [vmem:[%s6325_s25 + $0xe8] sm:$0xff] %vm1281_vm1, %v3394_v24  ;;  %3586 = vst.msk [vmem:[%s6322_s16 + $0xe8] sm:$0xff] %vm1281_vm1, %v3554_v7  ;;  %v3364_v8 = vmul.f32 %v7605_v19, %v2766_v53  ;;  %v3524_v59 = vmul.f32 %v7608_v44, %v2766_v53 }
 0x4ec   : > { %v3396_v43 = vadd.f32 %v3364_v8, %v3332_v61  ;;  %v3556_v41 = vadd.f32 %v3524_v59, %v3492_v28 }
 0x4ee   : > { %3428 = vst.msk [vmem:[%s6325_s25 + $0xf8] sm:$0xff] %vm1281_vm1, %v3396_v43  ;;  %3588 = vst.msk [vmem:[%s6322_s16 + $0xf8] sm:$0xff] %vm1281_vm1, %v3556_v41 }
 0x4ef   : > { %5648 = shalt.err (!%p5645_p9)
}
 0x4f0   : > { %s5649_s16 = scalar_lea.hbm %s8309_s4, 4096  ;;  %s5653_s0 = scalar_lea.hbm %s8695_s17, 8192 }
 0x4f1   : > { %p5650_p13 = scmp.ne.s32.totalorder %s8309_s4, %s5649_s16  ;;  %p5654_p11 = scmp.lt.s32.totalorder %s8309_s4, %s8695_s17 }
 0x4f2   : > { %p5655_p1 = scmp.lt.s32.totalorder %s5653_s0, %s5649_s16 }
 0x4f3   : > { %p5651_p8 = pnand %p5650_p13, %p6114_p2 }
 0x4f4   : > { %p5656_p10 = por %p5655_p1, %p5654_p11 }
 0x4f5   : > { %p5652_p3 = pneg %p5651_p8 }
 0x4f7   : > { %p5657_p7 = pnand %p5656_p10, %p5652_p3 }
 0x4f9   : > { %5660 = shalt.err (!%p5657_p7)
}
 0x4fa   : > { %5170 = dma.vmem_to_hbm [thread:$0]  (%p6114_p2), %s8311_s27, 4096, %s8309_s4, %s4159_s15, %s8693_s8, %s8693_s8, %s8692_s13  }
 0x4fb   : > { %s5661_s5 = scalar_lea.vmem %s8319_s9, 4096  ;;  %s5889_s26 = smov [#allocation22]  }
 0x4fc   : > { %p5662_p0 = scmp.ne.s32.totalorder %s8319_s9, %s5661_s5  ;;  %s5665_s28 = sshll.u32 %s5889_s26, 4  ;;  %s5666_s28 = int_to_ptr.vmem [resolvable:$false] %s5665_s28 }
 0x4fd   : > { %s5667_s16 = scalar_lea.vmem %s5666_s28, 8192  ;;  %p5668_p4 = scmp.lt.s32.totalorder %s8319_s9, %s5666_s28 }
 0x4fe   : > { %p5663_p6 = pnand %p5662_p0, %p6114_p2  ;;  %p5669_p9 = scmp.lt.s32.totalorder %s5667_s16, %s5661_s5 }
 0x500   : > { %p5664_p5 = pneg %p5663_p6  ;;  %p5670_p13 = por %p5669_p9, %p5668_p4 }
 0x502   : > { %p5671_p8 = pnand %p5670_p13, %p5664_p5 }
 0x504   : > { %5674 = shalt.err (!%p5671_p8)
}
 0x505   : > { %s5675_s25 = scalar_lea.hbm %s8317_s24, 4096  ;;  %s5679_s19 = scalar_lea.hbm %s8697_s10, 8192 }
 0x506   : > { %p5676_p3 = scmp.ne.s32.totalorder %s8317_s24, %s5675_s25  ;;  %p5680_p10 = scmp.lt.s32.totalorder %s8317_s24, %s8697_s10 }
 0x507   : > { %p5681_p7 = scmp.lt.s32.totalorder %s5679_s19, %s5675_s25 }
 0x508   : > { %p5677_p11 = pnand %p5676_p3, %p6114_p2 }
 0x509   : > { %p5682_p0 = por %p5681_p7, %p5680_p10 }
 0x50a   : > { %p5678_p1 = pneg %p5677_p11 }
 0x50c   : > { %p5683_p6 = pnand %p5682_p0, %p5678_p1 }
 0x50e   : > { %5686 = shalt.err (!%p5683_p6)
}
 0x50f   : > { %s8699_s18 = scalar_lea.sflag [#allocation21], %s6261_s1  ;;  %s5687_s5 = scalar_lea.vmem %s8331_s2, 128 }
 0x510   : > { %5169 = dma.vmem_to_hbm [thread:$0]  (%p6114_p2), %s8319_s9, 4096, %s8317_s24, %s8699_s18, %s8693_s8, %s8693_s8, %s8692_s13  }
 0x511   : > { %p5688_p5 = scmp.ne.s32.totalorder %s8331_s2, %s5687_s5  ;;  %s5890_s26 = smov [#allocation25]  }
 0x512   : > { %s5691_s28 = sshll.u32 %s5890_s26, 4  ;;  %s5692_s28 = int_to_ptr.vmem [resolvable:$false] %s5691_s28 }
 0x513   : > { %p5689_p4 = pnand %p5688_p5, %p6114_p2  ;;  %s5693_s16 = scalar_lea.vmem %s5692_s28, 256 }
 0x514   : > { %p5694_p13 = scmp.lt.s32.totalorder %s8331_s2, %s5692_s28  ;;  %p5695_p8 = scmp.lt.s32.totalorder %s5693_s16, %s5687_s5 }
 0x515   : > { %p5690_p9 = pneg %p5689_p4 }
 0x516   : > { %p5696_p3 = por %p5695_p8, %p5694_p13 }
 0x518   : > { %p5697_p11 = pnand %p5696_p3, %p5690_p9 }
 0x51a   : > { %5700 = shalt.err (!%p5697_p11)
}
 0x51b   : > { %s5701_s25 = scalar_lea.hbm %s8329_s14, 128  ;;  %s5705_s8 = scalar_lea.hbm %s8698_s11, 256 }
 0x51c   : > { %p5702_p1 = scmp.ne.s32.totalorder %s8329_s14, %s5701_s25  ;;  %p5706_p0 = scmp.lt.s32.totalorder %s8329_s14, %s8698_s11 }
 0x51d   : > { %p5707_p6 = scmp.lt.s32.totalorder %s5705_s8, %s5701_s25 }
 0x51e   : > { %p5703_p10 = pnand %p5702_p1, %p6114_p2 }
 0x51f   : > { %p5708_p5 = por %p5707_p6, %p5706_p0 }
 0x520   : > { %p5704_p7 = pneg %p5703_p10 }
 0x522   : > { %p5709_p4 = pnand %p5708_p5, %p5704_p7 }
 0x524   : > { %5712 = shalt.err (!%p5709_p4)
}
 0x525   : > { %s8700_s4 = sld [smem:[#allocation37_spill]]  ;;  %s8701_s19 = scalar_lea.vmem [#allocation13], %s6293_s29  ;;  %v4118_v19 = vpop.permute.xlu0 %4117 }
 0x526   : > { %5171 = dma.vmem_to_hbm [thread:$0]  (%p6114_p2), %s8331_s2, 128, %s8329_s14, %s4159_s15  }
 0x527   : > { %s4179_s0 = sshll.u32 %s8701_s19, 4  ;;  %s8702_s21 = sshll.u32 %s8103_s12, 7  ;;  %s4180_s0 = int_to_ptr.vmem [resolvable:$true] %s4179_s0 }
 0x528   : > { %s8703_s26 = sld [smem:[#allocation75_spill]]  ;;  %s8705_s1 = smov %s8701_s19 }
 0x529   : > { %4120 = vst.msk [vmem:[%s8705_s1] sm:$0xff] %vm1281_vm1, %v4118_v19  ;;  %s5713_s24 = scalar_lea.vmem %s4180_s0, 128  ;;  %s5891_s15 = smov [#allocation13]  }
 0x52a   : > { %p5714_p9 = scmp.ne.s32.totalorder %s4180_s0, %s5713_s24  ;;  %s5717_s14 = sshll.u32 %s5891_s15, 4  ;;  %s5718_s14 = int_to_ptr.vmem [resolvable:$false] %s5717_s14 }
 0x52b   : > { %s8706_s6 = sand.u32 1, %s8700_s4   ;;  %s5719_s12 = scalar_lea.vmem %s5718_s14, 256 }
 0x52c   : > { %s4124_s25 = scalar_lea.sflag [#allocation4], %s8706_s6  ;;  %p5715_p13 = pnand %p5714_p9, %p6097_p12 }
 0x52d   : > { %p5720_p8 = scmp.lt.s32.totalorder %s4180_s0, %s5718_s14  ;;  %p5721_p3 = scmp.lt.s32.totalorder %s5719_s12, %s5713_s24 }
 0x52e   : > { %s8704_s16 = smov %s8703_s26  ;;  %s8413_s28 = scalar_lea.hbm %s8703_s26, %s8702_s21 }
 0x52f   : > { %p5716_p2 = pneg %p5715_p13  ;;  %p5722_p11 = por %p5721_p3, %p5720_p8 }
 0x531   : > { %p5723_p1 = pnand %p5722_p11, %p5716_p2 }
 0x533   : > { %5726 = shalt.err (!%p5723_p1)
}
 0x534   : > { %s5727_s29 = scalar_lea.hbm %s8413_s28, 128  ;;  %s5731_s8 = scalar_lea.hbm %s8704_s16, 1024 }
 0x535   : > { %p5728_p10 = scmp.ne.s32.totalorder %s8413_s28, %s5727_s29  ;;  %p5732_p6 = scmp.lt.s32.totalorder %s8413_s28, %s8704_s16 }
 0x536   : > { %p5733_p5 = scmp.lt.s32.totalorder %s5731_s8, %s5727_s29 }
 0x537   : > { %p5729_p7 = pnand %p5728_p10, %p6097_p12 }
 0x538   : > { %p5734_p4 = por %p5733_p5, %p5732_p6 }
 0x539   : > { %p5730_p0 = pneg %p5729_p7 }
 0x53b   : > { %p5735_p9 = pnand %p5734_p4, %p5730_p0 }
 0x53d   : > { %5738 = shalt.err (!%p5735_p9)
}
 0x53e   : > { %5163 = dma.vmem_to_hbm [thread:$0]  (%p6097_p12), %s4180_s0, 128, %s8413_s28, %s4124_s25  }
 0x53f PF: > { %s8707_s4 = sld [smem:[#allocation43_spill]] }
 0x540   : > { %s8708_s19 = sld [smem:[#allocation36_spill]] }
 0x541   : > { %s8709_s21 = sld [smem:[#allocation50_spill]] }
 0x545   : > { %p5229_p13 = scmp.ge.s32.totalorder %s8707_s4, 2 }
 0x546   : > { %s4313_s18 = sand.u32 1, %s8708_s19  }
 0x547   : > { %p8710_p2 = scmp.ne.s32.totalorder %s8709_s21, 0  ;;  %s4314_s5 = scalar_lea.sflag [#allocation4], %s4313_s18 }
 0x549   : > { %p5201_p8 = pnand %p5229_p13, %p8710_p2 }
 0x54b   : > { %p5202_p3 = pneg %p5201_p8 }
 0x54d   : > { %5800 = dma.done.wait (%p5202_p3), %s4314_s5, 128  }
 0x54e   : > { %5802 = vsyncadd (%p5202_p3), %s4314_s5, 4294967168  ;;  %s8711_s26 = sadd.s32 4294967294, %s8707_s4   ;;  %s8712_s1 = sld [smem:[#allocation51_spill]] }
 0x54f   : > { %s4322_s6 = sand.u32 1, %s8711_s26  }
 0x550   : > { %s4323_s0 = scalar_lea.sflag [#allocation15], %s4322_s6 }
 0x554   : > { %p8713_p11 = scmp.ne.s32.totalorder %s8712_s1, 0 }
 0x556   : > { %p5204_p1 = pnand %p5229_p13, %p8713_p11 }
 0x558   : > { %p8444_p10 = pneg %p5204_p1 }
 0x55a   : > { %5804 = dma.done.wait (%p8444_p10), %s4323_s0, 128  }
 0x55b   : > { %5806 = vsyncadd (%p8444_p10), %s4323_s0, 4294967168 }
 0x55c   : > { %5808 = dma.done.wait (%p5202_p3), %s4323_s0, 128  }
 0x55d   : > { %5810 = vsyncadd (%p5202_p3), %s4323_s0, 4294967168  ;;  %s4341_s28 = scalar_lea.sflag [#allocation18], %s4322_s6 }
 0x55e   : > { %5812 = dma.done.wait (%p8444_p10), %s4341_s28, 8192  }
 0x55f   : > { %5814 = vsyncadd (%p8444_p10), %s4341_s28, 4294959104  ;;  %s4359_s25 = scalar_lea.sflag [#allocation21], %s4322_s6 }
 0x560   : > { %5816 = dma.done.wait (%p8444_p10), %s4359_s25, 4224  }
 0x561   : > { %5818 = vsyncadd (%p8444_p10), %s4359_s25, 4294963072  ;;  %s4377_s24 = scalar_lea.sflag [#allocation24], %s4322_s6 }
 0x562   : > { %5820 = dma.done.wait (%p8444_p10), %s4377_s24, 4224  }
 0x563   : > { %5822 = vsyncadd (%p8444_p10), %s4377_s24, 4294963072  ;;  %s59_s5 = sadd.s32 1, %s8707_s4   ;;  %s8715_s2 = sld [smem:[#allocation37_spill]] }
 0x564   : > { %p56_p12 = scmp.ge.s32.totalorder %s59_s5, 10   ;;  %s8716_s25 = sld [smem:[#allocation38_spill]] }
 0x565   : > { %s8717_s26 = sld [smem:[#allocation48_spill]]  ;;  %s8723_s27 = smov %s5841_s3 }
 0x566   : > { %s8718_s15 = sld [smem:[#allocation39_spill]]  ;;  %s8725_s0 = smov %s5861_s30 }
 0x567   : > { %s8719_s28 = sld [smem:[#allocation47_spill]] }
 0x568   : > { %s8720_s29 = sld [smem:[#allocation42_spill]] }
 0x569   : > { %s8721_s4 = sld [smem:[#allocation44_spill]] }
 0x56a   : > { %s8722_s14 = sld [smem:[#allocation45_spill]] }
 0x56c   : > { %s8724_s3 = smov %s8718_s15  ;;  %58 = sbr.rel (!%p56_p12) target bundleno = 46 (0x2e), region = 316 }
 0x570   : > { %s8726_s30 = smov %s8722_s14 }
 0x571   :  { %4391 = vsyncpa [#allocation3], 1 }
 0x572   :  { %4393 = vsyncpa [#allocation3 + $0x1], 1 }
 0x573   :  { %4394 = vsyncpa [#allocation6], 1 }
 0x574   :  { %4396 = vsyncpa [#allocation6 + $0x1], 1 }
 0x575   :  { %4397 = vsyncpa [#allocation9], 1 }
 0x576   :  { %4399 = vsyncpa [#allocation9 + $0x1], 1 }
 0x577   :  { %4400 = vsyncpa [#allocation12], 1 }
 0x578   :  { %4402 = vsyncpa [#allocation12 + $0x1], 1 }
 0x579   :  { %4403 = vsyncpa [#allocation4], 1 }
 0x57a   :  { %4405 = vsyncpa [#allocation4 + $0x1], 1 }
 0x57b   :  { %4406 = vsyncpa [#allocation15], 1 }
 0x57c   :  { %4408 = vsyncpa [#allocation15 + $0x1], 1 }
 0x57d   :  { %4409 = vsyncpa [#allocation18], 1 }
 0x57e   :  { %4411 = vsyncpa [#allocation18 + $0x1], 1 }
 0x57f   :  { %4412 = vsyncpa [#allocation21], 1 }
 0x580   :  { %4414 = vsyncpa [#allocation21 + $0x1], 1 }
 0x581   :  { %4415 = vsyncpa [#allocation24], 1 }
 0x582   :  { %4417 = vsyncpa [#allocation24 + $0x1], 1 }

</bundles_post_ra>
